<compile_context>
chip_gen: v6e
topology: v6e:2x2x1
jax: 0.10.0
libtpu: 0.0.40
codegen_flags: <defaults>
</compile_context>

<pallas_src>
import functools

import jax
import jax.numpy as jnp
from jax.experimental import pallas as pl
from jax.experimental.pallas import tpu as pltpu


def _round_up(v, m):
    return ((v + m - 1) // m) * m


def _plan_k(K, *, k_splits=2, max_tk_bytes=4 * 1024 * 1024, n_cols=128,
            weight_itemsize=2):
    """Choose (k_splits, tk, n_k, padded_K) for the reduction dimension."""
    ks = k_splits if K >= 2 * 128 else 1
    ksplit = _round_up(-(-K // ks), 128)          # per-split K, 128-aligned
    # Cap the weight chunk so a double-buffered (tk, N) block stays small.
    max_tk = max(128, (max_tk_bytes // max(1, n_cols * weight_itemsize))
                 // 128 * 128)
    cap = min(ksplit, max_tk)
    tk = 128
    for cand in range(cap, 0, -128):
        if ksplit % cand == 0:
            tk = cand
            break
    n_k = ksplit // tk
    return ks, tk, n_k, ks * ksplit


def _linear_partial_kernel(x_ref, wt_ref, o_ref, *, relu_input):
    # x_ref:  (tm, tk)    f32 activation chunk
    # wt_ref: (tk, N)     bf16 (pre-transposed, pre-padded) weight chunk
    # o_ref:  (1, tm, N)  f32 partial-sum slab, resident across the k axis
    k = pl.program_id(2)

    @pl.when(k == 0)
    def _():
        o_ref[...] = jnp.zeros_like(o_ref)

    x = x_ref[...]
    if relu_input:                       # fused "ReLU before this Linear"
        x = jnp.maximum(x, 0.0)

    partial = jnp.dot(x.astype(wt_ref.dtype), wt_ref[...],
                      preferred_element_type=jnp.float32)
    o_ref[...] = o_ref[...] + partial[jnp.newaxis]


def pallas_linear_packed(x, layer):
    """y = (relu(x)?) @ W^T + b using the pre-packed (K, N) weight."""
    wt = layer["wt"]                     # (Kp, N) bf16, already transposed/padded
    b = layer["b"]                       # (N,) f32
    K = layer["K"]
    k_splits, tk, n_k = layer["k_splits"], layer["tk"], layer["n_k"]
    relu_input = layer["relu_input"]

    Kp, N = wt.shape
    M = x.shape[0]
    x = jnp.asarray(x, jnp.float32)

    tm = 128 if M >= 128 else _round_up(M, 8)     # sublane-aligned batch block
    Mp = _round_up(M, tm)
    if Mp != M or Kp != K:
        x = jnp.pad(x, ((0, Mp - M), (0, Kp - K)))   # zero pad: ReLU(0)=0, w-pad rows are 0

    grid = (k_splits, Mp // tm, n_k)

    def x_map(s, m, k, n_k=n_k):
        return (m, s * n_k + k)

    def w_map(s, m, k, n_k=n_k):
        return (s * n_k + k, 0)

    def o_map(s, m, k):
        return (s, m, 0)

    partials = pl.pallas_call(
        functools.partial(_linear_partial_kernel, relu_input=relu_input),
        out_shape=jax.ShapeDtypeStruct((k_splits, Mp, N), jnp.float32),
        grid_spec=pltpu.PrefetchScalarGridSpec(
            num_scalar_prefetch=0,
            grid=grid,
            in_specs=[
                pl.BlockSpec((tm, tk), x_map),       # activation chunk
                pl.BlockSpec((tk, N), w_map),        # weight chunk (bf16 stream)
            ],
            out_specs=pl.BlockSpec((1, tm, N), o_map),
        ),
        compiler_params=pltpu.CompilerParams(
            dimension_semantics=("parallel", "parallel", "arbitrary")),
    )(x, wt)

    # Tiny (k_splits, M, N) reduction + bias; fused by XLA, negligible traffic.
    return partials[:, :M, :].sum(axis=0) + b


def build_mlp_params(layer_sizes, final_relu, key):
    """Mirrors MLP.__init__: (optional ReLU) then Linear per layer. f32 params."""
    layer_sizes = [int(s) for s in layer_sizes]
    num_layers = len(layer_sizes) - 1
    final_relu_layer = num_layers if final_relu else num_layers - 1
    params, relu_flags = [], []
    for i in range(num_layers):
        in_f, out_f = layer_sizes[i], layer_sizes[i + 1]
        relu_flags.append(i < final_relu_layer)      # ReLU precedes this Linear
        key, kw, kb = jax.random.split(key, 3)
        bound = 1.0 / (in_f ** 0.5)                  # nn.Linear default init
        w = jax.random.uniform(kw, (out_f, in_f), jnp.float32, -bound, bound)
        bias = jax.random.uniform(kb, (out_f,), jnp.float32, -bound, bound)
        params.append((w, bias))
    return params, relu_flags


def pack_mlp_params(params, relu_flags, *, k_splits=2,
                    weight_dtype=jnp.bfloat16):
    """Hoist transpose / K-pad / dtype cast out of the per-call hot path."""
    packed = []
    for (w, b), relu_in in zip(params, relu_flags):
        N, K = w.shape
        ks, tk, n_k, Kp = _plan_k(
            K, k_splits=k_splits, n_cols=N,
            weight_itemsize=jnp.dtype(weight_dtype).itemsize)
        wt = jnp.asarray(w, jnp.float32).T           # (K, N) once, at build time
        if Kp != K:
            wt = jnp.pad(wt, ((0, Kp - K), (0, 0)))
        packed.append(dict(
            wt=wt.astype(weight_dtype),
            b=jnp.asarray(b, jnp.float32),
            K=K, k_splits=ks, tk=tk, n_k=n_k,
            relu_input=bool(relu_in)))
    return packed


def mlp_forward(x, packed_layers):
    h = jnp.asarray(x, jnp.float32)
    for layer in packed_layers:
        h = pallas_linear_packed(h, layer)
    return h


def mlp_reference(x, params, relu_flags):
    h = jnp.asarray(x, jnp.float32)
    for (w, bias), relu_in in zip(params, relu_flags):
        if relu_in:
            h = jnp.maximum(h, 0.0)
        h = jnp.dot(h, w.T, precision=jax.lax.Precision.HIGHEST) + bias
    return h


if __name__ == "__main__":
    tests = [
        # Module defaults: one Linear(6400 -> 394), no ReLU.
        dict(layer_sizes=[6400, 394], final_relu=False, batch=8),
        # Small multi-layer config exercising the fused ReLU path.
        dict(layer_sizes=[512, 256, 128], final_relu=True, batch=16),
    ]

    key = jax.random.PRNGKey(0)
    for cfg in tests:
        key, kx, kp = jax.random.split(key, 3)
        x = jax.random.normal(kx, (cfg["batch"], cfg["layer_sizes"][0]),
                              dtype=jnp.float32)
        params, relu_flags = build_mlp_params(cfg["layer_sizes"],
                                              cfg["final_relu"], kp)
        packed = pack_mlp_params(params, relu_flags)

        fwd = jax.jit(functools.partial(mlp_forward, packed_layers=packed))
        y = fwd(x)
        jax.block_until_ready(y)

        y_ref = mlp_reference(x, params, relu_flags)
        assert y.shape == (cfg["batch"], cfg["layer_sizes"][-1]), y.shape
        assert bool(jnp.all(jnp.isfinite(y)))
        max_err = float(jnp.max(jnp.abs(y - y_ref)))
        assert max_err < 2e-2, max_err

    print("KERNEL_OK")
</pallas_src>

<mosaic_0001>
module attributes {stable_mosaic.version = 11 : i64} {
  func.func @_linear_partial_kernel(%arg0: i32, %arg1: i32, %arg2: i32, %arg3: memref<8x3200xf32, #tpu.memory_space<vmem>>, %arg4: memref<3200x394xbf16, #tpu.memory_space<vmem>>, %arg5: memref<1x8x394xf32, #tpu.memory_space<vmem>>) attributes {dimension_semantics = [#tpu.dimension_semantics<parallel>, #tpu.dimension_semantics<parallel>, #tpu.dimension_semantics<arbitrary>], iteration_bounds = array<i64: 2, 1, 1>, scalar_prefetch = 0 : i64, scratch_operands = 0 : i64, tpu.core_type = #tpu.core_type<tc>, window_params = [{transform_indices = @transform_0, window_bounds = array<i64: 8, 3200>}, {transform_indices = @transform_1, window_bounds = array<i64: 3200, 394>}, {transform_indices = @transform_2, window_bounds = array<i64: 1, 8, 394>}]} {
    %c0_i32 = arith.constant 0 : i32
    %0 = arith.cmpi eq, %arg2, %c0_i32 : i32
    %1 = arith.extui %0 : i1 to i32
    %c0_i32_0 = arith.constant 0 : i32
    %2 = arith.cmpi ne, %1, %c0_i32_0 : i32
    scf.if %2 {
      %cst_10 = arith.constant 0.000000e+00 : f32
      %11 = vector.broadcast %cst_10 : f32 to vector<1x8x394xf32>
      %c0_11 = arith.constant 0 : index
      %c0_12 = arith.constant 0 : index
      %c0_13 = arith.constant 0 : index
      %12 = vector.load %arg5[%c0_11, %c0_12, %c0_13] : memref<1x8x394xf32, #tpu.memory_space<vmem>>, vector<1x8x394xf32>
      tpu.vector_store %arg5[%c0_11, %c0_12, %c0_13], %11 {strides = array<i32>} : memref<1x8x394xf32, #tpu.memory_space<vmem>>, vector<1x8x394xf32>,
    } else {
    }
    %c0 = arith.constant 0 : index
    %c0_1 = arith.constant 0 : index
    %3 = vector.load %arg3[%c0, %c0_1] : memref<8x3200xf32, #tpu.memory_space<vmem>>, vector<8x3200xf32>
    %4 = arith.truncf %3 : vector<8x3200xf32> to vector<8x3200xbf16>
    %c0_2 = arith.constant 0 : index
    %c0_3 = arith.constant 0 : index
    %5 = vector.load %arg4[%c0_2, %c0_3] : memref<3200x394xbf16, #tpu.memory_space<vmem>>, vector<3200x394xbf16>
    %cst = arith.constant dense<0.000000e+00> : vector<8x394xf32>
    %6 = tpu.matmul %4, %5, %cst {dimension_numbers = #tpu.dot_dimension_numbers<[1], [0], [0], [1], [0, 0, 1, 1], [], []>} : vector<8x3200xbf16>, vector<3200x394xbf16>, vector<8x394xf32> -> vector<8x394xf32>
    %c0_4 = arith.constant 0 : index
    %c0_5 = arith.constant 0 : index
    %c0_6 = arith.constant 0 : index
    %7 = vector.load %arg5[%c0_4, %c0_5, %c0_6] : memref<1x8x394xf32, #tpu.memory_space<vmem>>, vector<1x8x394xf32>
    %8 = vector.shape_cast %6 : vector<8x394xf32> to vector<1x8x394xf32>
    %9 = arith.addf %7, %8 : vector<1x8x394xf32>
    %c0_7 = arith.constant 0 : index
    %c0_8 = arith.constant 0 : index
    %c0_9 = arith.constant 0 : index
    %10 = vector.load %arg5[%c0_7, %c0_8, %c0_9] : memref<1x8x394xf32, #tpu.memory_space<vmem>>, vector<1x8x394xf32>
    tpu.vector_store %arg5[%c0_7, %c0_8, %c0_9], %9 {strides = array<i32>} : memref<1x8x394xf32, #tpu.memory_space<vmem>>, vector<1x8x394xf32>,
    return
  }
  func.func @transform_0(%arg0: i32, %arg1: i32, %arg2: i32) -> (i32, i32) {
    %c1_i32 = arith.constant 1 : i32
    %0 = arith.muli %arg0, %c1_i32 : i32
    %1 = arith.addi %0, %arg2 : i32
    %c0_i32 = arith.constant 0 : i32
    return %arg1, %1 : i32, i32
  }
  func.func @transform_1(%arg0: i32, %arg1: i32, %arg2: i32) -> (i32, i32) {
    %c1_i32 = arith.constant 1 : i32
    %0 = arith.muli %arg0, %c1_i32 : i32
    %1 = arith.addi %0, %arg2 : i32
    %c0_i32 = arith.constant 0 : i32
    %c0_i32_0 = arith.constant 0 : i32
    return %1, %c0_i32 : i32, i32
  }
  func.func @transform_2(%arg0: i32, %arg1: i32, %arg2: i32) -> (i32, i32, i32) {
    %c0_i32 = arith.constant 0 : i32
    %c0_i32_0 = arith.constant 0 : i32
    return %arg0, %arg1, %c0_i32 : i32, i32, i32
  }
}

</mosaic_0001>

<bundles_post_ra>
// kernel: mlp_forward.1
= control target key start
LH: loop header
LB: loop body
LE: loop exit
PB: predicated region body
PF: predicated region fallthrough
CT: control target
= control target key end

     0   :  { %7 = vsyncpa [#allocation3], 0  ;;  %s9658_s0 = inlined_call_operand.hbm [shape: f32[8,6400], index: 0, kind: input, shape index: {}]   ;;  %s9659_s1 = inlined_call_operand.hbm [shape: bf16[6400,394], index: 1, kind: input, shape index: {}]   ;;  %s9660_s2 = inlined_call_operand.vmem [shape: f32[2,8,394], index: 2, kind: output, shape index: {}]  }
   0x1   :  { %9 = vsyncpa [#allocation3 + $0x1], 0 }
   0x2   :  { %10 = vsyncpa [#allocation5], 0 }
   0x3   :  { %12 = vsyncpa [#allocation5 + $0x1], 0  ;;  %s8529_s9 = smov 0   ;;  %s8531_s10 = smov 0  }
   0x4   :  { %s8533_s11 = smov 0   ;;  %s8535_s12 = smov 0  }
   0x5   :  { %s8537_s13 = smov 0   ;;  %s8539_s14 = smov 0  }
   0x6 LB: > { %s6311_s15 = sadd.s32 4294967295, %s8506_s14   ;;  %s37_s16 = sadd.s32 1, %s8502_s13  ;;  %s8506_s14 = sphi %s8539_s14, %s18_s14   ;;  %s8502_s13 = sphi %s8537_s13, %s9668_s13   ;;  %s8498_s12 = sphi %s8535_s12, %s9667_s12   ;;  %s8494_s11 = sphi %s8533_s11, %s9666_s11   ;;  %s8490_s10 = sphi %s8531_s10, %s9665_s10   ;;  %s8486_s9 = sphi %s8529_s9, %s9664_s9  }
   0x7   : > { %p39_p0 = scmp.ge.s32.totalorder %s37_s16, 2  ;;  %s48_s17 = sadd.s32 1, %s8494_s11 }
   0x8   : > { %p55_p1 = scmp.ne.s32.totalorder %s8494_s11, %s8490_s10  ;;  %p56_p2 = scmp.eq.s32.totalorder %s8506_s14, 0 }
   0x9   : > { %s9670_s16 = smov (%p39_p0, %s37_s16), 0  ;;  %p61_p4 = scmp.ne.s32.totalorder %s8490_s10, %s8486_s9 }
   0xa   : > { %p57_p3 = por %p56_p2, %p55_p1  ;;  %s44_s18 = ssub.s32 %s8502_s13, %s9670_s16 }
   0xb   : > { %p62_p5 = scmp.eq.s32.totalorder %s6311_s15, 0  ;;  %p46_p6 = scmp.eq.s32.totalorder %s44_s18, 0 }
   0xc   : > { %p7143_p8 = scmp.lt.s32.totalorder %s8506_s14, 2  ;;  %s8577_s21 = sand.u32 1, %s8494_s11  }
   0xd   : > { %p8568_p7 = por %p62_p5, %p61_p4  ;;  %s7123_s22 = smul.u32 3200, %s8502_s13 }
   0xe   : > { %s8574_s20 = scalar_select %p46_p6, %s8494_s11, %s48_s17  }
   0xf   : > { %s7128_s23 = smul.u32 200, %s8577_s21  ;;  %s154_s26 = scalar_lea.hbm %s9658_s0, %s7123_s22 }
  0x10   : > { %p8584_p9 = pnand %p7143_p8, %p57_p3  ;;  %p6318_p10 = scmp.ge.s32.totalorder %s8506_s14, 1 }
  0x11   : > { %s145_s28 = scalar_lea.vmem [#allocation2], %s7128_s23  ;;  %p184_p11 = scmp.lt.s32.totalorder %s8506_s14, 3 }
  0x12   : > { %s156_s29 = sshll.u32 %s145_s28, 4  ;;  %s142_s30 = scalar_lea.sflag [#allocation3], %s8577_s21  ;;  %s157_s29 = int_to_ptr.vmem [resolvable:$true] %s156_s29 }
  0x13   : > { %p8398_p12 = pneg %p8584_p9  ;;  %s8409_s3 = scalar_lea.vmem %s157_s29, 3200 }
  0x14   : > { %p8410_p13 = scmp.ne.s32.totalorder %s157_s29, %s8409_s3  ;;  %s8508_s4 = smov [#allocation2]  }
  0x15   : > { %s8414_s5 = sshll.u32 %s8508_s4, 4  ;;  %s8415_s5 = int_to_ptr.vmem [resolvable:$false] %s8414_s5 }
  0x16   : > { %p8412_p0 = pnand %p8410_p13, %p8398_p12  ;;  %s8416_s6 = scalar_lea.vmem %s8415_s5, 6400 }
  0x17   : > { %p8417_p2 = scmp.lt.s32.totalorder %s157_s29, %s8415_s5  ;;  %p8418_p3 = scmp.lt.s32.totalorder %s8416_s6, %s8409_s3 }
  0x18   : > { %p8413_p1 = pneg %p8412_p0 }
  0x19   : > { %p8419_p4 = por %p8418_p3, %p8417_p2 }
  0x1b   : > { %p8420_p5 = pnand %p8419_p4, %p8413_p1 }
  0x1d   : > { %8423 = shalt.err (!%p8420_p5)
}
  0x1e   : > { %7139 = dma.hbm_to_vmem [thread:$0]  (!%p8584_p9), %s154_s26, 3200, %s157_s29, %s142_s30  }
  0x1f   : > { %p8602_p6 = pnand %p6318_p10, %p184_p11  ;;  %s7129_s8 = smul.u32 6400, %s8577_s21 }
  0x20   : > { %s7127_s9 = smul.u32 102400, %s8502_s13  ;;  %s164_s24 = scalar_lea.sflag [#allocation5], %s8577_s21 }
  0x21   : > { %s167_s22 = scalar_lea.vmem [#allocation4], %s7129_s8  ;;  %s8509_s26 = smov [#allocation4]  }
  0x22   : > { %s175_s18 = scalar_lea.hbm %s9659_s1, %s7127_s9  ;;  %s176_s23 = sshll.u32 %s167_s22, 4  ;;  %s177_s23 = int_to_ptr.vmem [resolvable:$true] %s176_s23 }
  0x23   : > { %s8437_s25 = scalar_lea.vmem %s177_s23, 102400  ;;  %s8442_s28 = sshll.u32 %s8509_s26, 4  ;;  %s8443_s28 = int_to_ptr.vmem [resolvable:$false] %s8442_s28 }
  0x24   : > { %p8438_p8 = scmp.ne.s32.totalorder %s177_s23, %s8437_s25  ;;  %s8444_s29 = scalar_lea.vmem %s8443_s28, 204800 }
  0x25   : > { %p8445_p10 = scmp.lt.s32.totalorder %s177_s23, %s8443_s28  ;;  %p8446_p11 = scmp.lt.s32.totalorder %s8444_s29, %s8437_s25 }
  0x26   : > { %p8440_p13 = pnand %p8438_p8, %p8398_p12 }
  0x27   : > { %p8447_p1 = por %p8446_p11, %p8445_p10 }
  0x28   : > { %p8441_p0 = pneg %p8440_p13 }
  0x2a   : > { %p8448_p2 = pnand %p8447_p1, %p8441_p0 }
  0x2c   : > { %8451 = shalt.err (!%p8448_p2)
}
  0x2d   : > { %s8510_s30 = smov 256   ;;  %s8511_s3 = smov 16  }
  0x2e   : > { %7142 = dma.hbm_to_vmem [thread:$0]  (!%p8584_p9), %s175_s18, 102400, %s177_s23, %s164_s24, %s8510_s30, %s8510_s30, %s8511_s3  }
  0x2f   : > { %188 = sbr.rel (%p8602_p6) target bundleno = 1060 (0x424), region = 28  ;;  %s190_s21 = sand.u32 (!%p8602_p6), 1, %s8490_s10  }
  0x30   : > { %s7130_s4 = smul.u32 (!%p8602_p6), 200, %s190_s21  ;;  %s191_s5 = scalar_lea.sflag (!%p8602_p6), [#allocation3], %s190_s21 }
  0x32   : > { %s8620_s6 = scalar_lea.vmem (!%p8602_p6), [#allocation2], %s7130_s4 }
  0x34   : > { %8477 = dma.done.wait (%p8568_p7), %s191_s5, 3200  }
  0x35   : > { %8479 = vsyncadd (%p8568_p7), %s191_s5, 4294964096  ;;  %s7131_s8 = smul.u32 6400, %s190_s21  ;;  %s200_s9 = scalar_lea.sflag [#allocation5], %s190_s21 }
  0x37   : > { %s8626_s27 = scalar_lea.vmem [#allocation4], %s7131_s8 }
  0x38   : > { %8481 = dma.done.wait (%p8568_p7), %s200_s9, 102400  }
  0x39   : > { %8483 = vsyncadd (%p8568_p7), %s200_s9, 4294864896  ;;  %v7196_v0 = vld [vmem:[%s8626_s27 + $0xe4] ss:$16 sps:$4 sm:$0xff]   ;;  %v7200_v2 = vld [vmem:[%s8626_s27 + $0xe0] ss:$16 sps:$4 sm:$0xff]   ;;  %p237_p7 = scmp.lt.s32.totalorder %s8498_s12, 1 }
  0x3a   : > { %v7198_v1 = vld [vmem:[%s8626_s27 + $0x2e4] ss:$16 sps:$4 sm:$0xff]   ;;  %5106 = vmatprep.subr.bf16.mxu0 %v7196_v0  ;;  %v7201_v3 = vld [vmem:[%s8626_s27 + $0x2e0] ss:$16 sps:$4 sm:$0xff]   ;;  %vm254_vm0 = vcmask 80896  }
  0x3b   : > { %5147 = vmatprep.subr.bf16.mxu1 %v7198_v1  ;;  %v7202_v4 = vld [vmem:[%s8626_s27 + $0xc4] ss:$16 sps:$4 sm:$0xff]   ;;  %5107 = vmatpush1.bf16.msra.mxu0 %v7200_v2  ;;  %v7206_v6 = vld [vmem:[%s8626_s27 + $0xc0] ss:$16 sps:$4 sm:$0xff]   ;;  %s9672_s12 = smov (!%p237_p7, %s8498_s12), 1 }
  0x3c   : > { %5148 = vmatpush1.bf16.msra.mxu1 %v7201_v3  ;;  %v7204_v5 = vld [vmem:[%s8626_s27 + $0x2c4] ss:$16 sps:$4 sm:$0xff]   ;;  %5108 = vmatprep.subr.bf16.mxu0 %v7202_v4  ;;  %v7207_v7 = vld [vmem:[%s8626_s27 + $0x2c0] ss:$16 sps:$4 sm:$0xff]   ;;  %s7126_s19 = sshll.u32 %s9672_s12, 5 }
  0x3d   : > { %5149 = vmatprep.subr.bf16.mxu1 %v7204_v5  ;;  %v7208_v8 = vld [vmem:[%s8626_s27 + $0xa4] ss:$16 sps:$4 sm:$0xff]   ;;  %v7212_v10 = vld [vmem:[%s8626_s27 + $0xa0] ss:$16 sps:$4 sm:$0xff]   ;;  %s9406_s17 = scalar_lea.vmem %s9660_s2, %s7126_s19 }
  0x3e   : > { %v7210_v9 = vld [vmem:[%s8626_s27 + $0x2a4] ss:$16 sps:$4 sm:$0xff]   ;;  %v7213_v11 = vld [vmem:[%s8626_s27 + $0x2a0] ss:$16 sps:$4 sm:$0xff]  }
  0x3f   : > { %5109 = vmatpush1.bf16.msra.mxu0 %v7206_v6  ;;  %v7214_v12 = vld [vmem:[%s8626_s27 + $0x84] ss:$16 sps:$4 sm:$0xff]   ;;  %v7218_v14 = vld [vmem:[%s8626_s27 + $0x80] ss:$16 sps:$4 sm:$0xff]  }
  0x40   : > { %5150 = vmatpush1.bf16.msra.mxu1 %v7207_v7  ;;  %5110 = vmatprep.subr.bf16.mxu0 %v7208_v8  ;;  %v7216_v13 = vld [vmem:[%s8626_s27 + $0x284] ss:$16 sps:$4 sm:$0xff]   ;;  %v7219_v15 = vld [vmem:[%s8626_s27 + $0x280] ss:$16 sps:$4 sm:$0xff]  }
  0x41   : > { %5151 = vmatprep.subr.bf16.mxu1 %v7210_v9  ;;  %v7220_v16 = vld [vmem:[%s8626_s27 + $0x64] ss:$16 sps:$4 sm:$0xff]   ;;  %v7224_v18 = vld [vmem:[%s8626_s27 + $0x60] ss:$16 sps:$4 sm:$0xff]  }
  0x42   : > { %v7222_v17 = vld [vmem:[%s8626_s27 + $0x264] ss:$16 sps:$4 sm:$0xff]   ;;  %v7225_v19 = vld [vmem:[%s8626_s27 + $0x260] ss:$16 sps:$4 sm:$0xff]  }
  0x43   : > { %5111 = vmatpush1.bf16.msra.mxu0 %v7212_v10  ;;  %v7226_v20 = vld [vmem:[%s8626_s27 + $0x44] ss:$16 sps:$4 sm:$0xff]   ;;  %v7230_v22 = vld [vmem:[%s8626_s27 + $0x40] ss:$16 sps:$4 sm:$0xff]  }
  0x44   : > { %5152 = vmatpush1.bf16.msra.mxu1 %v7213_v11  ;;  %5112 = vmatprep.subr.bf16.mxu0 %v7214_v12  ;;  %v7228_v21 = vld [vmem:[%s8626_s27 + $0x244] ss:$16 sps:$4 sm:$0xff]   ;;  %v7231_v23 = vld [vmem:[%s8626_s27 + $0x240] ss:$16 sps:$4 sm:$0xff]  }
  0x45   : > { %5153 = vmatprep.subr.bf16.mxu1 %v7216_v13  ;;  %v7232_v24 = vld [vmem:[%s8626_s27 + $0x24] ss:$16 sps:$4 sm:$0xff]   ;;  %v7236_v26 = vld [vmem:[%s8626_s27 + $0x20] ss:$16 sps:$4 sm:$0xff]  }
  0x46   : > { %v7234_v25 = vld [vmem:[%s8626_s27 + $0x224] ss:$16 sps:$4 sm:$0xff]   ;;  %v7237_v27 = vld [vmem:[%s8626_s27 + $0x220] ss:$16 sps:$4 sm:$0xff]  }
  0x47   : > { %5113 = vmatpush1.bf16.msra.mxu0 %v7218_v14  ;;  %v7238_v28 = vld [vmem:[%s8626_s27 + $0x4] ss:$16 sps:$4 sm:$0xff]   ;;  %v7242_v30 = vld [vmem:[%s8626_s27] ss:$16 sps:$4 sm:$0xff]  }
  0x48   : > { %5154 = vmatpush1.bf16.msra.mxu1 %v7219_v15  ;;  %5114 = vmatprep.subr.bf16.mxu0 %v7220_v16  ;;  %v7240_v29 = vld [vmem:[%s8626_s27 + $0x204] ss:$16 sps:$4 sm:$0xff]   ;;  %v7243_v31 = vld [vmem:[%s8626_s27 + $0x200] ss:$16 sps:$4 sm:$0xff]  }
  0x49   : > { %5155 = vmatprep.subr.bf16.mxu1 %v7222_v17  ;;  %v7244_v32 = vld [vmem:[%s8626_s27 + $0x1e4] ss:$16 sps:$4 sm:$0xff]   ;;  %v7248_v34 = vld [vmem:[%s8626_s27 + $0x1e0] ss:$16 sps:$4 sm:$0xff]  }
  0x4a   : > { %v7246_v33 = vld [vmem:[%s8626_s27 + $0x3e4] ss:$16 sps:$4 sm:$0xff]   ;;  %v7249_v35 = vld [vmem:[%s8626_s27 + $0x3e0] ss:$16 sps:$4 sm:$0xff]  }
  0x4b   : > { %5115 = vmatpush1.bf16.msra.mxu0 %v7224_v18  ;;  %v7250_v36 = vld [vmem:[%s8626_s27 + $0x1c4] ss:$16 sps:$4 sm:$0xff]   ;;  %v7254_v38 = vld [vmem:[%s8626_s27 + $0x1c0] ss:$16 sps:$4 sm:$0xff]  }
  0x4c   : > { %5156 = vmatpush1.bf16.msra.mxu1 %v7225_v19  ;;  %5116 = vmatprep.subr.bf16.mxu0 %v7226_v20  ;;  %v7252_v37 = vld [vmem:[%s8626_s27 + $0x3c4] ss:$16 sps:$4 sm:$0xff]   ;;  %v7255_v39 = vld [vmem:[%s8626_s27 + $0x3c0] ss:$16 sps:$4 sm:$0xff]  }
  0x4d   : > { %5157 = vmatprep.subr.bf16.mxu1 %v7228_v21  ;;  %v7256_v40 = vld [vmem:[%s8626_s27 + $0x1a4] ss:$16 sps:$4 sm:$0xff]   ;;  %v7260_v42 = vld [vmem:[%s8626_s27 + $0x1a0] ss:$16 sps:$4 sm:$0xff]  }
  0x4e   : > { %v7258_v41 = vld [vmem:[%s8626_s27 + $0x3a4] ss:$16 sps:$4 sm:$0xff]   ;;  %v7261_v43 = vld [vmem:[%s8626_s27 + $0x3a0] ss:$16 sps:$4 sm:$0xff]  }
  0x4f   : > { %5117 = vmatpush1.bf16.msra.mxu0 %v7230_v22  ;;  %v7262_v44 = vld [vmem:[%s8626_s27 + $0x184] ss:$16 sps:$4 sm:$0xff]   ;;  %v7266_v47 = vld [vmem:[%s8626_s27 + $0x180] ss:$16 sps:$4 sm:$0xff]  }
  0x50   : > { %5158 = vmatpush1.bf16.msra.mxu1 %v7231_v23  ;;  %5118 = vmatprep.subr.bf16.mxu0 %v7232_v24  ;;  %v7264_v45 = vld [vmem:[%s8626_s27 + $0x384] ss:$16 sps:$4 sm:$0xff]   ;;  %v7267_v48 = vld [vmem:[%s8626_s27 + $0x380] ss:$16 sps:$4 sm:$0xff]  }
  0x51   : > { %5159 = vmatprep.subr.bf16.mxu1 %v7234_v25  ;;  %v257_v46 = vld [vmem:[%s8620_s6 + $0x8] sm:$0xff]  ;;  %v259_v50 = vld [vmem:[%s8620_s6 + $0x18] sm:$0xff]  ;;  %v256_v4 = vld [vmem:[%s8620_s6] sm:$0xff] }
  0x52   : > { %v8681_v49 = vpack.c.bf16 %v257_v46, %v257_v46  ;;  %v7268_v51 = vld [vmem:[%s8626_s27 + $0x164] ss:$16 sps:$4 sm:$0xff]   ;;  %v8685_v52 = vpack.c.bf16 %v259_v50, %v259_v50  ;;  %v7272_v54 = vld [vmem:[%s8626_s27 + $0x160] ss:$16 sps:$4 sm:$0xff]   ;;  %v8708_v8 = vpack.c.bf16 %v256_v4, %v256_v4 }
  0x53   : > { %5119 = vmatpush1.bf16.msra.mxu0 %v7236_v26  ;;  %v7270_v53 = vld [vmem:[%s8626_s27 + $0x364] ss:$16 sps:$4 sm:$0xff]   ;;  %v7273_v55 = vld [vmem:[%s8626_s27 + $0x360] ss:$16 sps:$4 sm:$0xff]  }
  0x54   : > { %5160 = vmatpush1.bf16.msra.mxu1 %v7237_v27  ;;  %5120 = vmatprep.subr.bf16.mxu0 %v7238_v28  ;;  %v7274_v56 = vld [vmem:[%s8626_s27 + $0x144] ss:$16 sps:$4 sm:$0xff]   ;;  %v7278_v58 = vld [vmem:[%s8626_s27 + $0x140] ss:$16 sps:$4 sm:$0xff]  }
  0x55   : > { %5161 = vmatprep.subr.bf16.mxu1 %v7240_v29  ;;  %5138 = vmatprep.mubr.bf16.mxu0 %v8681_v49  ;;  %v7276_v57 = vld [vmem:[%s8626_s27 + $0x344] ss:$16 sps:$4 sm:$0xff]   ;;  %v7279_v59 = vld [vmem:[%s8626_s27 + $0x340] ss:$16 sps:$4 sm:$0xff]  }
  0x56   : > { %5179 = vmatprep.mubr.bf16.mxu1 %v8685_v52  ;;  %v7280_v60 = vld [vmem:[%s8626_s27 + $0x124] ss:$16 sps:$4 sm:$0xff]   ;;  %v7284_v62 = vld [vmem:[%s8626_s27 + $0x120] ss:$16 sps:$4 sm:$0xff]  }
  0x57   : > { %5121 = vmatpush1.bf16.msra.mxu0 %v7242_v30  ;;  %v7282_v61 = vld [vmem:[%s8626_s27 + $0x324] ss:$16 sps:$4 sm:$0xff]   ;;  %v7285_v63 = vld [vmem:[%s8626_s27 + $0x320] ss:$16 sps:$4 sm:$0xff]  }
  0x58   : > { %5162 = vmatpush1.bf16.msra.mxu1 %v7243_v31  ;;  %5122 = vmatprep.subr.bf16.mxu0 %v7244_v32  ;;  %v7286_v0 = vld [vmem:[%s8626_s27 + $0x104] ss:$16 sps:$4 sm:$0xff]   ;;  %v7290_v2 = vld [vmem:[%s8626_s27 + $0x100] ss:$16 sps:$4 sm:$0xff]  }
  0x59   : > { %5163 = vmatprep.subr.bf16.mxu1 %v7246_v33  ;;  %v7288_v1 = vld [vmem:[%s8626_s27 + $0x304] ss:$16 sps:$4 sm:$0xff]   ;;  %v7291_v3 = vld [vmem:[%s8626_s27 + $0x300] ss:$16 sps:$4 sm:$0xff]  }
  0x5a   : > { %v258_v5 = vld [vmem:[%s8620_s6 + $0x10] sm:$0xff] }
  0x5b   : > { %5123 = vmatpush2.bf16.msra.mxu0 %v7248_v34  ;;  %v7294_v6 = vld [vmem:[%s8626_s27 + $0x4e4] ss:$16 sps:$4 sm:$0xff]   ;;  %v8710_v9 = vpack.c.bf16 %v258_v5, %v258_v5  ;;  %v7292_v10 = vld [vmem:[%s8626_s27 + $0x4e0] ss:$16 sps:$4 sm:$0xff]  }
  0x5c   : > { %5164 = vmatpush2.bf16.msra.mxu1 %v7249_v35  ;;  %5124 = vmatprep.subr.bf16.mxu0 %v7250_v36  ;;  %v7297_v7 = vld [vmem:[%s8626_s27 + $0x6e4] ss:$16 sps:$4 sm:$0xff]   ;;  %v7295_v11 = vld [vmem:[%s8626_s27 + $0x6e0] ss:$16 sps:$4 sm:$0xff]  }
  0x5d   : > { %5165 = vmatprep.subr.bf16.mxu1 %v7252_v37  ;;  %v7300_v12 = vld [vmem:[%s8626_s27 + $0x4c4] ss:$16 sps:$4 sm:$0xff]   ;;  %v7298_v14 = vld [vmem:[%s8626_s27 + $0x4c0] ss:$16 sps:$4 sm:$0xff]  }
  0x5e   : > { %v7303_v13 = vld [vmem:[%s8626_s27 + $0x6c4] ss:$16 sps:$4 sm:$0xff]   ;;  %v7301_v15 = vld [vmem:[%s8626_s27 + $0x6c0] ss:$16 sps:$4 sm:$0xff]  }
  0x5f   : > { %5125 = vmatpush2.bf16.msra.mxu0 %v7254_v38  ;;  %v7306_v16 = vld [vmem:[%s8626_s27 + $0x4a4] ss:$16 sps:$4 sm:$0xff]   ;;  %v7304_v18 = vld [vmem:[%s8626_s27 + $0x4a0] ss:$16 sps:$4 sm:$0xff]  }
  0x60   : > { %5166 = vmatpush2.bf16.msra.mxu1 %v7255_v39  ;;  %5126 = vmatprep.subr.bf16.mxu0 %v7256_v40  ;;  %v7309_v17 = vld [vmem:[%s8626_s27 + $0x6a4] ss:$16 sps:$4 sm:$0xff]   ;;  %v7307_v19 = vld [vmem:[%s8626_s27 + $0x6a0] ss:$16 sps:$4 sm:$0xff]  }
  0x61   : > { %5167 = vmatprep.subr.bf16.mxu1 %v7258_v41  ;;  %v7312_v20 = vld [vmem:[%s8626_s27 + $0x484] ss:$16 sps:$4 sm:$0xff]   ;;  %v7310_v22 = vld [vmem:[%s8626_s27 + $0x480] ss:$16 sps:$4 sm:$0xff]  }
  0x62   : > { %v7315_v21 = vld [vmem:[%s8626_s27 + $0x684] ss:$16 sps:$4 sm:$0xff]   ;;  %v7313_v23 = vld [vmem:[%s8626_s27 + $0x680] ss:$16 sps:$4 sm:$0xff]  }
  0x63   : > { %5127 = vmatpush2.bf16.msra.mxu0 %v7260_v42  ;;  %v7318_v24 = vld [vmem:[%s8626_s27 + $0x464] ss:$16 sps:$4 sm:$0xff]   ;;  %v7316_v26 = vld [vmem:[%s8626_s27 + $0x460] ss:$16 sps:$4 sm:$0xff]  }
  0x64   : > { %5168 = vmatpush2.bf16.msra.mxu1 %v7261_v43  ;;  %5128 = vmatprep.subr.bf16.mxu0 %v7262_v44  ;;  %v7321_v25 = vld [vmem:[%s8626_s27 + $0x664] ss:$16 sps:$4 sm:$0xff]   ;;  %v7319_v27 = vld [vmem:[%s8626_s27 + $0x660] ss:$16 sps:$4 sm:$0xff]  }
  0x65   : > { %5169 = vmatprep.subr.bf16.mxu1 %v7264_v45  ;;  %v7324_v28 = vld [vmem:[%s8626_s27 + $0x444] ss:$16 sps:$4 sm:$0xff]   ;;  %v7322_v30 = vld [vmem:[%s8626_s27 + $0x440] ss:$16 sps:$4 sm:$0xff]  }
  0x66   : > { %v7327_v29 = vld [vmem:[%s8626_s27 + $0x644] ss:$16 sps:$4 sm:$0xff]   ;;  %v7325_v31 = vld [vmem:[%s8626_s27 + $0x640] ss:$16 sps:$4 sm:$0xff]  }
  0x67   : > { %5129 = vmatpush2.bf16.msra.mxu0 %v7266_v47  ;;  %v7330_v32 = vld [vmem:[%s8626_s27 + $0x424] ss:$16 sps:$4 sm:$0xff]   ;;  %v7328_v35 = vld [vmem:[%s8626_s27 + $0x420] ss:$16 sps:$4 sm:$0xff]  }
  0x68   : > { %5170 = vmatpush2.bf16.msra.mxu1 %v7267_v48  ;;  %5130 = vmatprep.subr.bf16.mxu0 %v7268_v51  ;;  %v7333_v33 = vld [vmem:[%s8626_s27 + $0x624] ss:$16 sps:$4 sm:$0xff]   ;;  %v7331_v36 = vld [vmem:[%s8626_s27 + $0x620] ss:$16 sps:$4 sm:$0xff]  }
  0x69   : > { %5171 = vmatprep.subr.bf16.mxu1 %v7270_v53  ;;  %v261_v34 = vld [vmem:[%s8620_s6 + $0x28] sm:$0xff]  ;;  %v263_v38 = vld [vmem:[%s8620_s6 + $0x38] sm:$0xff] }
  0x6a   : > { %v8741_v37 = vpack.c.bf16 %v261_v34, %v261_v34  ;;  %v7336_v39 = vld [vmem:[%s8626_s27 + $0x404] ss:$16 sps:$4 sm:$0xff]   ;;  %v8745_v40 = vpack.c.bf16 %v263_v38, %v263_v38  ;;  %v7334_v42 = vld [vmem:[%s8626_s27 + $0x400] ss:$16 sps:$4 sm:$0xff]  }
  0x6b   : > { %5131 = vmatpush2.bf16.msra.mxu0 %v7272_v54  ;;  %v7339_v41 = vld [vmem:[%s8626_s27 + $0x604] ss:$16 sps:$4 sm:$0xff]   ;;  %v7337_v43 = vld [vmem:[%s8626_s27 + $0x600] ss:$16 sps:$4 sm:$0xff]  }
  0x6c   : > { %5172 = vmatpush2.bf16.msra.mxu1 %v7273_v55  ;;  %5132 = vmatprep.subr.bf16.mxu0 %v7274_v56  ;;  %v7342_v44 = vld [vmem:[%s8626_s27 + $0x5e4] ss:$16 sps:$4 sm:$0xff]   ;;  %v7340_v46 = vld [vmem:[%s8626_s27 + $0x5e0] ss:$16 sps:$4 sm:$0xff]  }
  0x6d   : > { %5173 = vmatprep.subr.bf16.mxu1 %v7276_v57  ;;  %v7345_v45 = vld [vmem:[%s8626_s27 + $0x7e4] ss:$16 sps:$4 sm:$0xff]   ;;  %v7343_v47 = vld [vmem:[%s8626_s27 + $0x7e0] ss:$16 sps:$4 sm:$0xff]  }
  0x6e   : > { %v7348_v48 = vld [vmem:[%s8626_s27 + $0x5c4] ss:$16 sps:$4 sm:$0xff]   ;;  %v7346_v51 = vld [vmem:[%s8626_s27 + $0x5c0] ss:$16 sps:$4 sm:$0xff]  }
  0x6f   : > { %5133 = vmatpush2.bf16.msra.mxu0 %v7278_v58  ;;  %v7351_v50 = vld [vmem:[%s8626_s27 + $0x7c4] ss:$16 sps:$4 sm:$0xff]   ;;  %v7349_v53 = vld [vmem:[%s8626_s27 + $0x7c0] ss:$16 sps:$4 sm:$0xff]  }
  0x70   : > { %5174 = vmatpush2.bf16.msra.mxu1 %v7279_v59  ;;  %5134 = vmatprep.subr.bf16.mxu0 %v7280_v60  ;;  %v7354_v54 = vld [vmem:[%s8626_s27 + $0x5a4] ss:$16 sps:$4 sm:$0xff]   ;;  %v7352_v56 = vld [vmem:[%s8626_s27 + $0x5a0] ss:$16 sps:$4 sm:$0xff]  }
  0x71   : > { %5175 = vmatprep.subr.bf16.mxu1 %v7282_v61  ;;  %v7357_v55 = vld [vmem:[%s8626_s27 + $0x7a4] ss:$16 sps:$4 sm:$0xff]   ;;  %v7355_v57 = vld [vmem:[%s8626_s27 + $0x7a0] ss:$16 sps:$4 sm:$0xff]  }
  0x72   : > { %v7360_v58 = vld [vmem:[%s8626_s27 + $0x584] ss:$16 sps:$4 sm:$0xff]   ;;  %v7358_v60 = vld [vmem:[%s8626_s27 + $0x580] ss:$16 sps:$4 sm:$0xff]  }
  0x73   : > { %5135 = vmatpush2.bf16.msra.mxu0 %v7284_v62  ;;  %v7363_v59 = vld [vmem:[%s8626_s27 + $0x784] ss:$16 sps:$4 sm:$0xff]   ;;  %v7361_v61 = vld [vmem:[%s8626_s27 + $0x780] ss:$16 sps:$4 sm:$0xff]  }
  0x74   : > { %5176 = vmatpush2.bf16.msra.mxu1 %v7285_v63  ;;  %5136 = vmatprep.subr.bf16.mxu0 %v7286_v0  ;;  %v7366_v62 = vld [vmem:[%s8626_s27 + $0x564] ss:$16 sps:$4 sm:$0xff]   ;;  %v7364_v0 = vld [vmem:[%s8626_s27 + $0x560] ss:$16 sps:$4 sm:$0xff]  }
  0x75   : > { %5177 = vmatprep.subr.bf16.mxu1 %v7288_v1  ;;  %v7369_v63 = vld [vmem:[%s8626_s27 + $0x764] ss:$16 sps:$4 sm:$0xff]   ;;  %v7367_v1 = vld [vmem:[%s8626_s27 + $0x760] ss:$16 sps:$4 sm:$0xff]  }
  0x76   : > { %v7370_v4 = vld [vmem:[%s8626_s27 + $0x540] ss:$16 sps:$4 sm:$0xff]   ;;  %v7411_v38 = vld [vmem:[%s8626_s27 + $0xa84] ss:$16 sps:$4 sm:$0xff]  }
  0x77   : > { %5137 = vmatpush2.bf16.msra.mxu0 %v7290_v2  ;;  %v7372_v2 = vld [vmem:[%s8626_s27 + $0x544] ss:$16 sps:$4 sm:$0xff]   ;;  %v7373_v5 = vld [vmem:[%s8626_s27 + $0x740] ss:$16 sps:$4 sm:$0xff]  }
  0x78   : > { %5178 = vmatpush2.bf16.msra.mxu1 %v7291_v3  ;;  %5188 = vmatprep.subr.bf16.mxu0 %v7294_v6  ;;  %v7375_v3 = vld [vmem:[%s8626_s27 + $0x744] ss:$16 sps:$4 sm:$0xff]   ;;  %v7400_v34 = vld [vmem:[%s8626_s27 + $0x8a0] ss:$16 sps:$4 sm:$0xff]  }
  0x79   : > { %5229 = vmatprep.subr.bf16.mxu1 %v7297_v7  ;;  %v7378_v6 = vld [vmem:[%s8626_s27 + $0x524] ss:$16 sps:$4 sm:$0xff]  }
  0x7a   : > { %5139 = vmatmul.mubr.bf16.vlgmr.msra.gmra.mxu0 %v8708_v8  ;;  %v7381_v7 = vld [vmem:[%s8626_s27 + $0x724] ss:$16 sps:$4 sm:$0xff]  }
  0x7b   : > { %5180 = vmatmul.mubr.bf16.vlgmr.msra.gmra.mxu1 %v8710_v9  ;;  %5189 = vmatpush1.bf16.msra.mxu0 %v7292_v10  ;;  %v7376_v10 = vld [vmem:[%s8626_s27 + $0x520] ss:$16 sps:$4 sm:$0xff]  }
  0x7c   : > { %5230 = vmatpush1.bf16.msra.mxu1 %v7295_v11  ;;  %5190 = vmatprep.subr.bf16.mxu0 %v7300_v12  ;;  %v7379_v11 = vld [vmem:[%s8626_s27 + $0x720] ss:$16 sps:$4 sm:$0xff]   ;;  %v7384_v12 = vld [vmem:[%s8626_s27 + $0x504] ss:$16 sps:$4 sm:$0xff]  }
  0x7d   : > { %5231 = vmatprep.subr.bf16.mxu1 %v7303_v13  ;;  %5220 = vmatprep.mubr.bf16.mxu0 %v8741_v37  ;;  %v7387_v13 = vld [vmem:[%s8626_s27 + $0x704] ss:$16 sps:$4 sm:$0xff]  }
  0x7e   : > { %5261 = vmatprep.mubr.bf16.mxu1 %v8745_v40 }
  0x7f   : > { %5191 = vmatpush1.bf16.msra.mxu0 %v7298_v14  ;;  %v7382_v14 = vld [vmem:[%s8626_s27 + $0x500] ss:$16 sps:$4 sm:$0xff]  }
  0x80   : > { %5232 = vmatpush1.bf16.msra.mxu1 %v7301_v15  ;;  %5192 = vmatprep.subr.bf16.mxu0 %v7306_v16  ;;  %v7385_v15 = vld [vmem:[%s8626_s27 + $0x700] ss:$16 sps:$4 sm:$0xff]  }
  0x81   : > { %5233 = vmatprep.subr.bf16.mxu1 %v7309_v17  ;;  %v260_v16 = vld [vmem:[%s8620_s6 + $0x20] sm:$0xff]  ;;  %v262_v17 = vld [vmem:[%s8620_s6 + $0x30] sm:$0xff] }
  0x83   : > { %5193 = vmatpush1.bf16.msra.mxu0 %v7304_v18  ;;  %v7390_v18 = vld [vmem:[%s8626_s27 + $0x8e4] ss:$16 sps:$4 sm:$0xff]  }
  0x84   : > { %5234 = vmatpush1.bf16.msra.mxu1 %v7307_v19  ;;  %5194 = vmatprep.subr.bf16.mxu0 %v7312_v20  ;;  %v7393_v19 = vld [vmem:[%s8626_s27 + $0xae4] ss:$16 sps:$4 sm:$0xff]   ;;  %v8788_v20 = vpack.c.bf16 %v260_v16, %v260_v16  ;;  %v7460_v16 = vld [vmem:[%s8626_s27 + $0x960] ss:$16 sps:$4 sm:$0xff]  }
  0x85   : > { %5235 = vmatprep.subr.bf16.mxu1 %v7315_v21  ;;  %v8790_v21 = vpack.c.bf16 %v262_v17, %v262_v17  ;;  %v7463_v17 = vld [vmem:[%s8626_s27 + $0xb60] ss:$16 sps:$4 sm:$0xff]  }
  0x87   : > { %5195 = vmatpush1.bf16.msra.mxu0 %v7310_v22  ;;  %v7388_v22 = vld [vmem:[%s8626_s27 + $0x8e0] ss:$16 sps:$4 sm:$0xff]  }
  0x88   : > { %5236 = vmatpush1.bf16.msra.mxu1 %v7313_v23  ;;  %5196 = vmatprep.subr.bf16.mxu0 %v7318_v24  ;;  %v7391_v23 = vld [vmem:[%s8626_s27 + $0xae0] ss:$16 sps:$4 sm:$0xff]   ;;  %v7396_v24 = vld [vmem:[%s8626_s27 + $0x8c4] ss:$16 sps:$4 sm:$0xff]  }
  0x89   : > { %5237 = vmatprep.subr.bf16.mxu1 %v7321_v25  ;;  %v7399_v25 = vld [vmem:[%s8626_s27 + $0xac4] ss:$16 sps:$4 sm:$0xff]  }
  0x8b   : > { %5197 = vmatpush1.bf16.msra.mxu0 %v7316_v26  ;;  %v265_v26 = vld [vmem:[%s8620_s6 + $0x48] sm:$0xff] }
  0x8c   : > { %5238 = vmatpush1.bf16.msra.mxu1 %v7319_v27  ;;  %5198 = vmatprep.subr.bf16.mxu0 %v7324_v28  ;;  %v7394_v27 = vld [vmem:[%s8626_s27 + $0x8c0] ss:$16 sps:$4 sm:$0xff]  }
  0x8d   : > { %5239 = vmatprep.subr.bf16.mxu1 %v7327_v29  ;;  %v7397_v28 = vld [vmem:[%s8626_s27 + $0xac0] ss:$16 sps:$4 sm:$0xff]   ;;  %v8801_v29 = vpack.c.bf16 %v265_v26, %v265_v26 }
  0x8e   : > { %v7472_v26 = vld [vmem:[%s8626_s27 + $0x920] ss:$16 sps:$4 sm:$0xff]  }
  0x8f   : > { %5199 = vmatpush1.bf16.msra.mxu0 %v7322_v30  ;;  %v267_v30 = vld [vmem:[%s8620_s6 + $0x58] sm:$0xff] }
  0x90   : > { %5240 = vmatpush1.bf16.msra.mxu1 %v7325_v31  ;;  %5200 = vmatprep.subr.bf16.mxu0 %v7330_v32  ;;  %v7402_v31 = vld [vmem:[%s8626_s27 + $0x8a4] ss:$16 sps:$4 sm:$0xff]   ;;  %v8805_v32 = vpack.c.bf16 %v267_v30, %v267_v30 }
  0x91   : > { %5241 = vmatprep.subr.bf16.mxu1 %v7333_v33  ;;  %v7405_v33 = vld [vmem:[%s8626_s27 + $0xaa4] ss:$16 sps:$4 sm:$0xff]  }
  0x92   : > { %v7483_v30 = vld [vmem:[%s8626_s27 + $0xb04] ss:$16 sps:$4 sm:$0xff]  }
  0x93   : > { %5201 = vmatpush1.bf16.msra.mxu0 %v7328_v35  ;;  %v7403_v35 = vld [vmem:[%s8626_s27 + $0xaa0] ss:$16 sps:$4 sm:$0xff]  }
  0x94   : > { %5242 = vmatpush1.bf16.msra.mxu1 %v7331_v36  ;;  %5202 = vmatprep.subr.bf16.mxu0 %v7336_v39  ;;  %v7408_v36 = vld [vmem:[%s8626_s27 + $0x884] ss:$16 sps:$4 sm:$0xff]   ;;  %v7406_v39 = vld [vmem:[%s8626_s27 + $0x880] ss:$16 sps:$4 sm:$0xff]  }
  0x95   : > { %5243 = vmatprep.subr.bf16.mxu1 %v7339_v41  ;;  %v7409_v41 = vld [vmem:[%s8626_s27 + $0xa80] ss:$16 sps:$4 sm:$0xff]  }
  0x97   : > { %5203 = vmatpush1.bf16.msra.mxu0 %v7334_v42  ;;  %v7414_v42 = vld [vmem:[%s8626_s27 + $0x864] ss:$16 sps:$4 sm:$0xff]  }
  0x98   : > { %5244 = vmatpush1.bf16.msra.mxu1 %v7337_v43  ;;  %5204 = vmatprep.subr.bf16.mxu0 %v7342_v44  ;;  %v7417_v43 = vld [vmem:[%s8626_s27 + $0xa64] ss:$16 sps:$4 sm:$0xff]   ;;  %v7412_v44 = vld [vmem:[%s8626_s27 + $0x860] ss:$16 sps:$4 sm:$0xff]  }
  0x99   : > { %5245 = vmatprep.subr.bf16.mxu1 %v7345_v45  ;;  %v7415_v45 = vld [vmem:[%s8626_s27 + $0xa60] ss:$16 sps:$4 sm:$0xff]  }
  0x9b   : > { %5205 = vmatpush2.bf16.msra.mxu0 %v7340_v46  ;;  %v7420_v46 = vld [vmem:[%s8626_s27 + $0x844] ss:$16 sps:$4 sm:$0xff]  }
  0x9c   : > { %5246 = vmatpush2.bf16.msra.mxu1 %v7343_v47  ;;  %5206 = vmatprep.subr.bf16.mxu0 %v7348_v48  ;;  %v7423_v47 = vld [vmem:[%s8626_s27 + $0xa44] ss:$16 sps:$4 sm:$0xff]   ;;  %v7418_v48 = vld [vmem:[%s8626_s27 + $0x840] ss:$16 sps:$4 sm:$0xff]  }
  0x9d   : > { %5247 = vmatprep.subr.bf16.mxu1 %v7351_v50  ;;  %v7421_v50 = vld [vmem:[%s8626_s27 + $0xa40] ss:$16 sps:$4 sm:$0xff]  }
  0x9f   : > { %5207 = vmatpush2.bf16.msra.mxu0 %v7346_v51  ;;  %v7426_v51 = vld [vmem:[%s8626_s27 + $0x824] ss:$16 sps:$4 sm:$0xff]  }
  0xa0   : > { %5248 = vmatpush2.bf16.msra.mxu1 %v7349_v53  ;;  %5208 = vmatprep.subr.bf16.mxu0 %v7354_v54  ;;  %v7429_v53 = vld [vmem:[%s8626_s27 + $0xa24] ss:$16 sps:$4 sm:$0xff]   ;;  %v7424_v54 = vld [vmem:[%s8626_s27 + $0x820] ss:$16 sps:$4 sm:$0xff]  }
  0xa1   : > { %5249 = vmatprep.subr.bf16.mxu1 %v7357_v55  ;;  %v7427_v55 = vld [vmem:[%s8626_s27 + $0xa20] ss:$16 sps:$4 sm:$0xff]  }
  0xa3   : > { %5209 = vmatpush2.bf16.msra.mxu0 %v7352_v56  ;;  %v7432_v56 = vld [vmem:[%s8626_s27 + $0x804] ss:$16 sps:$4 sm:$0xff]  }
  0xa4   : > { %5250 = vmatpush2.bf16.msra.mxu1 %v7355_v57  ;;  %5210 = vmatprep.subr.bf16.mxu0 %v7360_v58  ;;  %v7435_v57 = vld [vmem:[%s8626_s27 + $0xa04] ss:$16 sps:$4 sm:$0xff]   ;;  %v7430_v58 = vld [vmem:[%s8626_s27 + $0x800] ss:$16 sps:$4 sm:$0xff]  }
  0xa5   : > { %5251 = vmatprep.subr.bf16.mxu1 %v7363_v59  ;;  %v7433_v59 = vld [vmem:[%s8626_s27 + $0xa00] ss:$16 sps:$4 sm:$0xff]  }
  0xa7   : > { %5211 = vmatpush2.bf16.msra.mxu0 %v7358_v60  ;;  %v7438_v60 = vld [vmem:[%s8626_s27 + $0x9e4] ss:$16 sps:$4 sm:$0xff]  }
  0xa8   : > { %5252 = vmatpush2.bf16.msra.mxu1 %v7361_v61  ;;  %5212 = vmatprep.subr.bf16.mxu0 %v7366_v62  ;;  %v7441_v61 = vld [vmem:[%s8626_s27 + $0xbe4] ss:$16 sps:$4 sm:$0xff]   ;;  %v7436_v62 = vld [vmem:[%s8626_s27 + $0x9e0] ss:$16 sps:$4 sm:$0xff]  }
  0xa9   : > { %5253 = vmatprep.subr.bf16.mxu1 %v7369_v63  ;;  %v7439_v63 = vld [vmem:[%s8626_s27 + $0xbe0] ss:$16 sps:$4 sm:$0xff]  }
  0xab   : > { %5213 = vmatpush2.bf16.msra.mxu0 %v7364_v0  ;;  %v7444_v0 = vld [vmem:[%s8626_s27 + $0x9c4] ss:$16 sps:$4 sm:$0xff]  }
  0xac   : > { %5254 = vmatpush2.bf16.msra.mxu1 %v7367_v1  ;;  %5214 = vmatprep.subr.bf16.mxu0 %v7372_v2  ;;  %v7447_v1 = vld [vmem:[%s8626_s27 + $0xbc4] ss:$16 sps:$4 sm:$0xff]   ;;  %v7442_v2 = vld [vmem:[%s8626_s27 + $0x9c0] ss:$16 sps:$4 sm:$0xff]  }
  0xad   : > { %5255 = vmatprep.subr.bf16.mxu1 %v7375_v3  ;;  %v7445_v3 = vld [vmem:[%s8626_s27 + $0xbc0] ss:$16 sps:$4 sm:$0xff]  }
  0xaf   : > { %5215 = vmatpush2.bf16.msra.mxu0 %v7370_v4  ;;  %v7450_v4 = vld [vmem:[%s8626_s27 + $0x9a4] ss:$16 sps:$4 sm:$0xff]  }
  0xb0   : > { %5256 = vmatpush2.bf16.msra.mxu1 %v7373_v5  ;;  %5216 = vmatprep.subr.bf16.mxu0 %v7378_v6  ;;  %v7453_v5 = vld [vmem:[%s8626_s27 + $0xba4] ss:$16 sps:$4 sm:$0xff]   ;;  %v7448_v6 = vld [vmem:[%s8626_s27 + $0x9a0] ss:$16 sps:$4 sm:$0xff]  }
  0xb1   : > { %5257 = vmatprep.subr.bf16.mxu1 %v7381_v7  ;;  %v7451_v7 = vld [vmem:[%s8626_s27 + $0xba0] ss:$16 sps:$4 sm:$0xff]  }
  0xb3   : > { %5217 = vmatpush2.bf16.msra.mxu0 %v7376_v10  ;;  %v7456_v10 = vld [vmem:[%s8626_s27 + $0x984] ss:$16 sps:$4 sm:$0xff]  }
  0xb4   : > { %5258 = vmatpush2.bf16.msra.mxu1 %v7379_v11  ;;  %5218 = vmatprep.subr.bf16.mxu0 %v7384_v12  ;;  %v7459_v11 = vld [vmem:[%s8626_s27 + $0xb84] ss:$16 sps:$4 sm:$0xff]   ;;  %v7454_v12 = vld [vmem:[%s8626_s27 + $0x980] ss:$16 sps:$4 sm:$0xff]  }
  0xb5   : > { %5259 = vmatprep.subr.bf16.mxu1 %v7387_v13  ;;  %v7457_v13 = vld [vmem:[%s8626_s27 + $0xb80] ss:$16 sps:$4 sm:$0xff]  }
  0xb7   : > { %5219 = vmatpush2.bf16.msra.mxu0 %v7382_v14  ;;  %v7462_v14 = vld [vmem:[%s8626_s27 + $0x964] ss:$16 sps:$4 sm:$0xff]  }
  0xb8   : > { %5260 = vmatpush2.bf16.msra.mxu1 %v7385_v15  ;;  %5270 = vmatprep.subr.bf16.mxu0 %v7390_v18  ;;  %v7465_v15 = vld [vmem:[%s8626_s27 + $0xb64] ss:$16 sps:$4 sm:$0xff]  }
  0xb9   : > { %5311 = vmatprep.subr.bf16.mxu1 %v7393_v19  ;;  %v7468_v18 = vld [vmem:[%s8626_s27 + $0x944] ss:$16 sps:$4 sm:$0xff]  }
  0xba   : > { %5221 = vmatmul.mubr.bf16.vlgmr.msra.gmra.mxu0 %v8788_v20  ;;  %v7471_v19 = vld [vmem:[%s8626_s27 + $0xb44] ss:$16 sps:$4 sm:$0xff]  }
  0xbb   : > { %5262 = vmatmul.mubr.bf16.vlgmr.msra.gmra.mxu1 %v8790_v21  ;;  %5271 = vmatpush1.bf16.msra.mxu0 %v7388_v22  ;;  %v7466_v22 = vld [vmem:[%s8626_s27 + $0x940] ss:$16 sps:$4 sm:$0xff]  }
  0xbc   : > { %5312 = vmatpush1.bf16.msra.mxu1 %v7391_v23  ;;  %5272 = vmatprep.subr.bf16.mxu0 %v7396_v24  ;;  %v7469_v23 = vld [vmem:[%s8626_s27 + $0xb40] ss:$16 sps:$4 sm:$0xff]   ;;  %v7474_v24 = vld [vmem:[%s8626_s27 + $0x924] ss:$16 sps:$4 sm:$0xff]  }
  0xbd   : > { %5313 = vmatprep.subr.bf16.mxu1 %v7399_v25  ;;  %5302 = vmatprep.mubr.bf16.mxu0 %v8801_v29  ;;  %v7477_v25 = vld [vmem:[%s8626_s27 + $0xb24] ss:$16 sps:$4 sm:$0xff]  }
  0xbe   : > { %5343 = vmatprep.mubr.bf16.mxu1 %v8805_v32 }
  0xbf   : > { %5273 = vmatpush1.bf16.msra.mxu0 %v7394_v27  ;;  %v7475_v27 = vld [vmem:[%s8626_s27 + $0xb20] ss:$16 sps:$4 sm:$0xff]  }
  0xc0   : > { %5314 = vmatpush1.bf16.msra.mxu1 %v7397_v28  ;;  %5274 = vmatprep.subr.bf16.mxu0 %v7402_v31  ;;  %v7480_v28 = vld [vmem:[%s8626_s27 + $0x904] ss:$16 sps:$4 sm:$0xff]   ;;  %v7478_v31 = vld [vmem:[%s8626_s27 + $0x900] ss:$16 sps:$4 sm:$0xff]  }
  0xc1   : > { %5315 = vmatprep.subr.bf16.mxu1 %v7405_v33  ;;  %v7481_v33 = vld [vmem:[%s8626_s27 + $0xb00] ss:$16 sps:$4 sm:$0xff]  }
  0xc3   : > { %5275 = vmatpush1.bf16.msra.mxu0 %v7400_v34  ;;  %v264_v34 = vld [vmem:[%s8620_s6 + $0x40] sm:$0xff] }
  0xc4   : > { %5316 = vmatpush1.bf16.msra.mxu1 %v7403_v35  ;;  %5276 = vmatprep.subr.bf16.mxu0 %v7408_v36  ;;  %v266_v35 = vld [vmem:[%s8620_s6 + $0x50] sm:$0xff] }
  0xc5   : > { %5317 = vmatprep.subr.bf16.mxu1 %v7411_v38  ;;  %v7486_v36 = vld [vmem:[%s8626_s27 + $0xce4] ss:$16 sps:$4 sm:$0xff]  }
  0xc6   : > { %v7489_v38 = vld [vmem:[%s8626_s27 + $0xee4] ss:$16 sps:$4 sm:$0xff]  }
  0xc7   : > { %5277 = vmatpush1.bf16.msra.mxu0 %v7406_v39  ;;  %v7484_v39 = vld [vmem:[%s8626_s27 + $0xce0] ss:$16 sps:$4 sm:$0xff]  }
  0xc8   : > { %5318 = vmatpush1.bf16.msra.mxu1 %v7409_v41  ;;  %5278 = vmatprep.subr.bf16.mxu0 %v7414_v42  ;;  %v7487_v41 = vld [vmem:[%s8626_s27 + $0xee0] ss:$16 sps:$4 sm:$0xff]   ;;  %v8870_v42 = vpack.c.bf16 %v264_v34, %v264_v34 }
  0xc9   : > { %5319 = vmatprep.subr.bf16.mxu1 %v7417_v43  ;;  %v8872_v43 = vpack.c.bf16 %v266_v35, %v266_v35  ;;  %v7550_v34 = vld [vmem:[%s8626_s27 + $0xd80] ss:$16 sps:$4 sm:$0xff]  }
  0xca   : > { %v7553_v35 = vld [vmem:[%s8626_s27 + $0xf80] ss:$16 sps:$4 sm:$0xff]  }
  0xcb   : > { %5279 = vmatpush1.bf16.msra.mxu0 %v7412_v44  ;;  %v269_v44 = vld [vmem:[%s8620_s6 + $0x68] sm:$0xff] }
  0xcc   : > { %5320 = vmatpush1.bf16.msra.mxu1 %v7415_v45  ;;  %5280 = vmatprep.subr.bf16.mxu0 %v7420_v46  ;;  %v271_v45 = vld [vmem:[%s8620_s6 + $0x78] sm:$0xff] }
  0xcd   : > { %5321 = vmatprep.subr.bf16.mxu1 %v7423_v47  ;;  %v7492_v46 = vld [vmem:[%s8626_s27 + $0xcc4] ss:$16 sps:$4 sm:$0xff]  }
  0xce   : > { %v7495_v47 = vld [vmem:[%s8626_s27 + $0xec4] ss:$16 sps:$4 sm:$0xff]  }
  0xcf   : > { %5281 = vmatpush1.bf16.msra.mxu0 %v7418_v48  ;;  %v8878_v48 = vpack.c.bf16 %v269_v44, %v269_v44  ;;  %v7564_v44 = vld [vmem:[%s8626_s27 + $0xd44] ss:$16 sps:$4 sm:$0xff]  }
  0xd0   : > { %5322 = vmatpush1.bf16.msra.mxu1 %v7421_v50  ;;  %5282 = vmatprep.subr.bf16.mxu0 %v7426_v51  ;;  %v8880_v50 = vpack.c.bf16 %v271_v45, %v271_v45  ;;  %v7490_v51 = vld [vmem:[%s8626_s27 + $0xcc0] ss:$16 sps:$4 sm:$0xff]   ;;  %v7567_v45 = vld [vmem:[%s8626_s27 + $0xf44] ss:$16 sps:$4 sm:$0xff]  }
  0xd1   : > { %5323 = vmatprep.subr.bf16.mxu1 %v7429_v53  ;;  %v7493_v53 = vld [vmem:[%s8626_s27 + $0xec0] ss:$16 sps:$4 sm:$0xff]  }
  0xd3   : > { %5283 = vmatpush1.bf16.msra.mxu0 %v7424_v54  ;;  %v7498_v54 = vld [vmem:[%s8626_s27 + $0xca4] ss:$16 sps:$4 sm:$0xff]  }
  0xd4   : > { %5324 = vmatpush1.bf16.msra.mxu1 %v7427_v55  ;;  %5284 = vmatprep.subr.bf16.mxu0 %v7432_v56  ;;  %v7501_v55 = vld [vmem:[%s8626_s27 + $0xea4] ss:$16 sps:$4 sm:$0xff]   ;;  %v7496_v56 = vld [vmem:[%s8626_s27 + $0xca0] ss:$16 sps:$4 sm:$0xff]  }
  0xd5   : > { %5325 = vmatprep.subr.bf16.mxu1 %v7435_v57  ;;  %v7499_v57 = vld [vmem:[%s8626_s27 + $0xea0] ss:$16 sps:$4 sm:$0xff]  }
  0xd7   : > { %5285 = vmatpush1.bf16.msra.mxu0 %v7430_v58  ;;  %v7504_v58 = vld [vmem:[%s8626_s27 + $0xc84] ss:$16 sps:$4 sm:$0xff]  }
  0xd8   : > { %5326 = vmatpush1.bf16.msra.mxu1 %v7433_v59  ;;  %5286 = vmatprep.subr.bf16.mxu0 %v7438_v60  ;;  %v7507_v59 = vld [vmem:[%s8626_s27 + $0xe84] ss:$16 sps:$4 sm:$0xff]   ;;  %v7502_v60 = vld [vmem:[%s8626_s27 + $0xc80] ss:$16 sps:$4 sm:$0xff]  }
  0xd9   : > { %5327 = vmatprep.subr.bf16.mxu1 %v7441_v61  ;;  %v7505_v61 = vld [vmem:[%s8626_s27 + $0xe80] ss:$16 sps:$4 sm:$0xff]  }
  0xdb   : > { %5287 = vmatpush2.bf16.msra.mxu0 %v7436_v62  ;;  %v7510_v62 = vld [vmem:[%s8626_s27 + $0xc64] ss:$16 sps:$4 sm:$0xff]  }
  0xdc   : > { %5328 = vmatpush2.bf16.msra.mxu1 %v7439_v63  ;;  %5288 = vmatprep.subr.bf16.mxu0 %v7444_v0  ;;  %v7513_v63 = vld [vmem:[%s8626_s27 + $0xe64] ss:$16 sps:$4 sm:$0xff]   ;;  %v7508_v0 = vld [vmem:[%s8626_s27 + $0xc60] ss:$16 sps:$4 sm:$0xff]  }
  0xdd   : > { %5329 = vmatprep.subr.bf16.mxu1 %v7447_v1  ;;  %v7511_v1 = vld [vmem:[%s8626_s27 + $0xe60] ss:$16 sps:$4 sm:$0xff]  }
  0xdf   : > { %5289 = vmatpush2.bf16.msra.mxu0 %v7442_v2  ;;  %v7516_v2 = vld [vmem:[%s8626_s27 + $0xc44] ss:$16 sps:$4 sm:$0xff]  }
  0xe0   : > { %5330 = vmatpush2.bf16.msra.mxu1 %v7445_v3  ;;  %5290 = vmatprep.subr.bf16.mxu0 %v7450_v4  ;;  %v7519_v3 = vld [vmem:[%s8626_s27 + $0xe44] ss:$16 sps:$4 sm:$0xff]   ;;  %v7514_v4 = vld [vmem:[%s8626_s27 + $0xc40] ss:$16 sps:$4 sm:$0xff]  }
  0xe1   : > { %5331 = vmatprep.subr.bf16.mxu1 %v7453_v5  ;;  %v7517_v5 = vld [vmem:[%s8626_s27 + $0xe40] ss:$16 sps:$4 sm:$0xff]  }
  0xe3   : > { %5291 = vmatpush2.bf16.msra.mxu0 %v7448_v6  ;;  %v7522_v6 = vld [vmem:[%s8626_s27 + $0xc24] ss:$16 sps:$4 sm:$0xff]  }
  0xe4   : > { %5332 = vmatpush2.bf16.msra.mxu1 %v7451_v7  ;;  %5292 = vmatprep.subr.bf16.mxu0 %v7456_v10  ;;  %v7525_v7 = vld [vmem:[%s8626_s27 + $0xe24] ss:$16 sps:$4 sm:$0xff]   ;;  %v7520_v10 = vld [vmem:[%s8626_s27 + $0xc20] ss:$16 sps:$4 sm:$0xff]  }
  0xe5   : > { %5333 = vmatprep.subr.bf16.mxu1 %v7459_v11  ;;  %v7523_v11 = vld [vmem:[%s8626_s27 + $0xe20] ss:$16 sps:$4 sm:$0xff]  }
  0xe7   : > { %5293 = vmatpush2.bf16.msra.mxu0 %v7454_v12  ;;  %v7528_v12 = vld [vmem:[%s8626_s27 + $0xc04] ss:$16 sps:$4 sm:$0xff]  }
  0xe8   : > { %5334 = vmatpush2.bf16.msra.mxu1 %v7457_v13  ;;  %5294 = vmatprep.subr.bf16.mxu0 %v7462_v14  ;;  %v7531_v13 = vld [vmem:[%s8626_s27 + $0xe04] ss:$16 sps:$4 sm:$0xff]   ;;  %v7526_v14 = vld [vmem:[%s8626_s27 + $0xc00] ss:$16 sps:$4 sm:$0xff]  }
  0xe9   : > { %5335 = vmatprep.subr.bf16.mxu1 %v7465_v15  ;;  %v7529_v15 = vld [vmem:[%s8626_s27 + $0xe00] ss:$16 sps:$4 sm:$0xff]  }
  0xeb   : > { %5295 = vmatpush2.bf16.msra.mxu0 %v7460_v16  ;;  %v7534_v16 = vld [vmem:[%s8626_s27 + $0xde4] ss:$16 sps:$4 sm:$0xff]  }
  0xec   : > { %5336 = vmatpush2.bf16.msra.mxu1 %v7463_v17  ;;  %5296 = vmatprep.subr.bf16.mxu0 %v7468_v18  ;;  %v7537_v17 = vld [vmem:[%s8626_s27 + $0xfe4] ss:$16 sps:$4 sm:$0xff]   ;;  %v7532_v18 = vld [vmem:[%s8626_s27 + $0xde0] ss:$16 sps:$4 sm:$0xff]  }
  0xed   : > { %5337 = vmatprep.subr.bf16.mxu1 %v7471_v19  ;;  %v7535_v19 = vld [vmem:[%s8626_s27 + $0xfe0] ss:$16 sps:$4 sm:$0xff]  }
  0xef   : > { %5297 = vmatpush2.bf16.msra.mxu0 %v7466_v22  ;;  %v7540_v22 = vld [vmem:[%s8626_s27 + $0xdc4] ss:$16 sps:$4 sm:$0xff]  }
  0xf0   : > { %5338 = vmatpush2.bf16.msra.mxu1 %v7469_v23  ;;  %5298 = vmatprep.subr.bf16.mxu0 %v7474_v24  ;;  %v7543_v23 = vld [vmem:[%s8626_s27 + $0xfc4] ss:$16 sps:$4 sm:$0xff]   ;;  %v7538_v24 = vld [vmem:[%s8626_s27 + $0xdc0] ss:$16 sps:$4 sm:$0xff]  }
  0xf1   : > { %5339 = vmatprep.subr.bf16.mxu1 %v7477_v25  ;;  %v7541_v25 = vld [vmem:[%s8626_s27 + $0xfc0] ss:$16 sps:$4 sm:$0xff]  }
  0xf3   : > { %5299 = vmatpush2.bf16.msra.mxu0 %v7472_v26  ;;  %v7546_v26 = vld [vmem:[%s8626_s27 + $0xda4] ss:$16 sps:$4 sm:$0xff]  }
  0xf4   : > { %5340 = vmatpush2.bf16.msra.mxu1 %v7475_v27  ;;  %5300 = vmatprep.subr.bf16.mxu0 %v7480_v28  ;;  %v7549_v27 = vld [vmem:[%s8626_s27 + $0xfa4] ss:$16 sps:$4 sm:$0xff]   ;;  %v7544_v28 = vld [vmem:[%s8626_s27 + $0xda0] ss:$16 sps:$4 sm:$0xff]  }
  0xf5   : > { %5341 = vmatprep.subr.bf16.mxu1 %v7483_v30  ;;  %v7547_v30 = vld [vmem:[%s8626_s27 + $0xfa0] ss:$16 sps:$4 sm:$0xff]  }
  0xf7   : > { %5301 = vmatpush2.bf16.msra.mxu0 %v7478_v31  ;;  %v7552_v31 = vld [vmem:[%s8626_s27 + $0xd84] ss:$16 sps:$4 sm:$0xff]  }
  0xf8   : > { %5342 = vmatpush2.bf16.msra.mxu1 %v7481_v33  ;;  %5352 = vmatprep.subr.bf16.mxu0 %v7486_v36  ;;  %v7555_v33 = vld [vmem:[%s8626_s27 + $0xf84] ss:$16 sps:$4 sm:$0xff]  }
  0xf9   : > { %5393 = vmatprep.subr.bf16.mxu1 %v7489_v38  ;;  %v7558_v36 = vld [vmem:[%s8626_s27 + $0xd64] ss:$16 sps:$4 sm:$0xff]  }
  0xfa   : > { %5303 = vmatmul.mubr.bf16.vlgmr.msra.gmra.mxu0 %v8870_v42  ;;  %v7561_v38 = vld [vmem:[%s8626_s27 + $0xf64] ss:$16 sps:$4 sm:$0xff]  }
  0xfb   : > { %5344 = vmatmul.mubr.bf16.vlgmr.msra.gmra.mxu1 %v8872_v43  ;;  %5353 = vmatpush1.bf16.msra.mxu0 %v7484_v39  ;;  %v7556_v39 = vld [vmem:[%s8626_s27 + $0xd60] ss:$16 sps:$4 sm:$0xff]  }
  0xfc   : > { %5394 = vmatpush1.bf16.msra.mxu1 %v7487_v41  ;;  %5354 = vmatprep.subr.bf16.mxu0 %v7492_v46  ;;  %v7559_v41 = vld [vmem:[%s8626_s27 + $0xf60] ss:$16 sps:$4 sm:$0xff]  }
  0xfd   : > { %5395 = vmatprep.subr.bf16.mxu1 %v7495_v47  ;;  %5384 = vmatprep.mubr.bf16.mxu0 %v8878_v48  ;;  %v7562_v46 = vld [vmem:[%s8626_s27 + $0xd40] ss:$16 sps:$4 sm:$0xff]  }
  0xfe   : > { %5425 = vmatprep.mubr.bf16.mxu1 %v8880_v50  ;;  %v7565_v47 = vld [vmem:[%s8626_s27 + $0xf40] ss:$16 sps:$4 sm:$0xff]  }
  0xff   : > { %5355 = vmatpush1.bf16.msra.mxu0 %v7490_v51  ;;  %v7570_v51 = vld [vmem:[%s8626_s27 + $0xd24] ss:$16 sps:$4 sm:$0xff]  }
 0x100   : > { %5396 = vmatpush1.bf16.msra.mxu1 %v7493_v53  ;;  %5356 = vmatprep.subr.bf16.mxu0 %v7498_v54  ;;  %v7573_v53 = vld [vmem:[%s8626_s27 + $0xf24] ss:$16 sps:$4 sm:$0xff]   ;;  %v7568_v54 = vld [vmem:[%s8626_s27 + $0xd20] ss:$16 sps:$4 sm:$0xff]  }
 0x101   : > { %5397 = vmatprep.subr.bf16.mxu1 %v7501_v55  ;;  %v7571_v55 = vld [vmem:[%s8626_s27 + $0xf20] ss:$16 sps:$4 sm:$0xff]  }
 0x103   : > { %5357 = vmatpush1.bf16.msra.mxu0 %v7496_v56  ;;  %v7576_v56 = vld [vmem:[%s8626_s27 + $0xd04] ss:$16 sps:$4 sm:$0xff]  }
 0x104   : > { %5398 = vmatpush1.bf16.msra.mxu1 %v7499_v57  ;;  %5358 = vmatprep.subr.bf16.mxu0 %v7504_v58  ;;  %v7579_v57 = vld [vmem:[%s8626_s27 + $0xf04] ss:$16 sps:$4 sm:$0xff]   ;;  %v7574_v58 = vld [vmem:[%s8626_s27 + $0xd00] ss:$16 sps:$4 sm:$0xff]  }
 0x105   : > { %5399 = vmatprep.subr.bf16.mxu1 %v7507_v59  ;;  %v7577_v59 = vld [vmem:[%s8626_s27 + $0xf00] ss:$16 sps:$4 sm:$0xff]  }
 0x107   : > { %5359 = vmatpush1.bf16.msra.mxu0 %v7502_v60  ;;  %v268_v60 = vld [vmem:[%s8620_s6 + $0x60] sm:$0xff] }
 0x108   : > { %5400 = vmatpush1.bf16.msra.mxu1 %v7505_v61  ;;  %5360 = vmatprep.subr.bf16.mxu0 %v7510_v62  ;;  %v270_v61 = vld [vmem:[%s8620_s6 + $0x70] sm:$0xff] }
 0x109   : > { %5401 = vmatprep.subr.bf16.mxu1 %v7513_v63  ;;  %v7582_v62 = vld [vmem:[%s8626_s27 + $0x10e4] ss:$16 sps:$4 sm:$0xff]  }
 0x10a   : > { %v7585_v63 = vld [vmem:[%s8626_s27 + $0x12e4] ss:$16 sps:$4 sm:$0xff]  }
 0x10b   : > { %5361 = vmatpush1.bf16.msra.mxu0 %v7508_v0  ;;  %v7580_v0 = vld [vmem:[%s8626_s27 + $0x10e0] ss:$16 sps:$4 sm:$0xff]  }
 0x10c   : > { %5402 = vmatpush1.bf16.msra.mxu1 %v7511_v1  ;;  %5362 = vmatprep.subr.bf16.mxu0 %v7516_v2  ;;  %v7583_v1 = vld [vmem:[%s8626_s27 + $0x12e0] ss:$16 sps:$4 sm:$0xff]   ;;  %v8950_v2 = vpack.c.bf16 %v268_v60, %v268_v60  ;;  %v7630_v60 = vld [vmem:[%s8626_s27 + $0x11e4] ss:$16 sps:$4 sm:$0xff]  }
 0x10d   : > { %5403 = vmatprep.subr.bf16.mxu1 %v7519_v3  ;;  %v8952_v3 = vpack.c.bf16 %v270_v61, %v270_v61  ;;  %v7633_v61 = vld [vmem:[%s8626_s27 + $0x13e4] ss:$16 sps:$4 sm:$0xff]  }
 0x10f   : > { %5363 = vmatpush1.bf16.msra.mxu0 %v7514_v4  ;;  %v273_v4 = vld [vmem:[%s8620_s6 + $0x88] sm:$0xff] }
 0x110   : > { %5404 = vmatpush1.bf16.msra.mxu1 %v7517_v5  ;;  %5364 = vmatprep.subr.bf16.mxu0 %v7522_v6  ;;  %v275_v5 = vld [vmem:[%s8620_s6 + $0x98] sm:$0xff] }
 0x111   : > { %5405 = vmatprep.subr.bf16.mxu1 %v7525_v7  ;;  %v7588_v6 = vld [vmem:[%s8626_s27 + $0x10c4] ss:$16 sps:$4 sm:$0xff]  }
 0x112   : > { %v7591_v7 = vld [vmem:[%s8626_s27 + $0x12c4] ss:$16 sps:$4 sm:$0xff]  }
 0x113   : > { %5365 = vmatpush1.bf16.msra.mxu0 %v7520_v10  ;;  %v8958_v10 = vpack.c.bf16 %v273_v4, %v273_v4  ;;  %v7634_v4 = vld [vmem:[%s8626_s27 + $0x11c0] ss:$16 sps:$4 sm:$0xff]  }
 0x114   : > { %5406 = vmatpush1.bf16.msra.mxu1 %v7523_v11  ;;  %5366 = vmatprep.subr.bf16.mxu0 %v7528_v12  ;;  %v8960_v11 = vpack.c.bf16 %v275_v5, %v275_v5  ;;  %v7637_v5 = vld [vmem:[%s8626_s27 + $0x13c0] ss:$16 sps:$4 sm:$0xff]  }
 0x115   : > { %5407 = vmatprep.subr.bf16.mxu1 %v7531_v13 }
 0x117   : > { %5367 = vmatpush1.bf16.msra.mxu0 %v7526_v14  ;;  %v7586_v14 = vld [vmem:[%s8626_s27 + $0x10c0] ss:$16 sps:$4 sm:$0xff]  }
 0x118   : > { %5408 = vmatpush1.bf16.msra.mxu1 %v7529_v15  ;;  %5368 = vmatprep.subr.bf16.mxu0 %v7534_v16  ;;  %v7589_v15 = vld [vmem:[%s8626_s27 + $0x12c0] ss:$16 sps:$4 sm:$0xff]  }
 0x119   : > { %5409 = vmatprep.subr.bf16.mxu1 %v7537_v17  ;;  %v7594_v17 = vld [vmem:[%s8626_s27 + $0x10a4] ss:$16 sps:$4 sm:$0xff]  }
 0x11b   : > { %5369 = vmatpush2.bf16.msra.mxu0 %v7532_v18 }
 0x11c   : > { %5410 = vmatpush2.bf16.msra.mxu1 %v7535_v19  ;;  %5370 = vmatprep.subr.bf16.mxu0 %v7540_v22  ;;  %v7597_v22 = vld [vmem:[%s8626_s27 + $0x12a4] ss:$16 sps:$4 sm:$0xff]  }
 0x11d   : > { %5411 = vmatprep.subr.bf16.mxu1 %v7543_v23 }
 0x11f   : > { %5371 = vmatpush2.bf16.msra.mxu0 %v7538_v24 }
 0x120   : > { %5412 = vmatpush2.bf16.msra.mxu1 %v7541_v25  ;;  %5372 = vmatprep.subr.bf16.mxu0 %v7546_v26  ;;  %v7592_v26 = vld [vmem:[%s8626_s27 + $0x10a0] ss:$16 sps:$4 sm:$0xff]  }
 0x121   : > { %5413 = vmatprep.subr.bf16.mxu1 %v7549_v27  ;;  %v7595_v27 = vld [vmem:[%s8626_s27 + $0x12a0] ss:$16 sps:$4 sm:$0xff]  }
 0x123   : > { %5373 = vmatpush2.bf16.msra.mxu0 %v7544_v28  ;;  %v7600_v28 = vld [vmem:[%s8626_s27 + $0x1084] ss:$16 sps:$4 sm:$0xff]  }
 0x124   : > { %5414 = vmatpush2.bf16.msra.mxu1 %v7547_v30  ;;  %5374 = vmatprep.subr.bf16.mxu0 %v7552_v31 }
 0x125   : > { %5415 = vmatprep.subr.bf16.mxu1 %v7555_v33  ;;  %v7603_v33 = vld [vmem:[%s8626_s27 + $0x1284] ss:$16 sps:$4 sm:$0xff]  }
 0x127   : > { %5375 = vmatpush2.bf16.msra.mxu0 %v7550_v34  ;;  %v7598_v34 = vld [vmem:[%s8626_s27 + $0x1080] ss:$16 sps:$4 sm:$0xff]  }
 0x128   : > { %5416 = vmatpush2.bf16.msra.mxu1 %v7553_v35  ;;  %5376 = vmatprep.subr.bf16.mxu0 %v7558_v36  ;;  %v7601_v35 = vld [vmem:[%s8626_s27 + $0x1280] ss:$16 sps:$4 sm:$0xff]   ;;  %v7606_v36 = vld [vmem:[%s8626_s27 + $0x1064] ss:$16 sps:$4 sm:$0xff]  }
 0x129   : > { %5417 = vmatprep.subr.bf16.mxu1 %v7561_v38  ;;  %v7609_v38 = vld [vmem:[%s8626_s27 + $0x1264] ss:$16 sps:$4 sm:$0xff]  }
 0x12b   : > { %5377 = vmatpush2.bf16.msra.mxu0 %v7556_v39  ;;  %v7604_v39 = vld [vmem:[%s8626_s27 + $0x1060] ss:$16 sps:$4 sm:$0xff]  }
 0x12c   : > { %5418 = vmatpush2.bf16.msra.mxu1 %v7559_v41  ;;  %5378 = vmatprep.subr.bf16.mxu0 %v7564_v44  ;;  %v7607_v41 = vld [vmem:[%s8626_s27 + $0x1260] ss:$16 sps:$4 sm:$0xff]   ;;  %v7612_v44 = vld [vmem:[%s8626_s27 + $0x1044] ss:$16 sps:$4 sm:$0xff]  }
 0x12d   : > { %5419 = vmatprep.subr.bf16.mxu1 %v7567_v45  ;;  %v7615_v45 = vld [vmem:[%s8626_s27 + $0x1244] ss:$16 sps:$4 sm:$0xff]  }
 0x12f   : > { %5379 = vmatpush2.bf16.msra.mxu0 %v7562_v46  ;;  %v7610_v46 = vld [vmem:[%s8626_s27 + $0x1040] ss:$16 sps:$4 sm:$0xff]  }
 0x130   : > { %5420 = vmatpush2.bf16.msra.mxu1 %v7565_v47  ;;  %5380 = vmatprep.subr.bf16.mxu0 %v7570_v51  ;;  %v7613_v47 = vld [vmem:[%s8626_s27 + $0x1240] ss:$16 sps:$4 sm:$0xff]   ;;  %v7618_v51 = vld [vmem:[%s8626_s27 + $0x1024] ss:$16 sps:$4 sm:$0xff]  }
 0x131   : > { %5421 = vmatprep.subr.bf16.mxu1 %v7573_v53  ;;  %v7621_v53 = vld [vmem:[%s8626_s27 + $0x1224] ss:$16 sps:$4 sm:$0xff]  }
 0x133   : > { %5381 = vmatpush2.bf16.msra.mxu0 %v7568_v54  ;;  %v7616_v54 = vld [vmem:[%s8626_s27 + $0x1020] ss:$16 sps:$4 sm:$0xff]  }
 0x134   : > { %5422 = vmatpush2.bf16.msra.mxu1 %v7571_v55  ;;  %5382 = vmatprep.subr.bf16.mxu0 %v7576_v56  ;;  %v7619_v55 = vld [vmem:[%s8626_s27 + $0x1220] ss:$16 sps:$4 sm:$0xff]   ;;  %v7624_v56 = vld [vmem:[%s8626_s27 + $0x1004] ss:$16 sps:$4 sm:$0xff]  }
 0x135   : > { %5423 = vmatprep.subr.bf16.mxu1 %v7579_v57  ;;  %v7627_v57 = vld [vmem:[%s8626_s27 + $0x1204] ss:$16 sps:$4 sm:$0xff]  }
 0x137   : > { %5383 = vmatpush2.bf16.msra.mxu0 %v7574_v58  ;;  %v7622_v58 = vld [vmem:[%s8626_s27 + $0x1000] ss:$16 sps:$4 sm:$0xff]  }
 0x138   : > { %5424 = vmatpush2.bf16.msra.mxu1 %v7577_v59  ;;  %5434 = vmatprep.subr.bf16.mxu0 %v7582_v62  ;;  %v7625_v59 = vld [vmem:[%s8626_s27 + $0x1200] ss:$16 sps:$4 sm:$0xff]  }
 0x139   : > { %5475 = vmatprep.subr.bf16.mxu1 %v7585_v63  ;;  %v7628_v62 = vld [vmem:[%s8626_s27 + $0x11e0] ss:$16 sps:$4 sm:$0xff]  }
 0x13a   : > { %v5140_v12 = vpop.f32.mrf.mxu0  ;;  %5385 = vmatmul.mubr.bf16.vlgmr.msra.gmra.mxu0 %v8950_v2  ;;  %v7631_v63 = vld [vmem:[%s8626_s27 + $0x13e0] ss:$16 sps:$4 sm:$0xff]  }
 0x13b   : > { %v5181_v13 = vpop.f32.mrf.mxu1  ;;  %5426 = vmatmul.mubr.bf16.vlgmr.msra.gmra.mxu1 %v8952_v3  ;;  %5435 = vmatpush1.bf16.msra.mxu0 %v7580_v0  ;;  %v7636_v0 = vld [vmem:[%s8626_s27 + $0x11c4] ss:$16 sps:$4 sm:$0xff]  }
 0x13c   : > { %v8966_v16 = vadd.f32 %v5181_v13, %v5140_v12  ;;  %5476 = vmatpush1.bf16.msra.mxu1 %v7583_v1  ;;  %v5142_v18 = vpop.f32.mrf.mxu0  ;;  %5436 = vmatprep.subr.bf16.mxu0 %v7588_v6  ;;  %v7639_v1 = vld [vmem:[%s8626_s27 + $0x13c4] ss:$16 sps:$4 sm:$0xff]   ;;  %v7640_v12 = vld [vmem:[%s8626_s27 + $0x11a0] ss:$16 sps:$4 sm:$0xff]  }
 0x13d   : > { %v5183_v19 = vpop.f32.mrf.mxu1  ;;  %5477 = vmatprep.subr.bf16.mxu1 %v7591_v7  ;;  %5466 = vmatprep.mubr.bf16.mxu0 %v8958_v10  ;;  %v7642_v6 = vld [vmem:[%s8626_s27 + $0x11a4] ss:$16 sps:$4 sm:$0xff]   ;;  %v7643_v13 = vld [vmem:[%s8626_s27 + $0x13a0] ss:$16 sps:$4 sm:$0xff]  }
 0x13e   : > { %v8970_v23 = vadd.f32 %v5183_v19, %v5142_v18  ;;  %5507 = vmatprep.mubr.bf16.mxu1 %v8960_v11  ;;  %v5144_v24 = vpop.f32.mrf.mxu0  ;;  %v7645_v7 = vld [vmem:[%s8626_s27 + $0x13a4] ss:$16 sps:$4 sm:$0xff]   ;;  %v7649_v18 = vld [vmem:[%s8626_s27 + $0x1380] ss:$16 sps:$4 sm:$0xff]  }
 0x13f   : > { %v5185_v25 = vpop.f32.mrf.mxu1  ;;  %5437 = vmatpush1.bf16.msra.mxu0 %v7586_v14  ;;  %v7648_v14 = vld [vmem:[%s8626_s27 + $0x1184] ss:$16 sps:$4 sm:$0xff]   ;;  %v7652_v24 = vld [vmem:[%s8626_s27 + $0x1160] ss:$16 sps:$4 sm:$0xff]  }
 0x140   : > { %5478 = vmatpush1.bf16.msra.mxu1 %v7589_v15  ;;  %v5145_v30 = vpop.f32.mrf.mxu0  ;;  %5438 = vmatprep.subr.bf16.mxu0 %v7594_v17  ;;  %v7651_v15 = vld [vmem:[%s8626_s27 + $0x1384] ss:$16 sps:$4 sm:$0xff]   ;;  %v7646_v17 = vld [vmem:[%s8626_s27 + $0x1180] ss:$16 sps:$4 sm:$0xff]  }
 0x141   : > { %v5186_v31 = vpop.f32.mrf.mxu1  ;;  %5479 = vmatprep.subr.bf16.mxu1 %v7597_v22  ;;  %v7654_v19 = vld [vmem:[%s8626_s27 + $0x1164] ss:$16 sps:$4 sm:$0xff]   ;;  %v7655_v25 = vld [vmem:[%s8626_s27 + $0x1360] ss:$16 sps:$4 sm:$0xff]  }
 0x142   : > { %v7657_v22 = vld [vmem:[%s8626_s27 + $0x1364] ss:$16 sps:$4 sm:$0xff]   ;;  %v7661_v30 = vld [vmem:[%s8626_s27 + $0x1340] ss:$16 sps:$4 sm:$0xff]  }
 0x143   : > { %5439 = vmatpush1.bf16.msra.mxu0 %v7592_v26  ;;  %v7660_v26 = vld [vmem:[%s8626_s27 + $0x1144] ss:$16 sps:$4 sm:$0xff]  }
 0x144   : > { %5480 = vmatpush1.bf16.msra.mxu1 %v7595_v27  ;;  %5440 = vmatprep.subr.bf16.mxu0 %v7600_v28  ;;  %v7663_v27 = vld [vmem:[%s8626_s27 + $0x1344] ss:$16 sps:$4 sm:$0xff]   ;;  %v7658_v28 = vld [vmem:[%s8626_s27 + $0x1140] ss:$16 sps:$4 sm:$0xff]  }
 0x145   : > { %5481 = vmatprep.subr.bf16.mxu1 %v7603_v33  ;;  %v7666_v31 = vld [vmem:[%s8626_s27 + $0x1124] ss:$16 sps:$4 sm:$0xff]  }
 0x146   : > { %v7669_v33 = vld [vmem:[%s8626_s27 + $0x1324] ss:$16 sps:$4 sm:$0xff]  }
 0x147   : > { %5441 = vmatpush1.bf16.msra.mxu0 %v7598_v34  ;;  %v7664_v34 = vld [vmem:[%s8626_s27 + $0x1120] ss:$16 sps:$4 sm:$0xff]  }
 0x148   : > { %5482 = vmatpush1.bf16.msra.mxu1 %v7601_v35  ;;  %5442 = vmatprep.subr.bf16.mxu0 %v7606_v36  ;;  %v7667_v35 = vld [vmem:[%s8626_s27 + $0x1320] ss:$16 sps:$4 sm:$0xff]   ;;  %v7672_v36 = vld [vmem:[%s8626_s27 + $0x1104] ss:$16 sps:$4 sm:$0xff]  }
 0x149   : > { %5483 = vmatprep.subr.bf16.mxu1 %v7609_v38  ;;  %v7675_v38 = vld [vmem:[%s8626_s27 + $0x1304] ss:$16 sps:$4 sm:$0xff]  }
 0x14b   : > { %5443 = vmatpush1.bf16.msra.mxu0 %v7604_v39  ;;  %v7670_v39 = vld [vmem:[%s8626_s27 + $0x1100] ss:$16 sps:$4 sm:$0xff]  }
 0x14c   : > { %5484 = vmatpush1.bf16.msra.mxu1 %v7607_v41  ;;  %5444 = vmatprep.subr.bf16.mxu0 %v7612_v44  ;;  %v7673_v41 = vld [vmem:[%s8626_s27 + $0x1300] ss:$16 sps:$4 sm:$0xff]  }
 0x14d   : > { %5485 = vmatprep.subr.bf16.mxu1 %v7615_v45  ;;  %v272_v44 = vld [vmem:[%s8620_s6 + $0x80] sm:$0xff]  ;;  %v274_v45 = vld [vmem:[%s8620_s6 + $0x90] sm:$0xff] }
 0x14f   : > { %5445 = vmatpush1.bf16.msra.mxu0 %v7610_v46  ;;  %v7678_v46 = vld [vmem:[%s8626_s27 + $0x14e4] ss:$16 sps:$4 sm:$0xff]  }
 0x150   : > { %5486 = vmatpush1.bf16.msra.mxu1 %v7613_v47  ;;  %5446 = vmatprep.subr.bf16.mxu0 %v7618_v51  ;;  %v7681_v47 = vld [vmem:[%s8626_s27 + $0x16e4] ss:$16 sps:$4 sm:$0xff]  }
 0x151   : > { %5487 = vmatprep.subr.bf16.mxu1 %v7621_v53  ;;  %v277_v51 = vld [vmem:[%s8620_s6 + $0xa8] sm:$0xff]  ;;  %v279_v53 = vld [vmem:[%s8620_s6 + $0xb8] sm:$0xff] }
 0x153   : > { %5447 = vmatpush1.bf16.msra.mxu0 %v7616_v54  ;;  %v7676_v54 = vld [vmem:[%s8626_s27 + $0x14e0] ss:$16 sps:$4 sm:$0xff]  }
 0x154   : > { %5488 = vmatpush1.bf16.msra.mxu1 %v7619_v55  ;;  %5448 = vmatprep.subr.bf16.mxu0 %v7624_v56  ;;  %v7679_v55 = vld [vmem:[%s8626_s27 + $0x16e0] ss:$16 sps:$4 sm:$0xff]   ;;  %v9036_v56 = vpack.c.bf16 %v272_v44, %v272_v44 }
 0x155   : > { %5489 = vmatprep.subr.bf16.mxu1 %v7627_v57  ;;  %v9038_v57 = vpack.c.bf16 %v274_v45, %v274_v45  ;;  %v7712_v44 = vld [vmem:[%s8626_s27 + $0x1420] ss:$16 sps:$4 sm:$0xff]  }
 0x156   : > { %v7715_v45 = vld [vmem:[%s8626_s27 + $0x1620] ss:$16 sps:$4 sm:$0xff]  }
 0x157   : > { %5449 = vmatpush1.bf16.msra.mxu0 %v7622_v58  ;;  %v7684_v58 = vld [vmem:[%s8626_s27 + $0x14c4] ss:$16 sps:$4 sm:$0xff]  }
 0x158   : > { %5490 = vmatpush1.bf16.msra.mxu1 %v7625_v59  ;;  %5450 = vmatprep.subr.bf16.mxu0 %v7630_v60  ;;  %v7687_v59 = vld [vmem:[%s8626_s27 + $0x16c4] ss:$16 sps:$4 sm:$0xff]   ;;  %v7682_v60 = vld [vmem:[%s8626_s27 + $0x14c0] ss:$16 sps:$4 sm:$0xff]  }
 0x159   : > { %5491 = vmatprep.subr.bf16.mxu1 %v7633_v61  ;;  %v7685_v61 = vld [vmem:[%s8626_s27 + $0x16c0] ss:$16 sps:$4 sm:$0xff]  }
 0x15b   : > { %5451 = vmatpush2.bf16.msra.mxu0 %v7628_v62  ;;  %v9044_v62 = vpack.c.bf16 %v277_v51, %v277_v51  ;;  %v7718_v51 = vld [vmem:[%s8626_s27 + $0x1400] ss:$16 sps:$4 sm:$0xff]  }
 0x15c   : > { %5492 = vmatpush2.bf16.msra.mxu1 %v7631_v63  ;;  %5452 = vmatprep.subr.bf16.mxu0 %v7636_v0  ;;  %v9046_v63 = vpack.c.bf16 %v279_v53, %v279_v53  ;;  %v7721_v53 = vld [vmem:[%s8626_s27 + $0x1600] ss:$16 sps:$4 sm:$0xff]  }
 0x15d   : > { %5493 = vmatprep.subr.bf16.mxu1 %v7639_v1 }
 0x15f   : > { %5453 = vmatpush2.bf16.msra.mxu0 %v7634_v4 }
 0x160   : > { %5494 = vmatpush2.bf16.msra.mxu1 %v7637_v5  ;;  %5454 = vmatprep.subr.bf16.mxu0 %v7642_v6 }
 0x161   : > { %5495 = vmatprep.subr.bf16.mxu1 %v7645_v7  ;;  %v7690_v7 = vld [vmem:[%s8626_s27 + $0x14a4] ss:$16 sps:$4 sm:$0xff]  }
 0x163   : > { %5455 = vmatpush2.bf16.msra.mxu0 %v7640_v12  ;;  %v7693_v12 = vld [vmem:[%s8626_s27 + $0x16a4] ss:$16 sps:$4 sm:$0xff]  }
 0x164   : > { %5496 = vmatpush2.bf16.msra.mxu1 %v7643_v13  ;;  %5456 = vmatprep.subr.bf16.mxu0 %v7648_v14 }
 0x165   : > { %5497 = vmatprep.subr.bf16.mxu1 %v7651_v15  ;;  %v7688_v15 = vld [vmem:[%s8626_s27 + $0x14a0] ss:$16 sps:$4 sm:$0xff]  }
 0x167   : > { %5457 = vmatpush2.bf16.msra.mxu0 %v7646_v17  ;;  %v7691_v17 = vld [vmem:[%s8626_s27 + $0x16a0] ss:$16 sps:$4 sm:$0xff]  }
 0x168   : > { %5498 = vmatpush2.bf16.msra.mxu1 %v7649_v18  ;;  %5458 = vmatprep.subr.bf16.mxu0 %v7654_v19 }
 0x169   : > { %5499 = vmatprep.subr.bf16.mxu1 %v7657_v22 }
 0x16b   : > { %5459 = vmatpush2.bf16.msra.mxu0 %v7652_v24 }
 0x16c   : > { %5500 = vmatpush2.bf16.msra.mxu1 %v7655_v25  ;;  %5460 = vmatprep.subr.bf16.mxu0 %v7660_v26  ;;  %v7699_v25 = vld [vmem:[%s8626_s27 + $0x1684] ss:$16 sps:$4 sm:$0xff]   ;;  %v7694_v26 = vld [vmem:[%s8626_s27 + $0x1480] ss:$16 sps:$4 sm:$0xff]  }
 0x16d   : > { %5501 = vmatprep.subr.bf16.mxu1 %v7663_v27  ;;  %v7697_v27 = vld [vmem:[%s8626_s27 + $0x1680] ss:$16 sps:$4 sm:$0xff]  }
 0x16f   : > { %5461 = vmatpush2.bf16.msra.mxu0 %v7658_v28  ;;  %v7702_v28 = vld [vmem:[%s8626_s27 + $0x1464] ss:$16 sps:$4 sm:$0xff]  }
 0x170   : > { %5502 = vmatpush2.bf16.msra.mxu1 %v7661_v30  ;;  %5462 = vmatprep.subr.bf16.mxu0 %v7666_v31  ;;  %v7705_v30 = vld [vmem:[%s8626_s27 + $0x1664] ss:$16 sps:$4 sm:$0xff]   ;;  %v7700_v31 = vld [vmem:[%s8626_s27 + $0x1460] ss:$16 sps:$4 sm:$0xff]  }
 0x171   : > { %5503 = vmatprep.subr.bf16.mxu1 %v7669_v33  ;;  %v7703_v33 = vld [vmem:[%s8626_s27 + $0x1660] ss:$16 sps:$4 sm:$0xff]  }
 0x173   : > { %5463 = vmatpush2.bf16.msra.mxu0 %v7664_v34  ;;  %v7708_v34 = vld [vmem:[%s8626_s27 + $0x1444] ss:$16 sps:$4 sm:$0xff]  }
 0x174   : > { %5504 = vmatpush2.bf16.msra.mxu1 %v7667_v35  ;;  %5464 = vmatprep.subr.bf16.mxu0 %v7672_v36  ;;  %v7711_v35 = vld [vmem:[%s8626_s27 + $0x1644] ss:$16 sps:$4 sm:$0xff]   ;;  %v7706_v36 = vld [vmem:[%s8626_s27 + $0x1440] ss:$16 sps:$4 sm:$0xff]  }
 0x175   : > { %5505 = vmatprep.subr.bf16.mxu1 %v7675_v38  ;;  %v7709_v38 = vld [vmem:[%s8626_s27 + $0x1640] ss:$16 sps:$4 sm:$0xff]  }
 0x177   : > { %5465 = vmatpush2.bf16.msra.mxu0 %v7670_v39  ;;  %v7714_v39 = vld [vmem:[%s8626_s27 + $0x1424] ss:$16 sps:$4 sm:$0xff]  }
 0x178   : > { %5506 = vmatpush2.bf16.msra.mxu1 %v7673_v41  ;;  %5516 = vmatprep.subr.bf16.mxu0 %v7678_v46  ;;  %v7717_v41 = vld [vmem:[%s8626_s27 + $0x1624] ss:$16 sps:$4 sm:$0xff]  }
 0x179   : > { %5557 = vmatprep.subr.bf16.mxu1 %v7681_v47  ;;  %v7720_v46 = vld [vmem:[%s8626_s27 + $0x1404] ss:$16 sps:$4 sm:$0xff]  }
 0x17a   : > { %v5222_v0 = vpop.f32.mrf.mxu0  ;;  %5467 = vmatmul.mubr.bf16.vlgmr.msra.gmra.mxu0 %v9036_v56  ;;  %v7723_v47 = vld [vmem:[%s8626_s27 + $0x1604] ss:$16 sps:$4 sm:$0xff]  }
 0x17b   : > { %v5263_v1 = vpop.f32.mrf.mxu1  ;;  %5508 = vmatmul.mubr.bf16.vlgmr.msra.gmra.mxu1 %v9038_v57  ;;  %v5223_v4 = vadd.f32 %v5222_v0, %v8966_v16  ;;  %5517 = vmatpush1.bf16.msra.mxu0 %v7676_v54  ;;  %v7726_v54 = vld [vmem:[%s8626_s27 + $0x15e4] ss:$16 sps:$4 sm:$0xff]   ;;  %v7730_v0 = vld [vmem:[%s8626_s27 + $0x15c0] ss:$16 sps:$4 sm:$0xff]  }
 0x17c   : > { %5558 = vmatpush1.bf16.msra.mxu1 %v7679_v55  ;;  %v5224_v5 = vpop.f32.mrf.mxu0  ;;  %5518 = vmatprep.subr.bf16.mxu0 %v7684_v58  ;;  %v7729_v55 = vld [vmem:[%s8626_s27 + $0x17e4] ss:$16 sps:$4 sm:$0xff]   ;;  %v7724_v58 = vld [vmem:[%s8626_s27 + $0x15e0] ss:$16 sps:$4 sm:$0xff]  }
 0x17d   : > { %v5265_v6 = vpop.f32.mrf.mxu1  ;;  %5559 = vmatprep.subr.bf16.mxu1 %v7687_v59  ;;  %v9053_v13 = vadd.f32 %v5263_v1, %v5223_v4  ;;  %v5225_v14 = vadd.f32 %v5224_v5, %v8970_v23  ;;  %5548 = vmatprep.mubr.bf16.mxu0 %v9044_v62  ;;  %v7696_v23 = vld [vmem:[%s8626_s27 + $0x1484] ss:$16 sps:$4 sm:$0xff]   ;;  %v7727_v59 = vld [vmem:[%s8626_s27 + $0x17e0] ss:$16 sps:$4 sm:$0xff]  }
 0x17e   : > { %5589 = vmatprep.mubr.bf16.mxu1 %v9046_v63  ;;  %v5226_v16 = vpop.f32.mrf.mxu0  ;;  %v7733_v1 = vld [vmem:[%s8626_s27 + $0x17c0] ss:$16 sps:$4 sm:$0xff]   ;;  %v7738_v4 = vld [vmem:[%s8626_s27 + $0x15a4] ss:$16 sps:$4 sm:$0xff]  }
 0x17f   : > { %v5267_v18 = vpop.f32.mrf.mxu1  ;;  %v9060_v19 = vadd.f32 %v5265_v6, %v5225_v14  ;;  %5519 = vmatpush1.bf16.msra.mxu0 %v7682_v60  ;;  %v7732_v60 = vld [vmem:[%s8626_s27 + $0x15c4] ss:$16 sps:$4 sm:$0xff]   ;;  %v7736_v6 = vld [vmem:[%s8626_s27 + $0x15a0] ss:$16 sps:$4 sm:$0xff]  }
 0x180   : > { %5560 = vmatpush1.bf16.msra.mxu1 %v7685_v61  ;;  %v5227_v22 = vpop.f32.mrf.mxu0  ;;  %5520 = vmatprep.subr.bf16.mxu0 %v7690_v7  ;;  %v7735_v61 = vld [vmem:[%s8626_s27 + $0x17c4] ss:$16 sps:$4 sm:$0xff]   ;;  %v7739_v7 = vld [vmem:[%s8626_s27 + $0x17a0] ss:$16 sps:$4 sm:$0xff]  }
 0x181   : > { %v5268_v24 = vpop.f32.mrf.mxu1  ;;  %5561 = vmatprep.subr.bf16.mxu1 %v7693_v12  ;;  %v7741_v5 = vld [vmem:[%s8626_s27 + $0x17a4] ss:$16 sps:$4 sm:$0xff]   ;;  %v7748_v22 = vld [vmem:[%s8626_s27 + $0x1560] ss:$16 sps:$4 sm:$0xff]  }
 0x182   : > { %v7744_v12 = vld [vmem:[%s8626_s27 + $0x1584] ss:$16 sps:$4 sm:$0xff]   ;;  %v7751_v24 = vld [vmem:[%s8626_s27 + $0x1760] ss:$16 sps:$4 sm:$0xff]  }
 0x183   : > { %5521 = vmatpush1.bf16.msra.mxu0 %v7688_v15  ;;  %v7747_v14 = vld [vmem:[%s8626_s27 + $0x1784] ss:$16 sps:$4 sm:$0xff]   ;;  %v7742_v15 = vld [vmem:[%s8626_s27 + $0x1580] ss:$16 sps:$4 sm:$0xff]  }
 0x184   : > { %5562 = vmatpush1.bf16.msra.mxu1 %v7691_v17  ;;  %5522 = vmatprep.subr.bf16.mxu0 %v7696_v23  ;;  %v7745_v17 = vld [vmem:[%s8626_s27 + $0x1780] ss:$16 sps:$4 sm:$0xff]   ;;  %v7750_v16 = vld [vmem:[%s8626_s27 + $0x1564] ss:$16 sps:$4 sm:$0xff]  }
 0x185   : > { %5563 = vmatprep.subr.bf16.mxu1 %v7699_v25  ;;  %v7753_v18 = vld [vmem:[%s8626_s27 + $0x1764] ss:$16 sps:$4 sm:$0xff]  }
 0x186   : > { %v7756_v23 = vld [vmem:[%s8626_s27 + $0x1544] ss:$16 sps:$4 sm:$0xff]  }
 0x187   : > { %5523 = vmatpush1.bf16.msra.mxu0 %v7694_v26  ;;  %v7759_v25 = vld [vmem:[%s8626_s27 + $0x1744] ss:$16 sps:$4 sm:$0xff]   ;;  %v7754_v26 = vld [vmem:[%s8626_s27 + $0x1540] ss:$16 sps:$4 sm:$0xff]  }
 0x188   : > { %5564 = vmatpush1.bf16.msra.mxu1 %v7697_v27  ;;  %5524 = vmatprep.subr.bf16.mxu0 %v7702_v28  ;;  %v7757_v27 = vld [vmem:[%s8626_s27 + $0x1740] ss:$16 sps:$4 sm:$0xff]   ;;  %v7762_v28 = vld [vmem:[%s8626_s27 + $0x1524] ss:$16 sps:$4 sm:$0xff]  }
 0x189   : > { %5565 = vmatprep.subr.bf16.mxu1 %v7705_v30  ;;  %v7765_v30 = vld [vmem:[%s8626_s27 + $0x1724] ss:$16 sps:$4 sm:$0xff]  }
 0x18b   : > { %5525 = vmatpush1.bf16.msra.mxu0 %v7700_v31  ;;  %v7760_v31 = vld [vmem:[%s8626_s27 + $0x1520] ss:$16 sps:$4 sm:$0xff]  }
 0x18c   : > { %5566 = vmatpush1.bf16.msra.mxu1 %v7703_v33  ;;  %5526 = vmatprep.subr.bf16.mxu0 %v7708_v34  ;;  %v7763_v33 = vld [vmem:[%s8626_s27 + $0x1720] ss:$16 sps:$4 sm:$0xff]   ;;  %v7768_v34 = vld [vmem:[%s8626_s27 + $0x1504] ss:$16 sps:$4 sm:$0xff]  }
 0x18d   : > { %5567 = vmatprep.subr.bf16.mxu1 %v7711_v35  ;;  %v7771_v35 = vld [vmem:[%s8626_s27 + $0x1704] ss:$16 sps:$4 sm:$0xff]  }
 0x18f   : > { %5527 = vmatpush1.bf16.msra.mxu0 %v7706_v36  ;;  %v7766_v36 = vld [vmem:[%s8626_s27 + $0x1500] ss:$16 sps:$4 sm:$0xff]  }
 0x190   : > { %5568 = vmatpush1.bf16.msra.mxu1 %v7709_v38  ;;  %5528 = vmatprep.subr.bf16.mxu0 %v7714_v39  ;;  %v7769_v38 = vld [vmem:[%s8626_s27 + $0x1700] ss:$16 sps:$4 sm:$0xff]  }
 0x191   : > { %5569 = vmatprep.subr.bf16.mxu1 %v7717_v41  ;;  %v276_v39 = vld [vmem:[%s8620_s6 + $0xa0] sm:$0xff]  ;;  %v278_v41 = vld [vmem:[%s8620_s6 + $0xb0] sm:$0xff] }
 0x193   : > { %5529 = vmatpush1.bf16.msra.mxu0 %v7712_v44  ;;  %v7774_v44 = vld [vmem:[%s8626_s27 + $0x18e4] ss:$16 sps:$4 sm:$0xff]  }
 0x194   : > { %5570 = vmatpush1.bf16.msra.mxu1 %v7715_v45  ;;  %5530 = vmatprep.subr.bf16.mxu0 %v7720_v46  ;;  %v7777_v45 = vld [vmem:[%s8626_s27 + $0xec] ss:$16 sps:$4 sm:$0xff]   ;;  %v7772_v46 = vld [vmem:[%s8626_s27 + $0x18e0] ss:$16 sps:$4 sm:$0xff]  }
 0x195   : > { %5571 = vmatprep.subr.bf16.mxu1 %v7723_v47  ;;  %v7775_v47 = vld [vmem:[%s8626_s27 + $0xe8] ss:$16 sps:$4 sm:$0xff]  }
 0x197   : > { %5531 = vmatpush1.bf16.msra.mxu0 %v7718_v51  ;;  %v9120_v51 = vpack.c.bf16 %v276_v39, %v276_v39  ;;  %v7808_v39 = vld [vmem:[%s8626_s27 + $0x1820] ss:$16 sps:$4 sm:$0xff]  }
 0x198   : > { %5572 = vmatpush1.bf16.msra.mxu1 %v7721_v53  ;;  %5532 = vmatprep.subr.bf16.mxu0 %v7726_v54  ;;  %v9122_v53 = vpack.c.bf16 %v278_v41, %v278_v41  ;;  %v7780_v54 = vld [vmem:[%s8626_s27 + $0x18c4] ss:$16 sps:$4 sm:$0xff]   ;;  %v7811_v41 = vld [vmem:[%s8626_s27 + $0x28] ss:$16 sps:$4 sm:$0xff]  }
 0x199   : > { %5573 = vmatprep.subr.bf16.mxu1 %v7729_v55  ;;  %v7783_v55 = vld [vmem:[%s8626_s27 + $0xcc] ss:$16 sps:$4 sm:$0xff]  }
 0x19b   : > { %5533 = vmatpush2.bf16.msra.mxu0 %v7724_v58  ;;  %v7778_v58 = vld [vmem:[%s8626_s27 + $0x18c0] ss:$16 sps:$4 sm:$0xff]  }
 0x19c   : > { %5574 = vmatpush2.bf16.msra.mxu1 %v7727_v59  ;;  %5534 = vmatprep.subr.bf16.mxu0 %v7732_v60  ;;  %v7781_v59 = vld [vmem:[%s8626_s27 + $0xc8] ss:$16 sps:$4 sm:$0xff]  }
 0x19d   : > { %5575 = vmatprep.subr.bf16.mxu1 %v7735_v61 }
 0x19f   : > { %5535 = vmatpush2.bf16.msra.mxu0 %v7730_v0 }
 0x1a0   : > { %5576 = vmatpush2.bf16.msra.mxu1 %v7733_v1  ;;  %5536 = vmatprep.subr.bf16.mxu0 %v7738_v4 }
 0x1a1   : > { %5577 = vmatprep.subr.bf16.mxu1 %v7741_v5  ;;  %v7786_v5 = vld [vmem:[%s8626_s27 + $0x18a4] ss:$16 sps:$4 sm:$0xff]  }
 0x1a3   : > { %5537 = vmatpush2.bf16.msra.mxu0 %v7736_v6  ;;  %v7789_v6 = vld [vmem:[%s8626_s27 + $0xac] ss:$16 sps:$4 sm:$0xff]  }
 0x1a4   : > { %5578 = vmatpush2.bf16.msra.mxu1 %v7739_v7  ;;  %5538 = vmatprep.subr.bf16.mxu0 %v7744_v12 }
 0x1a5   : > { %5579 = vmatprep.subr.bf16.mxu1 %v7747_v14  ;;  %v7784_v14 = vld [vmem:[%s8626_s27 + $0x18a0] ss:$16 sps:$4 sm:$0xff]  }
 0x1a7   : > { %5539 = vmatpush2.bf16.msra.mxu0 %v7742_v15  ;;  %v7787_v15 = vld [vmem:[%s8626_s27 + $0xa8] ss:$16 sps:$4 sm:$0xff]  }
 0x1a8   : > { %5580 = vmatpush2.bf16.msra.mxu1 %v7745_v17  ;;  %5540 = vmatprep.subr.bf16.mxu0 %v7750_v16  ;;  %v8512_v17 = vmov 0  }
 0x1a9   : > { %5581 = vmatprep.subr.bf16.mxu1 %v7753_v18 }
 0x1ab   : > { %5541 = vmatpush2.bf16.msra.mxu0 %v7748_v22 }
 0x1ac   : > { %5582 = vmatpush2.bf16.msra.mxu1 %v7751_v24  ;;  %5542 = vmatprep.subr.bf16.mxu0 %v7756_v23  ;;  %v7792_v24 = vld [vmem:[%s8626_s27 + $0x1884] ss:$16 sps:$4 sm:$0xff]   ;;  %v7795_v23 = vld [vmem:[%s8626_s27 + $0x8c] ss:$16 sps:$4 sm:$0xff]  }
 0x1ad   : > { %5583 = vmatprep.subr.bf16.mxu1 %v7759_v25  ;;  %v7793_v25 = vld [vmem:[%s8626_s27 + $0x88] ss:$16 sps:$4 sm:$0xff]  }
 0x1af   : > { %5543 = vmatpush2.bf16.msra.mxu0 %v7754_v26  ;;  %v7798_v26 = vld [vmem:[%s8626_s27 + $0x1864] ss:$16 sps:$4 sm:$0xff]  }
 0x1b0   : > { %5584 = vmatpush2.bf16.msra.mxu1 %v7757_v27  ;;  %5544 = vmatprep.subr.bf16.mxu0 %v7762_v28  ;;  %v7801_v27 = vld [vmem:[%s8626_s27 + $0x6c] ss:$16 sps:$4 sm:$0xff]   ;;  %v7796_v28 = vld [vmem:[%s8626_s27 + $0x1860] ss:$16 sps:$4 sm:$0xff]  }
 0x1b1   : > { %5585 = vmatprep.subr.bf16.mxu1 %v7765_v30  ;;  %v7799_v30 = vld [vmem:[%s8626_s27 + $0x68] ss:$16 sps:$4 sm:$0xff]  }
 0x1b3   : > { %5545 = vmatpush2.bf16.msra.mxu0 %v7760_v31  ;;  %v7804_v31 = vld [vmem:[%s8626_s27 + $0x1844] ss:$16 sps:$4 sm:$0xff]  }
 0x1b4   : > { %5586 = vmatpush2.bf16.msra.mxu1 %v7763_v33  ;;  %5546 = vmatprep.subr.bf16.mxu0 %v7768_v34  ;;  %v7807_v33 = vld [vmem:[%s8626_s27 + $0x4c] ss:$16 sps:$4 sm:$0xff]   ;;  %v7802_v34 = vld [vmem:[%s8626_s27 + $0x1840] ss:$16 sps:$4 sm:$0xff]  }
 0x1b5   : > { %5587 = vmatprep.subr.bf16.mxu1 %v7771_v35  ;;  %v7805_v35 = vld [vmem:[%s8626_s27 + $0x48] ss:$16 sps:$4 sm:$0xff]  }
 0x1b7   : > { %5547 = vmatpush2.bf16.msra.mxu0 %v7766_v36  ;;  %v7810_v36 = vld [vmem:[%s8626_s27 + $0x1824] ss:$16 sps:$4 sm:$0xff]  }
 0x1b8   : > { %5588 = vmatpush2.bf16.msra.mxu1 %v7769_v38  ;;  %5598 = vmatprep.subr.bf16.mxu0 %v7774_v44  ;;  %v7813_v38 = vld [vmem:[%s8626_s27 + $0x2c] ss:$16 sps:$4 sm:$0xff]   ;;  %v7816_v44 = vld [vmem:[%s8626_s27 + $0x1804] ss:$16 sps:$4 sm:$0xff]  }
 0x1b9   : > { %5639 = vmatprep.subr.bf16.mxu1 %v7777_v45  ;;  %v7819_v45 = vld [vmem:[%s8626_s27 + $0xc] ss:$16 sps:$4 sm:$0xff]  }
 0x1ba   : > { %v5304_v60 = vpop.f32.mrf.mxu0  ;;  %5549 = vmatmul.mubr.bf16.vlgmr.msra.gmra.mxu0 %v9120_v51 }
 0x1bb   : > { %v5345_v61 = vpop.f32.mrf.mxu1  ;;  %5590 = vmatmul.mubr.bf16.vlgmr.msra.gmra.mxu1 %v9122_v53  ;;  %v5305_v0 = vadd.f32 %v5304_v60, %v9053_v13  ;;  %5599 = vmatpush1.bf16.msra.mxu0 %v7772_v46  ;;  %v7814_v46 = vld [vmem:[%s8626_s27 + $0x1800] ss:$16 sps:$4 sm:$0xff]   ;;  %v7823_v60 = vld [vmem:[%s8626_s27 + $0x2e8] ss:$16 sps:$4 sm:$0xff]  }
 0x1bc   : > { %5640 = vmatpush1.bf16.msra.mxu1 %v7775_v47  ;;  %v5306_v1 = vpop.f32.mrf.mxu0  ;;  %5600 = vmatprep.subr.bf16.mxu0 %v7780_v54  ;;  %v7817_v47 = vld [vmem:[%s8626_s27 + $0x8] ss:$16 sps:$4 sm:$0xff]  }
 0x1bd   : > { %v5347_v4 = vpop.f32.mrf.mxu1  ;;  %5641 = vmatprep.subr.bf16.mxu1 %v7783_v55  ;;  %v9133_v7 = vadd.f32 %v5345_v61, %v5305_v0  ;;  %v5307_v12 = vadd.f32 %v5306_v1, %v9060_v19  ;;  %5630 = vmatprep.mubr.bf16.mxu0 %v8512_v17  ;;  %v280_v54 = vld [vmem:[%s8620_s6 + $0xc0] sm:$0xff] }
 0x1be   : > { %5671 = vmatprep.mubr.bf16.mxu1 %v8681_v49  ;;  %v5308_v13 = vpop.f32.mrf.mxu0  ;;  %v7790_v49 = vld [vmem:[%s8626_s27 + $0x1880] ss:$16 sps:$4 sm:$0xff]   ;;  %v7822_v55 = vld [vmem:[%s8626_s27 + $0x1ec] ss:$16 sps:$4 sm:$0xff]   ;;  %v9167_v61 = vpack.c.bf16 %v280_v54, %v280_v54 }
 0x1bf   : > { %v5349_v16 = vpop.f32.mrf.mxu1  ;;  %v9140_v18 = vadd.f32 %v5347_v4, %v5307_v12  ;;  %5601 = vmatpush1.bf16.msra.mxu0 %v7778_v58  ;;  %v7825_v58 = vld [vmem:[%s8626_s27 + $0x2ec] ss:$16 sps:$4 sm:$0xff]   ;;  %v7826_v4 = vld [vmem:[%s8626_s27 + $0x1c8] ss:$16 sps:$4 sm:$0xff]  }
 0x1c0   : > { %5642 = vmatpush1.bf16.msra.mxu1 %v7781_v59  ;;  %v5309_v22 = vpop.f32.mrf.mxu0  ;;  %5602 = vmatprep.subr.bf16.mxu0 %v7786_v5  ;;  %v7820_v59 = vld [vmem:[%s8626_s27 + $0x1e8] ss:$16 sps:$4 sm:$0xff]   ;;  %v7828_v0 = vld [vmem:[%s8626_s27 + $0x1cc] ss:$16 sps:$4 sm:$0xff]  }
 0x1c1   : > { %v5350_v19 = vpop.f32.mrf.mxu1  ;;  %5643 = vmatprep.subr.bf16.mxu1 %v7789_v6  ;;  %v7831_v1 = vld [vmem:[%s8626_s27 + $0x2cc] ss:$16 sps:$4 sm:$0xff]   ;;  %v7829_v5 = vld [vmem:[%s8626_s27 + $0x2c8] ss:$16 sps:$4 sm:$0xff]  }
 0x1c2   : > { %v7834_v6 = vld [vmem:[%s8626_s27 + $0x1ac] ss:$16 sps:$4 sm:$0xff]   ;;  %v7838_v22 = vld [vmem:[%s8626_s27 + $0x188] ss:$16 sps:$4 sm:$0xff]  }
 0x1c3   : > { %5603 = vmatpush1.bf16.msra.mxu0 %v7784_v14  ;;  %v7837_v12 = vld [vmem:[%s8626_s27 + $0x2ac] ss:$16 sps:$4 sm:$0xff]   ;;  %v7832_v14 = vld [vmem:[%s8626_s27 + $0x1a8] ss:$16 sps:$4 sm:$0xff]  }
 0x1c4   : > { %5644 = vmatpush1.bf16.msra.mxu1 %v7787_v15  ;;  %5604 = vmatprep.subr.bf16.mxu0 %v7792_v24  ;;  %v7835_v15 = vld [vmem:[%s8626_s27 + $0x2a8] ss:$16 sps:$4 sm:$0xff]   ;;  %v7840_v13 = vld [vmem:[%s8626_s27 + $0x18c] ss:$16 sps:$4 sm:$0xff]  }
 0x1c5   : > { %5645 = vmatprep.subr.bf16.mxu1 %v7795_v23  ;;  %v7843_v16 = vld [vmem:[%s8626_s27 + $0x28c] ss:$16 sps:$4 sm:$0xff]   ;;  %v7841_v19 = vld [vmem:[%s8626_s27 + $0x288] ss:$16 sps:$4 sm:$0xff]  }
 0x1c6   : > { %v7849_v24 = vld [vmem:[%s8626_s27 + $0x26c] ss:$16 sps:$4 sm:$0xff]   ;;  %v7844_v23 = vld [vmem:[%s8626_s27 + $0x168] ss:$16 sps:$4 sm:$0xff]  }
 0x1c7   : > { %5605 = vmatpush1.bf16.msra.mxu0 %v7790_v49  ;;  %v7847_v49 = vld [vmem:[%s8626_s27 + $0x268] ss:$16 sps:$4 sm:$0xff]   ;;  %v7879_v54 = vld [vmem:[%s8626_s27 + $0x4cc] ss:$16 sps:$4 sm:$0xff]  }
 0x1c8   : > { %5646 = vmatpush1.bf16.msra.mxu1 %v7793_v25  ;;  %5606 = vmatprep.subr.bf16.mxu0 %v7798_v26  ;;  %v7852_v25 = vld [vmem:[%s8626_s27 + $0x14c] ss:$16 sps:$4 sm:$0xff]  }
 0x1c9   : > { %5647 = vmatprep.subr.bf16.mxu1 %v7801_v27  ;;  %v7855_v26 = vld [vmem:[%s8626_s27 + $0x24c] ss:$16 sps:$4 sm:$0xff]   ;;  %v7850_v27 = vld [vmem:[%s8626_s27 + $0x148] ss:$16 sps:$4 sm:$0xff]  }
 0x1cb   : > { %5607 = vmatpush1.bf16.msra.mxu0 %v7796_v28  ;;  %v7853_v28 = vld [vmem:[%s8626_s27 + $0x248] ss:$16 sps:$4 sm:$0xff]  }
 0x1cc   : > { %5648 = vmatpush1.bf16.msra.mxu1 %v7799_v30  ;;  %5608 = vmatprep.subr.bf16.mxu0 %v7804_v31  ;;  %v7858_v30 = vld [vmem:[%s8626_s27 + $0x12c] ss:$16 sps:$4 sm:$0xff]  }
 0x1cd   : > { %5649 = vmatprep.subr.bf16.mxu1 %v7807_v33  ;;  %v7861_v31 = vld [vmem:[%s8626_s27 + $0x22c] ss:$16 sps:$4 sm:$0xff]   ;;  %v7856_v33 = vld [vmem:[%s8626_s27 + $0x128] ss:$16 sps:$4 sm:$0xff]  }
 0x1cf   : > { %5609 = vmatpush1.bf16.msra.mxu0 %v7802_v34  ;;  %v7859_v34 = vld [vmem:[%s8626_s27 + $0x228] ss:$16 sps:$4 sm:$0xff]  }
 0x1d0   : > { %5650 = vmatpush1.bf16.msra.mxu1 %v7805_v35  ;;  %5610 = vmatprep.subr.bf16.mxu0 %v7810_v36  ;;  %v7864_v35 = vld [vmem:[%s8626_s27 + $0x10c] ss:$16 sps:$4 sm:$0xff]  }
 0x1d1   : > { %5651 = vmatprep.subr.bf16.mxu1 %v7813_v38  ;;  %v7867_v36 = vld [vmem:[%s8626_s27 + $0x20c] ss:$16 sps:$4 sm:$0xff]   ;;  %v7862_v38 = vld [vmem:[%s8626_s27 + $0x108] ss:$16 sps:$4 sm:$0xff]  }
 0x1d3   : > { %5611 = vmatpush1.bf16.msra.mxu0 %v7808_v39  ;;  %v7865_v39 = vld [vmem:[%s8626_s27 + $0x208] ss:$16 sps:$4 sm:$0xff]  }
 0x1d4   : > { %5652 = vmatpush1.bf16.msra.mxu1 %v7811_v41  ;;  %5612 = vmatprep.subr.bf16.mxu0 %v7816_v44  ;;  %v7870_v41 = vld [vmem:[%s8626_s27 + $0x3ec] ss:$16 sps:$4 sm:$0xff]  }
 0x1d5   : > { %5653 = vmatprep.subr.bf16.mxu1 %v7819_v45  ;;  %v7873_v44 = vld [vmem:[%s8626_s27 + $0x4ec] ss:$16 sps:$4 sm:$0xff]   ;;  %v7868_v45 = vld [vmem:[%s8626_s27 + $0x3e8] ss:$16 sps:$4 sm:$0xff]  }
 0x1d7   : > { %5613 = vmatpush1.bf16.msra.mxu0 %v7814_v46  ;;  %v7871_v46 = vld [vmem:[%s8626_s27 + $0x4e8] ss:$16 sps:$4 sm:$0xff]  }
 0x1d8   : > { %5654 = vmatpush1.bf16.msra.mxu1 %v7817_v47  ;;  %5680 = vmatprep.subr.bf16.mxu0 %v7825_v58  ;;  %v7876_v47 = vld [vmem:[%s8626_s27 + $0x3cc] ss:$16 sps:$4 sm:$0xff]   ;;  %v7877_v58 = vld [vmem:[%s8626_s27 + $0x4c8] ss:$16 sps:$4 sm:$0xff]  }
 0x1d9   : > { %5655 = vmatprep.subr.bf16.mxu1 %v7822_v55  ;;  %v7874_v55 = vld [vmem:[%s8626_s27 + $0x3c8] ss:$16 sps:$4 sm:$0xff]  }
 0x1da   : > { %5631 = vmatmul.mubr.bf16.vlgmr.msra.gmra.mxu0 %v9167_v61 }
 0x1db   : > { %5681 = vmatpush1.bf16.msra.mxu0 %v7823_v60  ;;  %5712 = vmatprep.mubr.bf16.mxu0 %v8685_v52  ;;  %v7846_v52 = vld [vmem:[%s8626_s27 + $0x16c] ss:$16 sps:$4 sm:$0xff]  }
 0x1dc   : > { %5656 = vmatpush2.bf16.msra.mxu1 %v7820_v59  ;;  %5682 = vmatprep.subr.bf16.mxu0 %v7831_v1 }
 0x1dd   : > { %5657 = vmatprep.subr.bf16.mxu1 %v7828_v0 }
 0x1df   : > { %5683 = vmatpush1.bf16.msra.mxu0 %v7829_v5  ;;  %v7882_v5 = vld [vmem:[%s8626_s27 + $0x3ac] ss:$16 sps:$4 sm:$0xff]  }
 0x1e0   : > { %5658 = vmatpush2.bf16.msra.mxu1 %v7826_v4  ;;  %5684 = vmatprep.subr.bf16.mxu0 %v7837_v12 }
 0x1e1   : > { %5659 = vmatprep.subr.bf16.mxu1 %v7834_v6  ;;  %v7885_v6 = vld [vmem:[%s8626_s27 + $0x4ac] ss:$16 sps:$4 sm:$0xff]  }
 0x1e3   : > { %5685 = vmatpush1.bf16.msra.mxu0 %v7835_v15  ;;  %v7880_v15 = vld [vmem:[%s8626_s27 + $0x3a8] ss:$16 sps:$4 sm:$0xff]  }
 0x1e4   : > { %5660 = vmatpush2.bf16.msra.mxu1 %v7832_v14  ;;  %5686 = vmatprep.subr.bf16.mxu0 %v7843_v16 }
 0x1e5   : > { %5661 = vmatprep.subr.bf16.mxu1 %v7840_v13  ;;  %v7883_v13 = vld [vmem:[%s8626_s27 + $0x4a8] ss:$16 sps:$4 sm:$0xff]  }
 0x1e7   : > { %5687 = vmatpush1.bf16.msra.mxu0 %v7841_v19 }
 0x1e8   : > { %5662 = vmatpush2.bf16.msra.mxu1 %v7838_v22  ;;  %5688 = vmatprep.subr.bf16.mxu0 %v7849_v24  ;;  %v7889_v24 = vld [vmem:[%s8626_s27 + $0x488] ss:$16 sps:$4 sm:$0xff]  }
 0x1e9   : > { %5663 = vmatprep.subr.bf16.mxu1 %v7846_v52  ;;  %v7891_v52 = vld [vmem:[%s8626_s27 + $0x48c] ss:$16 sps:$4 sm:$0xff]  }
 0x1eb   : > { %5689 = vmatpush1.bf16.msra.mxu0 %v7847_v49  ;;  %v7897_v49 = vld [vmem:[%s8626_s27 + $0x46c] ss:$16 sps:$4 sm:$0xff]  }
 0x1ec   : > { %5664 = vmatpush2.bf16.msra.mxu1 %v7844_v23  ;;  %5690 = vmatprep.subr.bf16.mxu0 %v7855_v26  ;;  %v7894_v23 = vld [vmem:[%s8626_s27 + $0x36c] ss:$16 sps:$4 sm:$0xff]   ;;  %v7895_v26 = vld [vmem:[%s8626_s27 + $0x468] ss:$16 sps:$4 sm:$0xff]  }
 0x1ed   : > { %5665 = vmatprep.subr.bf16.mxu1 %v7852_v25  ;;  %v7892_v25 = vld [vmem:[%s8626_s27 + $0x368] ss:$16 sps:$4 sm:$0xff]  }
 0x1ef   : > { %5691 = vmatpush1.bf16.msra.mxu0 %v7853_v28  ;;  %v7903_v28 = vld [vmem:[%s8626_s27 + $0x44c] ss:$16 sps:$4 sm:$0xff]  }
 0x1f0   : > { %5666 = vmatpush2.bf16.msra.mxu1 %v7850_v27  ;;  %5692 = vmatprep.subr.bf16.mxu0 %v7861_v31  ;;  %v7900_v27 = vld [vmem:[%s8626_s27 + $0x34c] ss:$16 sps:$4 sm:$0xff]   ;;  %v7901_v31 = vld [vmem:[%s8626_s27 + $0x448] ss:$16 sps:$4 sm:$0xff]  }
 0x1f1   : > { %5667 = vmatprep.subr.bf16.mxu1 %v7858_v30  ;;  %v7898_v30 = vld [vmem:[%s8626_s27 + $0x348] ss:$16 sps:$4 sm:$0xff]  }
 0x1f3   : > { %5693 = vmatpush1.bf16.msra.mxu0 %v7859_v34  ;;  %v7909_v34 = vld [vmem:[%s8626_s27 + $0x42c] ss:$16 sps:$4 sm:$0xff]  }
 0x1f4   : > { %5668 = vmatpush2.bf16.msra.mxu1 %v7856_v33  ;;  %5694 = vmatprep.subr.bf16.mxu0 %v7867_v36  ;;  %v7906_v33 = vld [vmem:[%s8626_s27 + $0x32c] ss:$16 sps:$4 sm:$0xff]   ;;  %v7907_v36 = vld [vmem:[%s8626_s27 + $0x428] ss:$16 sps:$4 sm:$0xff]  }
 0x1f5   : > { %5669 = vmatprep.subr.bf16.mxu1 %v7864_v35  ;;  %v7904_v35 = vld [vmem:[%s8626_s27 + $0x328] ss:$16 sps:$4 sm:$0xff]  }
 0x1f7   : > { %5695 = vmatpush1.bf16.msra.mxu0 %v7865_v39  ;;  %v7915_v39 = vld [vmem:[%s8626_s27 + $0x40c] ss:$16 sps:$4 sm:$0xff]  }
 0x1f8   : > { %5670 = vmatpush2.bf16.msra.mxu1 %v7862_v38  ;;  %5696 = vmatprep.subr.bf16.mxu0 %v7870_v41  ;;  %v7912_v38 = vld [vmem:[%s8626_s27 + $0x30c] ss:$16 sps:$4 sm:$0xff]   ;;  %v7910_v41 = vld [vmem:[%s8626_s27 + $0x308] ss:$16 sps:$4 sm:$0xff]  }
 0x1f9   : > { %5721 = vmatprep.subr.bf16.mxu1 %v7873_v44  ;;  %v7913_v44 = vld [vmem:[%s8626_s27 + $0x408] ss:$16 sps:$4 sm:$0xff]  }
 0x1fa   : > { %v5386_v59 = vpop.f32.mrf.mxu0 }
 0x1fb   : > { %v5427_v60 = vpop.f32.mrf.mxu1  ;;  %5672 = vmatmul.mubr.bf16.vlgmr.msra.gmra.mxu1 %v8708_v8  ;;  %v5387_v0 = vadd.f32 %v5386_v59, %v9133_v7  ;;  %5697 = vmatpush2.bf16.msra.mxu0 %v7868_v45  ;;  %v7918_v45 = vld [vmem:[%s8626_s27 + $0x5ec] ss:$16 sps:$4 sm:$0xff]   ;;  %v7922_v59 = vld [vmem:[%s8626_s27 + $0x5c8] ss:$16 sps:$4 sm:$0xff]  }
 0x1fc   : > { %5722 = vmatpush1.bf16.msra.mxu1 %v7871_v46  ;;  %v5388_v1 = vpop.f32.mrf.mxu0  ;;  %5698 = vmatprep.subr.bf16.mxu0 %v7876_v47  ;;  %v7921_v46 = vld [vmem:[%s8626_s27 + $0x6ec] ss:$16 sps:$4 sm:$0xff]   ;;  %v7916_v47 = vld [vmem:[%s8626_s27 + $0x5e8] ss:$16 sps:$4 sm:$0xff]  }
 0x1fd   : > { %v5429_v4 = vpop.f32.mrf.mxu1  ;;  %5723 = vmatprep.subr.bf16.mxu1 %v7879_v54  ;;  %v9211_v12 = vadd.f32 %v5427_v60, %v5387_v0  ;;  %v5389_v14 = vadd.f32 %v5388_v1, %v9140_v18  ;;  %5753 = vmatprep.mubr.bf16.mxu1 %v8741_v37  ;;  %v7888_v18 = vld [vmem:[%s8626_s27 + $0x38c] ss:$16 sps:$4 sm:$0xff]   ;;  %v7886_v37 = vld [vmem:[%s8626_s27 + $0x388] ss:$16 sps:$4 sm:$0xff]  }
 0x1fe   : > { %v5390_v8 = vpop.f32.mrf.mxu0  ;;  %v7919_v54 = vld [vmem:[%s8626_s27 + $0x6e8] ss:$16 sps:$4 sm:$0xff]   ;;  %v7930_v0 = vld [vmem:[%s8626_s27 + $0x5ac] ss:$16 sps:$4 sm:$0xff]  }
 0x1ff   : > { %v5431_v7 = vpop.f32.mrf.mxu1  ;;  %v9217_v16 = vadd.f32 %v5429_v4, %v5389_v14  ;;  %5699 = vmatpush2.bf16.msra.mxu0 %v7874_v55  ;;  %v7924_v55 = vld [vmem:[%s8626_s27 + $0x5cc] ss:$16 sps:$4 sm:$0xff]   ;;  %v7925_v60 = vld [vmem:[%s8626_s27 + $0x6c8] ss:$16 sps:$4 sm:$0xff]  }
 0x200   : > { %5724 = vmatpush1.bf16.msra.mxu1 %v7877_v58  ;;  %v5391_v22 = vpop.f32.mrf.mxu0  ;;  %5700 = vmatprep.subr.bf16.mxu0 %v7882_v5  ;;  %v7927_v58 = vld [vmem:[%s8626_s27 + $0x6cc] ss:$16 sps:$4 sm:$0xff]   ;;  %v7928_v4 = vld [vmem:[%s8626_s27 + $0x5a8] ss:$16 sps:$4 sm:$0xff]  }
 0x201   : > { %v5432_v19 = vpop.f32.mrf.mxu1  ;;  %5725 = vmatprep.subr.bf16.mxu1 %v7885_v6  ;;  %v7933_v1 = vld [vmem:[%s8626_s27 + $0x6ac] ss:$16 sps:$4 sm:$0xff]   ;;  %v7934_v14 = vld [vmem:[%s8626_s27 + $0x588] ss:$16 sps:$4 sm:$0xff]  }
 0x202   : > { %v7936_v5 = vld [vmem:[%s8626_s27 + $0x58c] ss:$16 sps:$4 sm:$0xff]   ;;  %v7940_v8 = vld [vmem:[%s8626_s27 + $0x568] ss:$16 sps:$4 sm:$0xff]  }
 0x203   : > { %5701 = vmatpush2.bf16.msra.mxu0 %v7880_v15  ;;  %v7939_v6 = vld [vmem:[%s8626_s27 + $0x68c] ss:$16 sps:$4 sm:$0xff]   ;;  %v7937_v15 = vld [vmem:[%s8626_s27 + $0x688] ss:$16 sps:$4 sm:$0xff]  }
 0x204   : > { %5726 = vmatpush1.bf16.msra.mxu1 %v7883_v13  ;;  %5702 = vmatprep.subr.bf16.mxu0 %v7888_v18  ;;  %v7945_v13 = vld [vmem:[%s8626_s27 + $0x66c] ss:$16 sps:$4 sm:$0xff]   ;;  %v7943_v7 = vld [vmem:[%s8626_s27 + $0x668] ss:$16 sps:$4 sm:$0xff]  }
 0x205   : > { %5727 = vmatprep.subr.bf16.mxu1 %v7891_v52  ;;  %v7948_v22 = vld [vmem:[%s8626_s27 + $0x54c] ss:$16 sps:$4 sm:$0xff]   ;;  %v7946_v18 = vld [vmem:[%s8626_s27 + $0x548] ss:$16 sps:$4 sm:$0xff]  }
 0x206   : > { %v7951_v19 = vld [vmem:[%s8626_s27 + $0x64c] ss:$16 sps:$4 sm:$0xff]   ;;  %v7949_v52 = vld [vmem:[%s8626_s27 + $0x648] ss:$16 sps:$4 sm:$0xff]  }
 0x207   : > { %5703 = vmatpush2.bf16.msra.mxu0 %v7886_v37  ;;  %v7954_v37 = vld [vmem:[%s8626_s27 + $0x52c] ss:$16 sps:$4 sm:$0xff]  }
 0x208   : > { %5728 = vmatpush1.bf16.msra.mxu1 %v7889_v24  ;;  %5704 = vmatprep.subr.bf16.mxu0 %v7894_v23  ;;  %v7957_v24 = vld [vmem:[%s8626_s27 + $0x62c] ss:$16 sps:$4 sm:$0xff]   ;;  %v7952_v23 = vld [vmem:[%s8626_s27 + $0x528] ss:$16 sps:$4 sm:$0xff]  }
 0x209   : > { %5729 = vmatprep.subr.bf16.mxu1 %v7897_v49  ;;  %v7955_v49 = vld [vmem:[%s8626_s27 + $0x628] ss:$16 sps:$4 sm:$0xff]  }
 0x20b   : > { %5705 = vmatpush2.bf16.msra.mxu0 %v7892_v25  ;;  %v7960_v25 = vld [vmem:[%s8626_s27 + $0x50c] ss:$16 sps:$4 sm:$0xff]  }
 0x20c   : > { %5730 = vmatpush1.bf16.msra.mxu1 %v7895_v26  ;;  %5706 = vmatprep.subr.bf16.mxu0 %v7900_v27  ;;  %v7963_v26 = vld [vmem:[%s8626_s27 + $0x60c] ss:$16 sps:$4 sm:$0xff]   ;;  %v7958_v27 = vld [vmem:[%s8626_s27 + $0x508] ss:$16 sps:$4 sm:$0xff]  }
 0x20d   : > { %5731 = vmatprep.subr.bf16.mxu1 %v7903_v28  ;;  %v7961_v28 = vld [vmem:[%s8626_s27 + $0x608] ss:$16 sps:$4 sm:$0xff]  }
 0x20f   : > { %5707 = vmatpush2.bf16.msra.mxu0 %v7898_v30  ;;  %v7966_v30 = vld [vmem:[%s8626_s27 + $0x7ec] ss:$16 sps:$4 sm:$0xff]  }
 0x210   : > { %5732 = vmatpush1.bf16.msra.mxu1 %v7901_v31  ;;  %5708 = vmatprep.subr.bf16.mxu0 %v7906_v33  ;;  %v7969_v31 = vld [vmem:[%s8626_s27 + $0x8ec] ss:$16 sps:$4 sm:$0xff]   ;;  %v7964_v33 = vld [vmem:[%s8626_s27 + $0x7e8] ss:$16 sps:$4 sm:$0xff]  }
 0x211   : > { %5733 = vmatprep.subr.bf16.mxu1 %v7909_v34  ;;  %v7967_v34 = vld [vmem:[%s8626_s27 + $0x8e8] ss:$16 sps:$4 sm:$0xff]  }
 0x213   : > { %5709 = vmatpush2.bf16.msra.mxu0 %v7904_v35  ;;  %v7972_v35 = vld [vmem:[%s8626_s27 + $0x7cc] ss:$16 sps:$4 sm:$0xff]  }
 0x214   : > { %5734 = vmatpush1.bf16.msra.mxu1 %v7907_v36  ;;  %5710 = vmatprep.subr.bf16.mxu0 %v7912_v38  ;;  %v7975_v36 = vld [vmem:[%s8626_s27 + $0x8cc] ss:$16 sps:$4 sm:$0xff]  }
 0x215   : > { %5735 = vmatprep.subr.bf16.mxu1 %v7915_v39 }
 0x217   : > { %5711 = vmatpush2.bf16.msra.mxu0 %v7910_v41 }
 0x218   : > { %5736 = vmatpush1.bf16.msra.mxu1 %v7913_v44  ;;  %5762 = vmatprep.subr.bf16.mxu0 %v7921_v46  ;;  %v7970_v44 = vld [vmem:[%s8626_s27 + $0x7c8] ss:$16 sps:$4 sm:$0xff]  }
 0x219   : > { %5737 = vmatprep.subr.bf16.mxu1 %v7918_v45  ;;  %v7973_v45 = vld [vmem:[%s8626_s27 + $0x8c8] ss:$16 sps:$4 sm:$0xff]  }
 0x21a   : > { %5713 = vmatmul.mubr.bf16.vlgmr.msra.gmra.mxu0 %v8710_v9  ;;  %v7931_v9 = vld [vmem:[%s8626_s27 + $0x6a8] ss:$16 sps:$4 sm:$0xff]  }
 0x21b   : > { %5763 = vmatpush1.bf16.msra.mxu0 %v7919_v54  ;;  %5794 = vmatprep.mubr.bf16.mxu0 %v8745_v40  ;;  %v7942_v40 = vld [vmem:[%s8626_s27 + $0x56c] ss:$16 sps:$4 sm:$0xff]  }
 0x21c   : > { %5738 = vmatpush2.bf16.msra.mxu1 %v7916_v47  ;;  %5764 = vmatprep.subr.bf16.mxu0 %v7927_v58  ;;  %v7978_v54 = vld [vmem:[%s8626_s27 + $0x7ac] ss:$16 sps:$4 sm:$0xff]  }
 0x21d   : > { %5739 = vmatprep.subr.bf16.mxu1 %v7924_v55  ;;  %v7981_v55 = vld [vmem:[%s8626_s27 + $0x8ac] ss:$16 sps:$4 sm:$0xff]  }
 0x21f   : > { %5765 = vmatpush1.bf16.msra.mxu0 %v7925_v60 }
 0x220   : > { %5740 = vmatpush2.bf16.msra.mxu1 %v7922_v59  ;;  %5766 = vmatprep.subr.bf16.mxu0 %v7933_v1  ;;  %v7979_v1 = vld [vmem:[%s8626_s27 + $0x8a8] ss:$16 sps:$4 sm:$0xff]  }
 0x221   : > { %5741 = vmatprep.subr.bf16.mxu1 %v7930_v0  ;;  %v7976_v0 = vld [vmem:[%s8626_s27 + $0x7a8] ss:$16 sps:$4 sm:$0xff]  }
 0x223   : > { %5767 = vmatpush1.bf16.msra.mxu0 %v7931_v9 }
 0x224   : > { %5742 = vmatpush2.bf16.msra.mxu1 %v7928_v4  ;;  %5768 = vmatprep.subr.bf16.mxu0 %v7939_v6  ;;  %v7985_v6 = vld [vmem:[%s8626_s27 + $0x888] ss:$16 sps:$4 sm:$0xff]  }
 0x225   : > { %5743 = vmatprep.subr.bf16.mxu1 %v7936_v5  ;;  %v7982_v5 = vld [vmem:[%s8626_s27 + $0x788] ss:$16 sps:$4 sm:$0xff]  }
 0x227   : > { %5769 = vmatpush1.bf16.msra.mxu0 %v7937_v15  ;;  %v7993_v15 = vld [vmem:[%s8626_s27 + $0x86c] ss:$16 sps:$4 sm:$0xff]  }
 0x228   : > { %5744 = vmatpush2.bf16.msra.mxu1 %v7934_v14  ;;  %5770 = vmatprep.subr.bf16.mxu0 %v7945_v13  ;;  %v7990_v14 = vld [vmem:[%s8626_s27 + $0x76c] ss:$16 sps:$4 sm:$0xff]   ;;  %v7991_v13 = vld [vmem:[%s8626_s27 + $0x868] ss:$16 sps:$4 sm:$0xff]  }
 0x229   : > { %5745 = vmatprep.subr.bf16.mxu1 %v7942_v40  ;;  %v7988_v40 = vld [vmem:[%s8626_s27 + $0x768] ss:$16 sps:$4 sm:$0xff]  }
 0x22b   : > { %5771 = vmatpush1.bf16.msra.mxu0 %v7943_v7  ;;  %v7999_v7 = vld [vmem:[%s8626_s27 + $0x84c] ss:$16 sps:$4 sm:$0xff]  }
 0x22c   : > { %5746 = vmatpush2.bf16.msra.mxu1 %v7940_v8  ;;  %5772 = vmatprep.subr.bf16.mxu0 %v7951_v19  ;;  %v7996_v8 = vld [vmem:[%s8626_s27 + $0x74c] ss:$16 sps:$4 sm:$0xff]   ;;  %v7997_v19 = vld [vmem:[%s8626_s27 + $0x848] ss:$16 sps:$4 sm:$0xff]  }
 0x22d   : > { %5747 = vmatprep.subr.bf16.mxu1 %v7948_v22  ;;  %v7994_v22 = vld [vmem:[%s8626_s27 + $0x748] ss:$16 sps:$4 sm:$0xff]  }
 0x22f   : > { %5773 = vmatpush1.bf16.msra.mxu0 %v7949_v52  ;;  %v8005_v52 = vld [vmem:[%s8626_s27 + $0x82c] ss:$16 sps:$4 sm:$0xff]  }
 0x230   : > { %5748 = vmatpush2.bf16.msra.mxu1 %v7946_v18  ;;  %5774 = vmatprep.subr.bf16.mxu0 %v7957_v24  ;;  %v8002_v18 = vld [vmem:[%s8626_s27 + $0x72c] ss:$16 sps:$4 sm:$0xff]   ;;  %v8003_v24 = vld [vmem:[%s8626_s27 + $0x828] ss:$16 sps:$4 sm:$0xff]  }
 0x231   : > { %5749 = vmatprep.subr.bf16.mxu1 %v7954_v37  ;;  %v8000_v37 = vld [vmem:[%s8626_s27 + $0x728] ss:$16 sps:$4 sm:$0xff]  }
 0x233   : > { %5775 = vmatpush1.bf16.msra.mxu0 %v7955_v49  ;;  %v8011_v49 = vld [vmem:[%s8626_s27 + $0x80c] ss:$16 sps:$4 sm:$0xff]  }
 0x234   : > { %5750 = vmatpush2.bf16.msra.mxu1 %v7952_v23  ;;  %5776 = vmatprep.subr.bf16.mxu0 %v7963_v26  ;;  %v8008_v23 = vld [vmem:[%s8626_s27 + $0x70c] ss:$16 sps:$4 sm:$0xff]   ;;  %v8009_v26 = vld [vmem:[%s8626_s27 + $0x808] ss:$16 sps:$4 sm:$0xff]  }
 0x235   : > { %5751 = vmatprep.subr.bf16.mxu1 %v7960_v25  ;;  %v8006_v25 = vld [vmem:[%s8626_s27 + $0x708] ss:$16 sps:$4 sm:$0xff]  }
 0x237   : > { %5777 = vmatpush1.bf16.msra.mxu0 %v7961_v28  ;;  %v8017_v28 = vld [vmem:[%s8626_s27 + $0xaec] ss:$16 sps:$4 sm:$0xff]  }
 0x238   : > { %5752 = vmatpush2.bf16.msra.mxu1 %v7958_v27  ;;  %5778 = vmatprep.subr.bf16.mxu0 %v7966_v30  ;;  %v8014_v27 = vld [vmem:[%s8626_s27 + $0x9ec] ss:$16 sps:$4 sm:$0xff]   ;;  %v8012_v30 = vld [vmem:[%s8626_s27 + $0x9e8] ss:$16 sps:$4 sm:$0xff]  }
 0x239   : > { %5803 = vmatprep.subr.bf16.mxu1 %v7969_v31  ;;  %v8015_v31 = vld [vmem:[%s8626_s27 + $0xae8] ss:$16 sps:$4 sm:$0xff]  }
 0x23a   : > { %v5468_v38 = vpop.f32.mrf.mxu0 }
 0x23b   : > { %v5509_v39 = vpop.f32.mrf.mxu1  ;;  %5754 = vmatmul.mubr.bf16.vlgmr.msra.gmra.mxu1 %v8788_v20  ;;  %v5469_v41 = vadd.f32 %v5468_v38, %v9211_v12  ;;  %5779 = vmatpush2.bf16.msra.mxu0 %v7964_v33  ;;  %v8020_v33 = vld [vmem:[%s8626_s27 + $0x9cc] ss:$16 sps:$4 sm:$0xff]  }
 0x23c   : > { %5804 = vmatpush1.bf16.msra.mxu1 %v7967_v34  ;;  %v5470_v46 = vpop.f32.mrf.mxu0  ;;  %5780 = vmatprep.subr.bf16.mxu0 %v7972_v35  ;;  %v8023_v34 = vld [vmem:[%s8626_s27 + $0xacc] ss:$16 sps:$4 sm:$0xff]   ;;  %v8018_v35 = vld [vmem:[%s8626_s27 + $0x9c8] ss:$16 sps:$4 sm:$0xff]  }
 0x23d   : > { %v5511_v47 = vpop.f32.mrf.mxu1  ;;  %5805 = vmatprep.subr.bf16.mxu1 %v7975_v36  ;;  %v9285_v58 = vadd.f32 %v5509_v39, %v5469_v41  ;;  %v5471_v20 = vadd.f32 %v5470_v46, %v9217_v16  ;;  %5835 = vmatprep.mubr.bf16.mxu1 %v8801_v29  ;;  %v7984_v16 = vld [vmem:[%s8626_s27 + $0x78c] ss:$16 sps:$4 sm:$0xff]   ;;  %v8021_v36 = vld [vmem:[%s8626_s27 + $0xac8] ss:$16 sps:$4 sm:$0xff]  }
 0x23e   : > { %v5472_v12 = vpop.f32.mrf.mxu0  ;;  %v7987_v29 = vld [vmem:[%s8626_s27 + $0x88c] ss:$16 sps:$4 sm:$0xff]   ;;  %v8024_v41 = vld [vmem:[%s8626_s27 + $0x9a8] ss:$16 sps:$4 sm:$0xff]  }
 0x23f   : > { %v5513_v59 = vpop.f32.mrf.mxu1  ;;  %v9289_v60 = vadd.f32 %v5511_v47, %v5471_v20  ;;  %5781 = vmatpush2.bf16.msra.mxu0 %v7970_v44  ;;  %v8026_v38 = vld [vmem:[%s8626_s27 + $0x9ac] ss:$16 sps:$4 sm:$0xff]   ;;  %v8030_v46 = vld [vmem:[%s8626_s27 + $0x988] ss:$16 sps:$4 sm:$0xff]  }
 0x240   : > { %5806 = vmatpush1.bf16.msra.mxu1 %v7973_v45  ;;  %v5473_v4 = vpop.f32.mrf.mxu0  ;;  %5782 = vmatprep.subr.bf16.mxu0 %v7978_v54  ;;  %v8029_v39 = vld [vmem:[%s8626_s27 + $0xaac] ss:$16 sps:$4 sm:$0xff]   ;;  %v8033_v47 = vld [vmem:[%s8626_s27 + $0xa88] ss:$16 sps:$4 sm:$0xff]  }
 0x241   : > { %v5514_v9 = vpop.f32.mrf.mxu1  ;;  %5807 = vmatprep.subr.bf16.mxu1 %v7981_v55  ;;  %v8032_v44 = vld [vmem:[%s8626_s27 + $0x98c] ss:$16 sps:$4 sm:$0xff]   ;;  %v8036_v55 = vld [vmem:[%s8626_s27 + $0x968] ss:$16 sps:$4 sm:$0xff]  }
 0x242   : > { %v8035_v45 = vld [vmem:[%s8626_s27 + $0xa8c] ss:$16 sps:$4 sm:$0xff]   ;;  %v8039_v20 = vld [vmem:[%s8626_s27 + $0xa68] ss:$16 sps:$4 sm:$0xff]  }
 0x243   : > { %5783 = vmatpush2.bf16.msra.mxu0 %v7976_v0  ;;  %v8041_v54 = vld [vmem:[%s8626_s27 + $0xa6c] ss:$16 sps:$4 sm:$0xff]   ;;  %v8042_v0 = vld [vmem:[%s8626_s27 + $0x948] ss:$16 sps:$4 sm:$0xff]  }
 0x244   : > { %5808 = vmatpush1.bf16.msra.mxu1 %v7979_v1  ;;  %5784 = vmatprep.subr.bf16.mxu0 %v7984_v16  ;;  %v8044_v12 = vld [vmem:[%s8626_s27 + $0x94c] ss:$16 sps:$4 sm:$0xff]   ;;  %v8045_v1 = vld [vmem:[%s8626_s27 + $0xa48] ss:$16 sps:$4 sm:$0xff]  }
 0x245   : > { %5809 = vmatprep.subr.bf16.mxu1 %v7987_v29  ;;  %v8047_v59 = vld [vmem:[%s8626_s27 + $0xa4c] ss:$16 sps:$4 sm:$0xff]   ;;  %v8048_v16 = vld [vmem:[%s8626_s27 + $0x928] ss:$16 sps:$4 sm:$0xff]  }
 0x246   : > { %v8050_v4 = vld [vmem:[%s8626_s27 + $0x92c] ss:$16 sps:$4 sm:$0xff]   ;;  %v8051_v29 = vld [vmem:[%s8626_s27 + $0xa28] ss:$16 sps:$4 sm:$0xff]  }
 0x247   : > { %5785 = vmatpush2.bf16.msra.mxu0 %v7982_v5  ;;  %v8053_v9 = vld [vmem:[%s8626_s27 + $0xa2c] ss:$16 sps:$4 sm:$0xff]  }
 0x248   : > { %5810 = vmatpush1.bf16.msra.mxu1 %v7985_v6  ;;  %5786 = vmatprep.subr.bf16.mxu0 %v7990_v14  ;;  %v8056_v5 = vld [vmem:[%s8626_s27 + $0x90c] ss:$16 sps:$4 sm:$0xff]   ;;  %v8054_v14 = vld [vmem:[%s8626_s27 + $0x908] ss:$16 sps:$4 sm:$0xff]  }
 0x249   : > { %5811 = vmatprep.subr.bf16.mxu1 %v7993_v15  ;;  %v8059_v6 = vld [vmem:[%s8626_s27 + $0xa0c] ss:$16 sps:$4 sm:$0xff]   ;;  %v8057_v15 = vld [vmem:[%s8626_s27 + $0xa08] ss:$16 sps:$4 sm:$0xff]  }
 0x24b   : > { %5787 = vmatpush2.bf16.msra.mxu0 %v7988_v40  ;;  %v8062_v40 = vld [vmem:[%s8626_s27 + $0xbec] ss:$16 sps:$4 sm:$0xff]  }
 0x24c   : > { %5812 = vmatpush1.bf16.msra.mxu1 %v7991_v13  ;;  %5788 = vmatprep.subr.bf16.mxu0 %v7996_v8  ;;  %v8065_v13 = vld [vmem:[%s8626_s27 + $0xcec] ss:$16 sps:$4 sm:$0xff]   ;;  %v8060_v8 = vld [vmem:[%s8626_s27 + $0xbe8] ss:$16 sps:$4 sm:$0xff]  }
 0x24d   : > { %5813 = vmatprep.subr.bf16.mxu1 %v7999_v7  ;;  %v8063_v7 = vld [vmem:[%s8626_s27 + $0xce8] ss:$16 sps:$4 sm:$0xff]  }
 0x24f   : > { %5789 = vmatpush2.bf16.msra.mxu0 %v7994_v22  ;;  %v8068_v22 = vld [vmem:[%s8626_s27 + $0xbcc] ss:$16 sps:$4 sm:$0xff]  }
 0x250   : > { %5814 = vmatpush1.bf16.msra.mxu1 %v7997_v19  ;;  %5790 = vmatprep.subr.bf16.mxu0 %v8002_v18  ;;  %v8071_v19 = vld [vmem:[%s8626_s27 + $0xccc] ss:$16 sps:$4 sm:$0xff]  }
 0x251   : > { %5815 = vmatprep.subr.bf16.mxu1 %v8005_v52 }
 0x253   : > { %5791 = vmatpush2.bf16.msra.mxu0 %v8000_v37  ;;  %v8066_v37 = vld [vmem:[%s8626_s27 + $0xbc8] ss:$16 sps:$4 sm:$0xff]  }
 0x254   : > { %5816 = vmatpush1.bf16.msra.mxu1 %v8003_v24  ;;  %5792 = vmatprep.subr.bf16.mxu0 %v8008_v23  ;;  %v8069_v24 = vld [vmem:[%s8626_s27 + $0xcc8] ss:$16 sps:$4 sm:$0xff]  }
 0x255   : > { %5817 = vmatprep.subr.bf16.mxu1 %v8011_v49 }
 0x257   : > { %5793 = vmatpush2.bf16.msra.mxu0 %v8006_v25  ;;  %v8074_v25 = vld [vmem:[%s8626_s27 + $0xbac] ss:$16 sps:$4 sm:$0xff]  }
 0x258   : > { %5818 = vmatpush1.bf16.msra.mxu1 %v8009_v26  ;;  %5844 = vmatprep.subr.bf16.mxu0 %v8017_v28  ;;  %v8077_v26 = vld [vmem:[%s8626_s27 + $0xcac] ss:$16 sps:$4 sm:$0xff]   ;;  %v8072_v28 = vld [vmem:[%s8626_s27 + $0xba8] ss:$16 sps:$4 sm:$0xff]  }
 0x259   : > { %5819 = vmatprep.subr.bf16.mxu1 %v8014_v27 }
 0x25a   : > { %5795 = vmatmul.mubr.bf16.vlgmr.msra.gmra.mxu0 %v8790_v21  ;;  %v8027_v21 = vld [vmem:[%s8626_s27 + $0xaa8] ss:$16 sps:$4 sm:$0xff]  }
 0x25b   : > { %5845 = vmatpush1.bf16.msra.mxu0 %v8015_v31  ;;  %5876 = vmatprep.mubr.bf16.mxu0 %v8805_v32  ;;  %v8038_v32 = vld [vmem:[%s8626_s27 + $0x96c] ss:$16 sps:$4 sm:$0xff]  }
 0x25c   : > { %5820 = vmatpush2.bf16.msra.mxu1 %v8012_v30  ;;  %5846 = vmatprep.subr.bf16.mxu0 %v8023_v34  ;;  %v8075_v30 = vld [vmem:[%s8626_s27 + $0xca8] ss:$16 sps:$4 sm:$0xff]   ;;  %v8080_v34 = vld [vmem:[%s8626_s27 + $0xb8c] ss:$16 sps:$4 sm:$0xff]  }
 0x25d   : > { %5821 = vmatprep.subr.bf16.mxu1 %v8020_v33 }
 0x25f   : > { %5847 = vmatpush1.bf16.msra.mxu0 %v8021_v36  ;;  %v8081_v36 = vld [vmem:[%s8626_s27 + $0xc88] ss:$16 sps:$4 sm:$0xff]  }
 0x260   : > { %5822 = vmatpush2.bf16.msra.mxu1 %v8018_v35  ;;  %5848 = vmatprep.subr.bf16.mxu0 %v8029_v39  ;;  %v8083_v35 = vld [vmem:[%s8626_s27 + $0xc8c] ss:$16 sps:$4 sm:$0xff]  }
 0x261   : > { %5823 = vmatprep.subr.bf16.mxu1 %v8026_v38  ;;  %v8086_v38 = vld [vmem:[%s8626_s27 + $0xb6c] ss:$16 sps:$4 sm:$0xff]  }
 0x262   : > { %v8089_v39 = vld [vmem:[%s8626_s27 + $0xc6c] ss:$16 sps:$4 sm:$0xff]  }
 0x263   : > { %5849 = vmatpush1.bf16.msra.mxu0 %v8027_v21  ;;  %v8087_v21 = vld [vmem:[%s8626_s27 + $0xc68] ss:$16 sps:$4 sm:$0xff]  }
 0x264   : > { %5824 = vmatpush2.bf16.msra.mxu1 %v8024_v41  ;;  %5850 = vmatprep.subr.bf16.mxu0 %v8035_v45  ;;  %v8084_v41 = vld [vmem:[%s8626_s27 + $0xb68] ss:$16 sps:$4 sm:$0xff]   ;;  %v8095_v45 = vld [vmem:[%s8626_s27 + $0xc4c] ss:$16 sps:$4 sm:$0xff]  }
 0x265   : > { %5825 = vmatprep.subr.bf16.mxu1 %v8032_v44  ;;  %v8092_v44 = vld [vmem:[%s8626_s27 + $0xb4c] ss:$16 sps:$4 sm:$0xff]  }
 0x267   : > { %5851 = vmatpush1.bf16.msra.mxu0 %v8033_v47  ;;  %v8093_v47 = vld [vmem:[%s8626_s27 + $0xc48] ss:$16 sps:$4 sm:$0xff]  }
 0x268   : > { %5826 = vmatpush2.bf16.msra.mxu1 %v8030_v46  ;;  %5852 = vmatprep.subr.bf16.mxu0 %v8041_v54  ;;  %v8090_v46 = vld [vmem:[%s8626_s27 + $0xb48] ss:$16 sps:$4 sm:$0xff]   ;;  %v8101_v54 = vld [vmem:[%s8626_s27 + $0xc2c] ss:$16 sps:$4 sm:$0xff]  }
 0x269   : > { %5827 = vmatprep.subr.bf16.mxu1 %v8038_v32  ;;  %v8098_v32 = vld [vmem:[%s8626_s27 + $0xb2c] ss:$16 sps:$4 sm:$0xff]  }
 0x26b   : > { %5853 = vmatpush1.bf16.msra.mxu0 %v8039_v20  ;;  %v8099_v20 = vld [vmem:[%s8626_s27 + $0xc28] ss:$16 sps:$4 sm:$0xff]  }
 0x26c   : > { %5828 = vmatpush2.bf16.msra.mxu1 %v8036_v55  ;;  %5854 = vmatprep.subr.bf16.mxu0 %v8047_v59  ;;  %v8096_v55 = vld [vmem:[%s8626_s27 + $0xb28] ss:$16 sps:$4 sm:$0xff]   ;;  %v8107_v59 = vld [vmem:[%s8626_s27 + $0xc0c] ss:$16 sps:$4 sm:$0xff]  }
 0x26d   : > { %5829 = vmatprep.subr.bf16.mxu1 %v8044_v12  ;;  %v8104_v12 = vld [vmem:[%s8626_s27 + $0xb0c] ss:$16 sps:$4 sm:$0xff]  }
 0x26f   : > { %5855 = vmatpush1.bf16.msra.mxu0 %v8045_v1  ;;  %v8105_v1 = vld [vmem:[%s8626_s27 + $0xc08] ss:$16 sps:$4 sm:$0xff]  }
 0x270   : > { %5830 = vmatpush2.bf16.msra.mxu1 %v8042_v0  ;;  %5856 = vmatprep.subr.bf16.mxu0 %v8053_v9  ;;  %v8102_v0 = vld [vmem:[%s8626_s27 + $0xb08] ss:$16 sps:$4 sm:$0xff]   ;;  %v8113_v9 = vld [vmem:[%s8626_s27 + $0xeec] ss:$16 sps:$4 sm:$0xff]  }
 0x271   : > { %5831 = vmatprep.subr.bf16.mxu1 %v8050_v4  ;;  %v8110_v4 = vld [vmem:[%s8626_s27 + $0xdec] ss:$16 sps:$4 sm:$0xff]  }
 0x273   : > { %5857 = vmatpush1.bf16.msra.mxu0 %v8051_v29 }
 0x274   : > { %5832 = vmatpush2.bf16.msra.mxu1 %v8048_v16  ;;  %5858 = vmatprep.subr.bf16.mxu0 %v8059_v6  ;;  %v8111_v6 = vld [vmem:[%s8626_s27 + $0xee8] ss:$16 sps:$4 sm:$0xff]  }
 0x275   : > { %5833 = vmatprep.subr.bf16.mxu1 %v8056_v5  ;;  %v8108_v5 = vld [vmem:[%s8626_s27 + $0xde8] ss:$16 sps:$4 sm:$0xff]  }
 0x277   : > { %5859 = vmatpush1.bf16.msra.mxu0 %v8057_v15  ;;  %v8119_v15 = vld [vmem:[%s8626_s27 + $0xecc] ss:$16 sps:$4 sm:$0xff]  }
 0x278   : > { %5834 = vmatpush2.bf16.msra.mxu1 %v8054_v14  ;;  %5860 = vmatprep.subr.bf16.mxu0 %v8062_v40  ;;  %v8116_v14 = vld [vmem:[%s8626_s27 + $0xdcc] ss:$16 sps:$4 sm:$0xff]  }
 0x279   : > { %5885 = vmatprep.subr.bf16.mxu1 %v8065_v13 }
 0x27a   : > { %v9353_v18 = vpop.f32.mrf.mxu0 }
 0x27b   : > { %v9355_v52 = vpop.f32.mrf.mxu1  ;;  %5836 = vmatmul.mubr.bf16.vlgmr.msra.gmra.mxu1 %v8870_v42  ;;  %5861 = vmatpush2.bf16.msra.mxu0 %v8060_v8  ;;  %v5551_v16 = vadd.f32 %v9353_v18, %v9285_v58  ;;  %v8114_v8 = vld [vmem:[%s8626_s27 + $0xdc8] ss:$16 sps:$4 sm:$0xff]  }
 0x27c   : > { %5886 = vmatpush1.bf16.msra.mxu1 %v8063_v7  ;;  %v5552_v23 = vpop.f32.mrf.mxu0  ;;  %5862 = vmatprep.subr.bf16.mxu0 %v8068_v22  ;;  %v8117_v7 = vld [vmem:[%s8626_s27 + $0xec8] ss:$16 sps:$4 sm:$0xff]  }
 0x27d   : > { %v9360_v49 = vpop.f32.mrf.mxu1  ;;  %5887 = vmatprep.subr.bf16.mxu1 %v8071_v19  ;;  %5917 = vmatprep.mubr.bf16.mxu1 %v8878_v48  ;;  %v8078_v48 = vld [vmem:[%s8626_s27 + $0xb88] ss:$16 sps:$4 sm:$0xff]   ;;  %v5553_v29 = vadd.f32 %v5552_v23, %v9289_v60  ;;  %v5592_v40 = vadd.f32 %v9355_v52, %v5551_v16  ;;  %v8125_v19 = vld [vmem:[%s8626_s27 + $0xeac] ss:$16 sps:$4 sm:$0xff]  }
 0x27e   : > { %v5554_v42 = vpop.f32.mrf.mxu0 }
 0x27f   : > { %v5595_v27 = vpop.f32.mrf.mxu1  ;;  %5863 = vmatpush2.bf16.msra.mxu0 %v8066_v37  ;;  %v5594_v58 = vadd.f32 %v9360_v49, %v5553_v29  ;;  %v8120_v37 = vld [vmem:[%s8626_s27 + $0xda8] ss:$16 sps:$4 sm:$0xff]   ;;  %v8128_v49 = vld [vmem:[%s8626_s27 + $0xd8c] ss:$16 sps:$4 sm:$0xff]  }
 0x280   : > { %5888 = vmatpush1.bf16.msra.mxu1 %v8069_v24  ;;  %v5555_v31 = vpop.f32.mrf.mxu0  ;;  %5864 = vmatprep.subr.bf16.mxu0 %v8074_v25  ;;  %v8123_v24 = vld [vmem:[%s8626_s27 + $0xea8] ss:$16 sps:$4 sm:$0xff]   ;;  %v8131_v25 = vld [vmem:[%s8626_s27 + $0xe8c] ss:$16 sps:$4 sm:$0xff]  }
 0x281   : > { %v5596_v33 = vpop.f32.mrf.mxu1  ;;  %5889 = vmatprep.subr.bf16.mxu1 %v8077_v26  ;;  %v8129_v26 = vld [vmem:[%s8626_s27 + $0xe88] ss:$16 sps:$4 sm:$0xff]   ;;  %v8134_v42 = vld [vmem:[%s8626_s27 + $0xd6c] ss:$16 sps:$4 sm:$0xff]  }
 0x282   : > { %v8137_v27 = vld [vmem:[%s8626_s27 + $0xe6c] ss:$16 sps:$4 sm:$0xff]   ;;  %v8171_v29 = vld [vmem:[%s8626_s27 + $0x10a8] ss:$16 sps:$4 sm:$0xff]  }
 0x283   : > { %5865 = vmatpush2.bf16.msra.mxu0 %v8072_v28  ;;  %v8132_v28 = vld [vmem:[%s8626_s27 + $0xd68] ss:$16 sps:$4 sm:$0xff]   ;;  %v8140_v31 = vld [vmem:[%s8626_s27 + $0xd4c] ss:$16 sps:$4 sm:$0xff]  }
 0x284   : > { %5890 = vmatpush1.bf16.msra.mxu1 %v8075_v30  ;;  %5866 = vmatprep.subr.bf16.mxu0 %v8080_v34  ;;  %v8135_v30 = vld [vmem:[%s8626_s27 + $0xe68] ss:$16 sps:$4 sm:$0xff]   ;;  %v8143_v33 = vld [vmem:[%s8626_s27 + $0xe4c] ss:$16 sps:$4 sm:$0xff]  }
 0x285   : > { %5891 = vmatprep.subr.bf16.mxu1 %v8083_v35  ;;  %v8138_v34 = vld [vmem:[%s8626_s27 + $0xd48] ss:$16 sps:$4 sm:$0xff]  }
 0x286   : > { %v8141_v35 = vld [vmem:[%s8626_s27 + $0xe48] ss:$16 sps:$4 sm:$0xff]  }
 0x287   : > { %5867 = vmatpush2.bf16.msra.mxu0 %v8078_v48  ;;  %v8146_v48 = vld [vmem:[%s8626_s27 + $0xd2c] ss:$16 sps:$4 sm:$0xff]  }
 0x288   : > { %5892 = vmatpush1.bf16.msra.mxu1 %v8081_v36  ;;  %5868 = vmatprep.subr.bf16.mxu0 %v8086_v38  ;;  %v8149_v36 = vld [vmem:[%s8626_s27 + $0xe2c] ss:$16 sps:$4 sm:$0xff]   ;;  %v8144_v38 = vld [vmem:[%s8626_s27 + $0xd28] ss:$16 sps:$4 sm:$0xff]  }
 0x289   : > { %5893 = vmatprep.subr.bf16.mxu1 %v8089_v39  ;;  %v8147_v39 = vld [vmem:[%s8626_s27 + $0xe28] ss:$16 sps:$4 sm:$0xff]  }
 0x28b   : > { %5869 = vmatpush2.bf16.msra.mxu0 %v8084_v41  ;;  %v8152_v41 = vld [vmem:[%s8626_s27 + $0xd0c] ss:$16 sps:$4 sm:$0xff]  }
 0x28c   : > { %5894 = vmatpush1.bf16.msra.mxu1 %v8087_v21  ;;  %5870 = vmatprep.subr.bf16.mxu0 %v8092_v44  ;;  %v8155_v21 = vld [vmem:[%s8626_s27 + $0xe0c] ss:$16 sps:$4 sm:$0xff]   ;;  %v8150_v44 = vld [vmem:[%s8626_s27 + $0xd08] ss:$16 sps:$4 sm:$0xff]  }
 0x28d   : > { %5895 = vmatprep.subr.bf16.mxu1 %v8095_v45  ;;  %v8153_v45 = vld [vmem:[%s8626_s27 + $0xe08] ss:$16 sps:$4 sm:$0xff]  }
 0x28f   : > { %5871 = vmatpush2.bf16.msra.mxu0 %v8090_v46  ;;  %v8158_v46 = vld [vmem:[%s8626_s27 + $0xfec] ss:$16 sps:$4 sm:$0xff]  }
 0x290   : > { %5896 = vmatpush1.bf16.msra.mxu1 %v8093_v47  ;;  %5872 = vmatprep.subr.bf16.mxu0 %v8098_v32  ;;  %v8161_v47 = vld [vmem:[%s8626_s27 + $0x10ec] ss:$16 sps:$4 sm:$0xff]   ;;  %v8156_v32 = vld [vmem:[%s8626_s27 + $0xfe8] ss:$16 sps:$4 sm:$0xff]  }
 0x291   : > { %5897 = vmatprep.subr.bf16.mxu1 %v8101_v54  ;;  %v8159_v54 = vld [vmem:[%s8626_s27 + $0x10e8] ss:$16 sps:$4 sm:$0xff]  }
 0x293   : > { %5873 = vmatpush2.bf16.msra.mxu0 %v8096_v55  ;;  %v8164_v55 = vld [vmem:[%s8626_s27 + $0xfcc] ss:$16 sps:$4 sm:$0xff]  }
 0x294   : > { %5898 = vmatpush1.bf16.msra.mxu1 %v8099_v20  ;;  %5874 = vmatprep.subr.bf16.mxu0 %v8104_v12  ;;  %v8167_v20 = vld [vmem:[%s8626_s27 + $0x10cc] ss:$16 sps:$4 sm:$0xff]  }
 0x295   : > { %5899 = vmatprep.subr.bf16.mxu1 %v8107_v59  ;;  %v8162_v59 = vld [vmem:[%s8626_s27 + $0xfc8] ss:$16 sps:$4 sm:$0xff]  }
 0x297   : > { %5875 = vmatpush2.bf16.msra.mxu0 %v8102_v0  ;;  %v8165_v0 = vld [vmem:[%s8626_s27 + $0x10c8] ss:$16 sps:$4 sm:$0xff]  }
 0x298   : > { %5900 = vmatpush1.bf16.msra.mxu1 %v8105_v1  ;;  %5926 = vmatprep.subr.bf16.mxu0 %v8113_v9  ;;  %v8173_v9 = vld [vmem:[%s8626_s27 + $0x10ac] ss:$16 sps:$4 sm:$0xff]  }
 0x299   : > { %5901 = vmatprep.subr.bf16.mxu1 %v8110_v4  ;;  %v8170_v4 = vld [vmem:[%s8626_s27 + $0xfac] ss:$16 sps:$4 sm:$0xff]  }
 0x29a   : > { %v5632_v13 = vpop.f32.mrf.mxu0  ;;  %5877 = vmatmul.mubr.bf16.vlgmr.msra.gmra.mxu0 %v8872_v43  ;;  %v8122_v43 = vld [vmem:[%s8626_s27 + $0xdac] ss:$16 sps:$4 sm:$0xff]  }
 0x29b   : > { %v5633_v60 = vadd.f32 %v5632_v13, %v5592_v40  ;;  %5927 = vmatpush1.bf16.msra.mxu0 %v8111_v6  ;;  %5958 = vmatprep.mubr.bf16.mxu0 %v8880_v50  ;;  %v8126_v50 = vld [vmem:[%s8626_s27 + $0xd88] ss:$16 sps:$4 sm:$0xff]   ;;  %v8176_v6 = vld [vmem:[%s8626_s27 + $0xf8c] ss:$16 sps:$4 sm:$0xff]  }
 0x29c   : > { %5902 = vmatpush2.bf16.msra.mxu1 %v8108_v5  ;;  %v5634_v22 = vpop.f32.mrf.mxu0  ;;  %5928 = vmatprep.subr.bf16.mxu0 %v8119_v15  ;;  %v8174_v15 = vld [vmem:[%s8626_s27 + $0xf88] ss:$16 sps:$4 sm:$0xff]   ;;  %v8182_v40 = vld [vmem:[%s8626_s27 + $0xf6c] ss:$16 sps:$4 sm:$0xff]  }
 0x29d   : > { %5903 = vmatprep.subr.bf16.mxu1 %v8116_v14  ;;  %v5635_v18 = vadd.f32 %v5634_v22, %v5594_v58  ;;  %6180 = vst [vmem:[%s9406_s17] sm:$0xff] %v5633_v60  ;;  %v8179_v14 = vld [vmem:[%s8626_s27 + $0x108c] ss:$16 sps:$4 sm:$0xff]   ;;  %v8180_v58 = vld [vmem:[%s8626_s27 + $0xf68] ss:$16 sps:$4 sm:$0xff]  }
 0x29e   : > { %v5636_v52 = vpop.f32.mrf.mxu0  ;;  %v8185_v13 = vld [vmem:[%s8626_s27 + $0x106c] ss:$16 sps:$4 sm:$0xff]   ;;  %v8183_v60 = vld [vmem:[%s8626_s27 + $0x1068] ss:$16 sps:$4 sm:$0xff]  }
 0x29f   : > { %5929 = vmatpush1.bf16.msra.mxu0 %v8117_v7  ;;  %6181 = vst [vmem:[%s9406_s17 + $0x8] sm:$0xff] %v5635_v18  ;;  %v8191_v7 = vld [vmem:[%s8626_s27 + $0x104c] ss:$16 sps:$4 sm:$0xff]   ;;  %v8186_v22 = vld [vmem:[%s8626_s27 + $0xf48] ss:$16 sps:$4 sm:$0xff]  }
 0x2a0   : > { %5904 = vmatpush2.bf16.msra.mxu1 %v8114_v8  ;;  %v5637_v23 = vpop.f32.mrf.mxu0  ;;  %5930 = vmatprep.subr.bf16.mxu0 %v8125_v19  ;;  %v8188_v8 = vld [vmem:[%s8626_s27 + $0xf4c] ss:$16 sps:$4 sm:$0xff]   ;;  %v8192_v52 = vld [vmem:[%s8626_s27 + $0xf28] ss:$16 sps:$4 sm:$0xff]  }
 0x2a1   : > { %5905 = vmatprep.subr.bf16.mxu1 %v8122_v43  ;;  %v8189_v43 = vld [vmem:[%s8626_s27 + $0x1048] ss:$16 sps:$4 sm:$0xff]   ;;  %v8194_v19 = vld [vmem:[%s8626_s27 + $0xf2c] ss:$16 sps:$4 sm:$0xff]  }
 0x2a2   : > { %v8197_v18 = vld [vmem:[%s8626_s27 + $0x102c] ss:$16 sps:$4 sm:$0xff]  }
 0x2a3   : > { %5931 = vmatpush1.bf16.msra.mxu0 %v8123_v24  ;;  %v8200_v24 = vld [vmem:[%s8626_s27 + $0xf0c] ss:$16 sps:$4 sm:$0xff]  }
 0x2a4   : > { %5906 = vmatpush2.bf16.msra.mxu1 %v8120_v37  ;;  %5932 = vmatprep.subr.bf16.mxu0 %v8131_v25  ;;  %v8195_v37 = vld [vmem:[%s8626_s27 + $0x1028] ss:$16 sps:$4 sm:$0xff]   ;;  %v8203_v23 = vld [vmem:[%s8626_s27 + $0x100c] ss:$16 sps:$4 sm:$0xff]  }
 0x2a5   : > { %5907 = vmatprep.subr.bf16.mxu1 %v8128_v49  ;;  %v8198_v49 = vld [vmem:[%s8626_s27 + $0xf08] ss:$16 sps:$4 sm:$0xff]  }
 0x2a6   : > { %v8201_v25 = vld [vmem:[%s8626_s27 + $0x1008] ss:$16 sps:$4 sm:$0xff]  }
 0x2a7   : > { %5933 = vmatpush1.bf16.msra.mxu0 %v8129_v26  ;;  %v8209_v26 = vld [vmem:[%s8626_s27 + $0x12ec] ss:$16 sps:$4 sm:$0xff]  }
 0x2a8   : > { %5908 = vmatpush2.bf16.msra.mxu1 %v8126_v50  ;;  %5934 = vmatprep.subr.bf16.mxu0 %v8137_v27  ;;  %v8206_v50 = vld [vmem:[%s8626_s27 + $0x11ec] ss:$16 sps:$4 sm:$0xff]   ;;  %v8207_v27 = vld [vmem:[%s8626_s27 + $0x12e8] ss:$16 sps:$4 sm:$0xff]  }
 0x2a9   : > { %5909 = vmatprep.subr.bf16.mxu1 %v8134_v42  ;;  %v8204_v42 = vld [vmem:[%s8626_s27 + $0x11e8] ss:$16 sps:$4 sm:$0xff]  }
 0x2ab   : > { %5935 = vmatpush1.bf16.msra.mxu0 %v8135_v30  ;;  %v8215_v30 = vld [vmem:[%s8626_s27 + $0x12cc] ss:$16 sps:$4 sm:$0xff]  }
 0x2ac   : > { %5910 = vmatpush2.bf16.msra.mxu1 %v8132_v28  ;;  %5936 = vmatprep.subr.bf16.mxu0 %v8143_v33  ;;  %v8212_v28 = vld [vmem:[%s8626_s27 + $0x11cc] ss:$16 sps:$4 sm:$0xff]  }
 0x2ad   : > { %5911 = vmatprep.subr.bf16.mxu1 %v8140_v31 }
 0x2af   : > { %5937 = vmatpush1.bf16.msra.mxu0 %v8141_v35  ;;  %v8213_v35 = vld [vmem:[%s8626_s27 + $0x12c8] ss:$16 sps:$4 sm:$0xff]  }
 0x2b0   : > { %5912 = vmatpush2.bf16.msra.mxu1 %v8138_v34  ;;  %5938 = vmatprep.subr.bf16.mxu0 %v8149_v36  ;;  %v8210_v34 = vld [vmem:[%s8626_s27 + $0x11c8] ss:$16 sps:$4 sm:$0xff]   ;;  %v8218_v36 = vld [vmem:[%s8626_s27 + $0x11ac] ss:$16 sps:$4 sm:$0xff]  }
 0x2b1   : > { %5913 = vmatprep.subr.bf16.mxu1 %v8146_v48 }
 0x2b3   : > { %5939 = vmatpush1.bf16.msra.mxu0 %v8147_v39 }
 0x2b4   : > { %5914 = vmatpush2.bf16.msra.mxu1 %v8144_v38  ;;  %5940 = vmatprep.subr.bf16.mxu0 %v8155_v21  ;;  %v8221_v38 = vld [vmem:[%s8626_s27 + $0x12ac] ss:$16 sps:$4 sm:$0xff]   ;;  %v8219_v21 = vld [vmem:[%s8626_s27 + $0x12a8] ss:$16 sps:$4 sm:$0xff]  }
 0x2b5   : > { %5915 = vmatprep.subr.bf16.mxu1 %v8152_v41  ;;  %v8216_v41 = vld [vmem:[%s8626_s27 + $0x11a8] ss:$16 sps:$4 sm:$0xff]  }
 0x2b7   : > { %5941 = vmatpush1.bf16.msra.mxu0 %v8153_v45  ;;  %v8224_v45 = vld [vmem:[%s8626_s27 + $0x118c] ss:$16 sps:$4 sm:$0xff]  }
 0x2b8   : > { %5916 = vmatpush2.bf16.msra.mxu1 %v8150_v44  ;;  %5942 = vmatprep.subr.bf16.mxu0 %v8158_v46  ;;  %v8227_v46 = vld [vmem:[%s8626_s27 + $0x128c] ss:$16 sps:$4 sm:$0xff]  }
 0x2b9   : > { %5967 = vmatprep.subr.bf16.mxu1 %v8161_v47  ;;  %v8222_v47 = vld [vmem:[%s8626_s27 + $0x1188] ss:$16 sps:$4 sm:$0xff]  }
 0x2bb   : > { %v9441_v12 = vpop.f32.mrf.mxu1  ;;  %5918 = vmatmul.mubr.bf16.vlgmr.msra.gmra.mxu1 %v8950_v2  ;;  %5943 = vmatpush2.bf16.msra.mxu0 %v8156_v32  ;;  %v8168_v2 = vld [vmem:[%s8626_s27 + $0xfa8] ss:$16 sps:$4 sm:$0xff]   ;;  %v8230_v32 = vld [vmem:[%s8626_s27 + $0x116c] ss:$16 sps:$4 sm:$0xff]  }
 0x2bc   : > { %5968 = vmatpush1.bf16.msra.mxu1 %v8159_v54  ;;  %5944 = vmatprep.subr.bf16.mxu0 %v8164_v55  ;;  %v8233_v54 = vld [vmem:[%s8626_s27 + $0x126c] ss:$16 sps:$4 sm:$0xff]   ;;  %v8228_v55 = vld [vmem:[%s8626_s27 + $0x1168] ss:$16 sps:$4 sm:$0xff]  }
 0x2bd   : > { %v9446_v1 = vpop.f32.mrf.mxu1  ;;  %5969 = vmatprep.subr.bf16.mxu1 %v8167_v20  ;;  %5999 = vmatprep.mubr.bf16.mxu1 %v8958_v10  ;;  %v8177_v10 = vld [vmem:[%s8626_s27 + $0x1088] ss:$16 sps:$4 sm:$0xff]  }
 0x2be   : > { %v8231_v20 = vld [vmem:[%s8626_s27 + $0x1268] ss:$16 sps:$4 sm:$0xff]  }
 0x2bf   : > { %v5677_v16 = vpop.f32.mrf.mxu1  ;;  %5945 = vmatpush2.bf16.msra.mxu0 %v8162_v59  ;;  %v8239_v59 = vld [vmem:[%s8626_s27 + $0x124c] ss:$16 sps:$4 sm:$0xff]  }
 0x2c0   : > { %5970 = vmatpush1.bf16.msra.mxu1 %v8165_v0  ;;  %5946 = vmatprep.subr.bf16.mxu0 %v8170_v4  ;;  %v8234_v0 = vld [vmem:[%s8626_s27 + $0x1148] ss:$16 sps:$4 sm:$0xff]   ;;  %v8242_v4 = vld [vmem:[%s8626_s27 + $0x112c] ss:$16 sps:$4 sm:$0xff]  }
 0x2c1   : > { %v5678_v5 = vpop.f32.mrf.mxu1  ;;  %5971 = vmatprep.subr.bf16.mxu1 %v8173_v9  ;;  %v8245_v9 = vld [vmem:[%s8626_s27 + $0x122c] ss:$16 sps:$4 sm:$0xff]   ;;  %v8240_v16 = vld [vmem:[%s8626_s27 + $0x1128] ss:$16 sps:$4 sm:$0xff]  }
 0x2c2   : > { %v8251_v5 = vld [vmem:[%s8626_s27 + $0x120c] ss:$16 sps:$4 sm:$0xff]  }
 0x2c3   : > { %5947 = vmatpush2.bf16.msra.mxu0 %v8168_v2  ;;  %v8243_v2 = vld [vmem:[%s8626_s27 + $0x1228] ss:$16 sps:$4 sm:$0xff]  }
 0x2c4   : > { %5972 = vmatpush1.bf16.msra.mxu1 %v8171_v29  ;;  %5948 = vmatprep.subr.bf16.mxu0 %v8176_v6  ;;  %v8248_v29 = vld [vmem:[%s8626_s27 + $0x110c] ss:$16 sps:$4 sm:$0xff]   ;;  %v8246_v6 = vld [vmem:[%s8626_s27 + $0x1108] ss:$16 sps:$4 sm:$0xff]  }
 0x2c5   : > { %5973 = vmatprep.subr.bf16.mxu1 %v8179_v14  ;;  %v8249_v14 = vld [vmem:[%s8626_s27 + $0x1208] ss:$16 sps:$4 sm:$0xff]  }
 0x2c7   : > { %5949 = vmatpush2.bf16.msra.mxu0 %v8174_v15  ;;  %v8254_v15 = vld [vmem:[%s8626_s27 + $0x13ec] ss:$16 sps:$4 sm:$0xff]  }
 0x2c8   : > { %5974 = vmatpush1.bf16.msra.mxu1 %v8177_v10  ;;  %5950 = vmatprep.subr.bf16.mxu0 %v8182_v40  ;;  %v8257_v10 = vld [vmem:[%s8626_s27 + $0x14ec] ss:$16 sps:$4 sm:$0xff]   ;;  %v8252_v40 = vld [vmem:[%s8626_s27 + $0x13e8] ss:$16 sps:$4 sm:$0xff]  }
 0x2c9   : > { %5975 = vmatprep.subr.bf16.mxu1 %v8185_v13  ;;  %v8255_v13 = vld [vmem:[%s8626_s27 + $0x14e8] ss:$16 sps:$4 sm:$0xff]  }
 0x2cb   : > { %5951 = vmatpush2.bf16.msra.mxu0 %v8180_v58  ;;  %v8260_v58 = vld [vmem:[%s8626_s27 + $0x13cc] ss:$16 sps:$4 sm:$0xff]  }
 0x2cc   : > { %5976 = vmatpush1.bf16.msra.mxu1 %v8183_v60  ;;  %5952 = vmatprep.subr.bf16.mxu0 %v8188_v8  ;;  %v8263_v60 = vld [vmem:[%s8626_s27 + $0x14cc] ss:$16 sps:$4 sm:$0xff]  }
 0x2cd   : > { %5977 = vmatprep.subr.bf16.mxu1 %v8191_v7 }
 0x2cf   : > { %5953 = vmatpush2.bf16.msra.mxu0 %v8186_v22  ;;  %v8258_v22 = vld [vmem:[%s8626_s27 + $0x13c8] ss:$16 sps:$4 sm:$0xff]  }
 0x2d0   : > { %5978 = vmatpush1.bf16.msra.mxu1 %v8189_v43  ;;  %5954 = vmatprep.subr.bf16.mxu0 %v8194_v19  ;;  %v8261_v43 = vld [vmem:[%s8626_s27 + $0x14c8] ss:$16 sps:$4 sm:$0xff]  }
 0x2d1   : > { %5979 = vmatprep.subr.bf16.mxu1 %v8197_v18  ;;  %v8266_v18 = vld [vmem:[%s8626_s27 + $0x13ac] ss:$16 sps:$4 sm:$0xff]  }
 0x2d3   : > { %5955 = vmatpush2.bf16.msra.mxu0 %v8192_v52  ;;  %v8269_v52 = vld [vmem:[%s8626_s27 + $0x14ac] ss:$16 sps:$4 sm:$0xff]  }
 0x2d4   : > { %5980 = vmatpush1.bf16.msra.mxu1 %v8195_v37  ;;  %5956 = vmatprep.subr.bf16.mxu0 %v8200_v24  ;;  %v8264_v24 = vld [vmem:[%s8626_s27 + $0x13a8] ss:$16 sps:$4 sm:$0xff]  }
 0x2d5   : > { %5981 = vmatprep.subr.bf16.mxu1 %v8203_v23  ;;  %v8267_v23 = vld [vmem:[%s8626_s27 + $0x14a8] ss:$16 sps:$4 sm:$0xff]  }
 0x2d7   : > { %5957 = vmatpush2.bf16.msra.mxu0 %v8198_v49 }
 0x2d8   : > { %5982 = vmatpush1.bf16.msra.mxu1 %v8201_v25  ;;  %6008 = vmatprep.subr.bf16.mxu0 %v8209_v26  ;;  %v8272_v25 = vld [vmem:[%s8626_s27 + $0x138c] ss:$16 sps:$4 sm:$0xff]   ;;  %v8270_v26 = vld [vmem:[%s8626_s27 + $0x1388] ss:$16 sps:$4 sm:$0xff]  }
 0x2d9   : > { %5983 = vmatprep.subr.bf16.mxu1 %v8206_v50  ;;  %v8275_v50 = vld [vmem:[%s8626_s27 + $0x148c] ss:$16 sps:$4 sm:$0xff]  }
 0x2da   : > { %v5714_v31 = vpop.f32.mrf.mxu0  ;;  %5959 = vmatmul.mubr.bf16.vlgmr.msra.gmra.mxu0 %v8952_v3 }
 0x2db   : > { %v9481_v33 = vadd.f32 %v5714_v31, %v9441_v12  ;;  %6009 = vmatpush1.bf16.msra.mxu0 %v8207_v27  ;;  %6040 = vmatprep.mubr.bf16.mxu0 %v8960_v11  ;;  %v8225_v11 = vld [vmem:[%s8626_s27 + $0x1288] ss:$16 sps:$4 sm:$0xff]   ;;  %v8236_v12 = vld [vmem:[%s8626_s27 + $0x114c] ss:$16 sps:$4 sm:$0xff]  }
 0x2dc   : > { %5984 = vmatpush2.bf16.msra.mxu1 %v8204_v42  ;;  %v5716_v48 = vpop.f32.mrf.mxu0  ;;  %6010 = vmatprep.subr.bf16.mxu0 %v8215_v30  ;;  %v8278_v42 = vld [vmem:[%s8626_s27 + $0x136c] ss:$16 sps:$4 sm:$0xff]   ;;  %v8279_v30 = vld [vmem:[%s8626_s27 + $0x1468] ss:$16 sps:$4 sm:$0xff]  }
 0x2dd   : > { %5985 = vmatprep.subr.bf16.mxu1 %v8212_v28  ;;  %v9488_v3 = vadd.f32 %v5716_v48, %v9446_v1  ;;  %v8237_v1 = vld [vmem:[%s8626_s27 + $0x1248] ss:$16 sps:$4 sm:$0xff]   ;;  %v8281_v27 = vld [vmem:[%s8626_s27 + $0x146c] ss:$16 sps:$4 sm:$0xff]  }
 0x2de   : > { %v5718_v39 = vpop.f32.mrf.mxu0  ;;  %v8276_v28 = vld [vmem:[%s8626_s27 + $0x1368] ss:$16 sps:$4 sm:$0xff]   ;;  %v8284_v31 = vld [vmem:[%s8626_s27 + $0x134c] ss:$16 sps:$4 sm:$0xff]  }
 0x2df   : > { %6011 = vmatpush1.bf16.msra.mxu0 %v8213_v35  ;;  %v8285_v35 = vld [vmem:[%s8626_s27 + $0x1448] ss:$16 sps:$4 sm:$0xff]   ;;  %v8290_v48 = vld [vmem:[%s8626_s27 + $0x132c] ss:$16 sps:$4 sm:$0xff]  }
 0x2e0   : > { %5986 = vmatpush2.bf16.msra.mxu1 %v8210_v34  ;;  %v5719_v44 = vpop.f32.mrf.mxu0  ;;  %6012 = vmatprep.subr.bf16.mxu0 %v8221_v38  ;;  %v8282_v34 = vld [vmem:[%s8626_s27 + $0x1348] ss:$16 sps:$4 sm:$0xff]   ;;  %v8296_v39 = vld [vmem:[%s8626_s27 + $0x130c] ss:$16 sps:$4 sm:$0xff]  }
 0x2e1   : > { %5987 = vmatprep.subr.bf16.mxu1 %v8218_v36  ;;  %v8293_v36 = vld [vmem:[%s8626_s27 + $0x142c] ss:$16 sps:$4 sm:$0xff]   ;;  %v8288_v38 = vld [vmem:[%s8626_s27 + $0x1328] ss:$16 sps:$4 sm:$0xff]  }
 0x2e2   : > { %v8297_v44 = vld [vmem:[%s8626_s27 + $0x1408] ss:$16 sps:$4 sm:$0xff]  }
 0x2e3   : > { %6013 = vmatpush1.bf16.msra.mxu0 %v8219_v21  ;;  %v8294_v21 = vld [vmem:[%s8626_s27 + $0x1308] ss:$16 sps:$4 sm:$0xff]  }
 0x2e4   : > { %5988 = vmatpush2.bf16.msra.mxu1 %v8216_v41  ;;  %6014 = vmatprep.subr.bf16.mxu0 %v8227_v46  ;;  %v8299_v41 = vld [vmem:[%s8626_s27 + $0x140c] ss:$16 sps:$4 sm:$0xff]  }
 0x2e5   : > { %5989 = vmatprep.subr.bf16.mxu1 %v8224_v45  ;;  %v8302_v45 = vld [vmem:[%s8626_s27 + $0x15ec] ss:$16 sps:$4 sm:$0xff]  }
 0x2e6   : > { %v8305_v46 = vld [vmem:[%s8626_s27 + $0x16ec] ss:$16 sps:$4 sm:$0xff]  }
 0x2e7   : > { %6015 = vmatpush1.bf16.msra.mxu0 %v8225_v11  ;;  %v8303_v11 = vld [vmem:[%s8626_s27 + $0x16e8] ss:$16 sps:$4 sm:$0xff]  }
 0x2e8   : > { %5990 = vmatpush2.bf16.msra.mxu1 %v8222_v47  ;;  %6016 = vmatprep.subr.bf16.mxu0 %v8233_v54  ;;  %v8300_v47 = vld [vmem:[%s8626_s27 + $0x15e8] ss:$16 sps:$4 sm:$0xff]   ;;  %v8311_v54 = vld [vmem:[%s8626_s27 + $0x16cc] ss:$16 sps:$4 sm:$0xff]  }
 0x2e9   : > { %5991 = vmatprep.subr.bf16.mxu1 %v8230_v32  ;;  %v8308_v32 = vld [vmem:[%s8626_s27 + $0x15cc] ss:$16 sps:$4 sm:$0xff]  }
 0x2eb   : > { %6017 = vmatpush1.bf16.msra.mxu0 %v8231_v20 }
 0x2ec   : > { %5992 = vmatpush2.bf16.msra.mxu1 %v8228_v55  ;;  %6018 = vmatprep.subr.bf16.mxu0 %v8239_v59  ;;  %v8309_v59 = vld [vmem:[%s8626_s27 + $0x16c8] ss:$16 sps:$4 sm:$0xff]  }
 0x2ed   : > { %5993 = vmatprep.subr.bf16.mxu1 %v8236_v12  ;;  %v8306_v12 = vld [vmem:[%s8626_s27 + $0x15c8] ss:$16 sps:$4 sm:$0xff]  }
 0x2ef   : > { %6019 = vmatpush1.bf16.msra.mxu0 %v8237_v1  ;;  %v8314_v1 = vld [vmem:[%s8626_s27 + $0x15ac] ss:$16 sps:$4 sm:$0xff]  }
 0x2f0   : > { %5994 = vmatpush2.bf16.msra.mxu1 %v8234_v0  ;;  %6020 = vmatprep.subr.bf16.mxu0 %v8245_v9 }
 0x2f1   : > { %5995 = vmatprep.subr.bf16.mxu1 %v8242_v4  ;;  %v8317_v4 = vld [vmem:[%s8626_s27 + $0x16ac] ss:$16 sps:$4 sm:$0xff]  }
 0x2f3   : > { %6021 = vmatpush1.bf16.msra.mxu0 %v8243_v2  ;;  %v8315_v2 = vld [vmem:[%s8626_s27 + $0x16a8] ss:$16 sps:$4 sm:$0xff]  }
 0x2f4   : > { %5996 = vmatpush2.bf16.msra.mxu1 %v8240_v16  ;;  %6022 = vmatprep.subr.bf16.mxu0 %v8251_v5  ;;  %v8312_v16 = vld [vmem:[%s8626_s27 + $0x15a8] ss:$16 sps:$4 sm:$0xff]   ;;  %v8320_v5 = vld [vmem:[%s8626_s27 + $0x158c] ss:$16 sps:$4 sm:$0xff]  }
 0x2f5   : > { %5997 = vmatprep.subr.bf16.mxu1 %v8248_v29 }
 0x2f7   : > { %6023 = vmatpush1.bf16.msra.mxu0 %v8249_v14  ;;  %v8318_v14 = vld [vmem:[%s8626_s27 + $0x1588] ss:$16 sps:$4 sm:$0xff]  }
 0x2f8   : > { %5998 = vmatpush2.bf16.msra.mxu1 %v8246_v6  ;;  %6024 = vmatprep.subr.bf16.mxu0 %v8254_v15  ;;  %v8323_v6 = vld [vmem:[%s8626_s27 + $0x168c] ss:$16 sps:$4 sm:$0xff]  }
 0x2f9   : > { %6049 = vmatprep.subr.bf16.mxu1 %v8257_v10  ;;  %v8326_v15 = vld [vmem:[%s8626_s27 + $0x156c] ss:$16 sps:$4 sm:$0xff]  }
 0x2fa   : > { %v8329_v10 = vld [vmem:[%s8626_s27 + $0x166c] ss:$16 sps:$4 sm:$0xff]  }
 0x2fb   : > { %v5755_v8 = vpop.f32.mrf.mxu1  ;;  %6000 = vmatmul.mubr.bf16.vlgmr.msra.gmra.mxu1 %v9036_v56  ;;  %6025 = vmatpush2.bf16.msra.mxu0 %v8252_v40  ;;  %v8324_v40 = vld [vmem:[%s8626_s27 + $0x1568] ss:$16 sps:$4 sm:$0xff]  }
 0x2fc   : > { %v9521_v7 = vadd.f32 %v5755_v8, %v9481_v33  ;;  %6050 = vmatpush1.bf16.msra.mxu1 %v8255_v13  ;;  %6026 = vmatprep.subr.bf16.mxu0 %v8260_v58  ;;  %v8287_v33 = vld [vmem:[%s8626_s27 + $0x144c] ss:$16 sps:$4 sm:$0xff]   ;;  %v8327_v13 = vld [vmem:[%s8626_s27 + $0x1668] ss:$16 sps:$4 sm:$0xff]  }
 0x2fd   : > { %v5757_v19 = vpop.f32.mrf.mxu1  ;;  %6051 = vmatprep.subr.bf16.mxu1 %v8263_v60  ;;  %6081 = vmatprep.mubr.bf16.mxu1 %v9044_v62  ;;  %v8273_v62 = vld [vmem:[%s8626_s27 + $0x1488] ss:$16 sps:$4 sm:$0xff]   ;;  %v8332_v58 = vld [vmem:[%s8626_s27 + $0x154c] ss:$16 sps:$4 sm:$0xff]  }
 0x2fe   : > { %v9528_v56 = vadd.f32 %v5757_v19, %v9488_v3  ;;  %v8291_v3 = vld [vmem:[%s8626_s27 + $0x1428] ss:$16 sps:$4 sm:$0xff]   ;;  %v8335_v60 = vld [vmem:[%s8626_s27 + $0x164c] ss:$16 sps:$4 sm:$0xff]  }
 0x2ff   : > { %v5759_v37 = vpop.f32.mrf.mxu1  ;;  %6027 = vmatpush2.bf16.msra.mxu0 %v8258_v22  ;;  %v8330_v8 = vld [vmem:[%s8626_s27 + $0x1548] ss:$16 sps:$4 sm:$0xff]   ;;  %v8338_v22 = vld [vmem:[%s8626_s27 + $0x152c] ss:$16 sps:$4 sm:$0xff]  }
 0x300   : > { %6052 = vmatpush1.bf16.msra.mxu1 %v8261_v43  ;;  %6028 = vmatprep.subr.bf16.mxu0 %v8266_v18  ;;  %v8341_v43 = vld [vmem:[%s8626_s27 + $0x162c] ss:$16 sps:$4 sm:$0xff]   ;;  %v8336_v19 = vld [vmem:[%s8626_s27 + $0x1528] ss:$16 sps:$4 sm:$0xff]  }
 0x301   : > { %v5760_v49 = vpop.f32.mrf.mxu1  ;;  %6053 = vmatprep.subr.bf16.mxu1 %v8269_v52  ;;  %v8339_v18 = vld [vmem:[%s8626_s27 + $0x1628] ss:$16 sps:$4 sm:$0xff]   ;;  %v8344_v52 = vld [vmem:[%s8626_s27 + $0x150c] ss:$16 sps:$4 sm:$0xff]  }
 0x302   : > { %v8342_v37 = vld [vmem:[%s8626_s27 + $0x1508] ss:$16 sps:$4 sm:$0xff]   ;;  %v8353_v49 = vld [vmem:[%s8626_s27 + $0x18ec] ss:$16 sps:$4 sm:$0xff]  }
 0x303   : > { %6029 = vmatpush2.bf16.msra.mxu0 %v8264_v24  ;;  %v8345_v24 = vld [vmem:[%s8626_s27 + $0x1608] ss:$16 sps:$4 sm:$0xff]  }
 0x304   : > { %6054 = vmatpush1.bf16.msra.mxu1 %v8267_v23  ;;  %6030 = vmatprep.subr.bf16.mxu0 %v8272_v25  ;;  %v8350_v23 = vld [vmem:[%s8626_s27 + $0x17ec] ss:$16 sps:$4 sm:$0xff]   ;;  %v8348_v25 = vld [vmem:[%s8626_s27 + $0x17e8] ss:$16 sps:$4 sm:$0xff]  }
 0x305   : > { %6055 = vmatprep.subr.bf16.mxu1 %v8275_v50  ;;  %v8351_v50 = vld [vmem:[%s8626_s27 + $0x18e8] ss:$16 sps:$4 sm:$0xff]  }
 0x307   : > { %6031 = vmatpush2.bf16.msra.mxu0 %v8270_v26  ;;  %v8356_v26 = vld [vmem:[%s8626_s27 + $0x17cc] ss:$16 sps:$4 sm:$0xff]  }
 0x308   : > { %6056 = vmatpush1.bf16.msra.mxu1 %v8273_v62  ;;  %6032 = vmatprep.subr.bf16.mxu0 %v8278_v42  ;;  %v8359_v62 = vld [vmem:[%s8626_s27 + $0x18cc] ss:$16 sps:$4 sm:$0xff]  }
 0x309   : > { %6057 = vmatprep.subr.bf16.mxu1 %v8281_v27 }
 0x30b   : > { %6033 = vmatpush2.bf16.msra.mxu0 %v8276_v28  ;;  %v8354_v28 = vld [vmem:[%s8626_s27 + $0x17c8] ss:$16 sps:$4 sm:$0xff]  }
 0x30c   : > { %6058 = vmatpush1.bf16.msra.mxu1 %v8279_v30  ;;  %6034 = vmatprep.subr.bf16.mxu0 %v8284_v31  ;;  %v8357_v30 = vld [vmem:[%s8626_s27 + $0x18c8] ss:$16 sps:$4 sm:$0xff]  }
 0x30d   : > { %6059 = vmatprep.subr.bf16.mxu1 %v8287_v33  ;;  %v8362_v33 = vld [vmem:[%s8626_s27 + $0x17ac] ss:$16 sps:$4 sm:$0xff]  }
 0x30f   : > { %6035 = vmatpush2.bf16.msra.mxu0 %v8282_v34  ;;  %v8365_v34 = vld [vmem:[%s8626_s27 + $0x18ac] ss:$16 sps:$4 sm:$0xff]  }
 0x310   : > { %6060 = vmatpush1.bf16.msra.mxu1 %v8285_v35  ;;  %6036 = vmatprep.subr.bf16.mxu0 %v8290_v48  ;;  %v8360_v48 = vld [vmem:[%s8626_s27 + $0x17a8] ss:$16 sps:$4 sm:$0xff]  }
 0x311   : > { %6061 = vmatprep.subr.bf16.mxu1 %v8293_v36  ;;  %v8363_v36 = vld [vmem:[%s8626_s27 + $0x18a8] ss:$16 sps:$4 sm:$0xff]  }
 0x313   : > { %6037 = vmatpush2.bf16.msra.mxu0 %v8288_v38 }
 0x314   : > { %6062 = vmatpush1.bf16.msra.mxu1 %v8291_v3  ;;  %6038 = vmatprep.subr.bf16.mxu0 %v8296_v39  ;;  %v8368_v3 = vld [vmem:[%s8626_s27 + $0x178c] ss:$16 sps:$4 sm:$0xff]  }
 0x315   : > { %6063 = vmatprep.subr.bf16.mxu1 %v8299_v41  ;;  %v8371_v39 = vld [vmem:[%s8626_s27 + $0x188c] ss:$16 sps:$4 sm:$0xff]   ;;  %v8366_v41 = vld [vmem:[%s8626_s27 + $0x1788] ss:$16 sps:$4 sm:$0xff]  }
 0x317   : > { %6039 = vmatpush2.bf16.msra.mxu0 %v8294_v21  ;;  %v8374_v21 = vld [vmem:[%s8626_s27 + $0x176c] ss:$16 sps:$4 sm:$0xff]  }
 0x318   : > { %6064 = vmatpush1.bf16.msra.mxu1 %v8297_v44  ;;  %6090 = vmatprep.subr.bf16.mxu0 %v8305_v46  ;;  %v8377_v44 = vld [vmem:[%s8626_s27 + $0x186c] ss:$16 sps:$4 sm:$0xff]   ;;  %v8375_v46 = vld [vmem:[%s8626_s27 + $0x1868] ss:$16 sps:$4 sm:$0xff]  }
 0x319   : > { %6065 = vmatprep.subr.bf16.mxu1 %v8302_v45  ;;  %v8372_v45 = vld [vmem:[%s8626_s27 + $0x1768] ss:$16 sps:$4 sm:$0xff]  }
 0x31a   : > { %v5796_v55 = vpop.f32.mrf.mxu0  ;;  %6041 = vmatmul.mubr.bf16.vlgmr.msra.gmra.mxu0 %v9038_v57 }
 0x31b   : > { %v9561_v20 = vadd.f32 %v5796_v55, %v9521_v7  ;;  %6091 = vmatpush1.bf16.msra.mxu0 %v8303_v11  ;;  %6122 = vmatprep.mubr.bf16.mxu0 %v9046_v63  ;;  %v8321_v63 = vld [vmem:[%s8626_s27 + $0x1688] ss:$16 sps:$4 sm:$0xff]   ;;  %v8383_v11 = vld [vmem:[%s8626_s27 + $0x184c] ss:$16 sps:$4 sm:$0xff]  }
 0x31c   : > { %6066 = vmatpush2.bf16.msra.mxu1 %v8300_v47  ;;  %v5798_v0 = vpop.f32.mrf.mxu0  ;;  %6092 = vmatprep.subr.bf16.mxu0 %v8311_v54  ;;  %v8333_v7 = vld [vmem:[%s8626_s27 + $0x1648] ss:$16 sps:$4 sm:$0xff]   ;;  %v8380_v47 = vld [vmem:[%s8626_s27 + $0x174c] ss:$16 sps:$4 sm:$0xff]  }
 0x31d   : > { %6067 = vmatprep.subr.bf16.mxu1 %v8308_v32  ;;  %v9568_v57 = vadd.f32 %v5798_v0, %v9528_v56  ;;  %v8347_v56 = vld [vmem:[%s8626_s27 + $0x160c] ss:$16 sps:$4 sm:$0xff]   ;;  %v8378_v32 = vld [vmem:[%s8626_s27 + $0x1748] ss:$16 sps:$4 sm:$0xff]  }
 0x31e   : > { %v5800_v9 = vpop.f32.mrf.mxu0  ;;  %v8381_v54 = vld [vmem:[%s8626_s27 + $0x1848] ss:$16 sps:$4 sm:$0xff]   ;;  %v8386_v55 = vld [vmem:[%s8626_s27 + $0x172c] ss:$16 sps:$4 sm:$0xff]  }
 0x31f   : > { %6093 = vmatpush1.bf16.msra.mxu0 %v8309_v59  ;;  %v8387_v59 = vld [vmem:[%s8626_s27 + $0x1828] ss:$16 sps:$4 sm:$0xff]   ;;  %v8392_v0 = vld [vmem:[%s8626_s27 + $0x170c] ss:$16 sps:$4 sm:$0xff]  }
 0x320   : > { %6068 = vmatpush2.bf16.msra.mxu1 %v8306_v12  ;;  %v5801_v29 = vpop.f32.mrf.mxu0  ;;  %6094 = vmatprep.subr.bf16.mxu0 %v8317_v4  ;;  %v8384_v12 = vld [vmem:[%s8626_s27 + $0x1728] ss:$16 sps:$4 sm:$0xff]  }
 0x321   : > { %6069 = vmatprep.subr.bf16.mxu1 %v8314_v1  ;;  %v8395_v1 = vld [vmem:[%s8626_s27 + $0x180c] ss:$16 sps:$4 sm:$0xff]   ;;  %v8390_v4 = vld [vmem:[%s8626_s27 + $0x1708] ss:$16 sps:$4 sm:$0xff]  }
 0x323   : > { %6095 = vmatpush1.bf16.msra.mxu0 %v8315_v2 }
 0x324   : > { %6070 = vmatpush2.bf16.msra.mxu1 %v8312_v16  ;;  %6096 = vmatprep.subr.bf16.mxu0 %v8323_v6 }
 0x325   : > { %6071 = vmatprep.subr.bf16.mxu1 %v8320_v5 }
 0x327   : > { %6097 = vmatpush1.bf16.msra.mxu0 %v8321_v63 }
 0x328   : > { %6072 = vmatpush2.bf16.msra.mxu1 %v8318_v14  ;;  %6098 = vmatprep.subr.bf16.mxu0 %v8329_v10 }
 0x329   : > { %6073 = vmatprep.subr.bf16.mxu1 %v8326_v15 }
 0x32b   : > { %6099 = vmatpush1.bf16.msra.mxu0 %v8327_v13 }
 0x32c   : > { %6074 = vmatpush2.bf16.msra.mxu1 %v8324_v40  ;;  %6100 = vmatprep.subr.bf16.mxu0 %v8335_v60 }
 0x32d   : > { %6075 = vmatprep.subr.bf16.mxu1 %v8332_v58  ;;  %v8513_v58 = vmov 0.0  }
 0x32e   : > { %255 = vst.msk [vmem:[%s9406_s17 + $0x18] sm:$0xff] %vm254_vm0, %v8513_v58 }
 0x32f   : > { %6101 = vmatpush1.bf16.msra.mxu0 %v8333_v7 }
 0x330   : > { %6076 = vmatpush2.bf16.msra.mxu1 %v8330_v8  ;;  %6102 = vmatprep.subr.bf16.mxu0 %v8341_v43 }
 0x331   : > { %6077 = vmatprep.subr.bf16.mxu1 %v8338_v22 }
 0x333   : > { %6103 = vmatpush1.bf16.msra.mxu0 %v8339_v18 }
 0x334   : > { %6078 = vmatpush2.bf16.msra.mxu1 %v8336_v19  ;;  %6104 = vmatprep.subr.bf16.mxu0 %v8347_v56 }
 0x335   : > { %6079 = vmatprep.subr.bf16.mxu1 %v8344_v52 }
 0x337   : > { %6105 = vmatpush1.bf16.msra.mxu0 %v8345_v24 }
 0x338   : > { %6080 = vmatpush2.bf16.msra.mxu1 %v8342_v37  ;;  %6106 = vmatprep.subr.bf16.mxu0 %v8350_v23 }
 0x339   : > { %6131 = vmatprep.subr.bf16.mxu1 %v8353_v49 }
 0x33b   : > { %v5837_v42 = vpop.f32.mrf.mxu1  ;;  %6082 = vmatmul.mubr.bf16.vlgmr.msra.gmra.mxu1 %v9120_v51  ;;  %6107 = vmatpush2.bf16.msra.mxu0 %v8348_v25 }
 0x33c   : > { %v9601_v27 = vadd.f32 %v5837_v42, %v9561_v20  ;;  %6132 = vmatpush1.bf16.msra.mxu1 %v8351_v50  ;;  %6108 = vmatprep.subr.bf16.mxu0 %v8356_v26  ;;  %v8389_v20 = vld [vmem:[%s8626_s27 + $0x182c] ss:$16 sps:$4 sm:$0xff]  }
 0x33d   : > { %v5839_v31 = vpop.f32.mrf.mxu1  ;;  %6133 = vmatprep.subr.bf16.mxu1 %v8359_v62  ;;  %6163 = vmatprep.mubr.bf16.mxu1 %v8512_v17  ;;  %v8369_v17 = vld [vmem:[%s8626_s27 + $0x1888] ss:$16 sps:$4 sm:$0xff]  }
 0x33e   : > { %v5840_v51 = vadd.f32 %v5839_v31, %v9568_v57  ;;  %v8393_v57 = vld [vmem:[%s8626_s27 + $0x1808] ss:$16 sps:$4 sm:$0xff]  }
 0x33f   : > { %v5841_v35 = vpop.f32.mrf.mxu1  ;;  %6109 = vmatpush2.bf16.msra.mxu0 %v8354_v28 }
 0x340   : > { %6134 = vmatpush1.bf16.msra.mxu1 %v8357_v30  ;;  %6110 = vmatprep.subr.bf16.mxu0 %v8362_v33 }
 0x341   : > { %v5842_v38 = vpop.f32.mrf.mxu1  ;;  %6135 = vmatprep.subr.bf16.mxu1 %v8365_v34 }
 0x343   : > { %6111 = vmatpush2.bf16.msra.mxu0 %v8360_v48 }
 0x344   : > { %6136 = vmatpush1.bf16.msra.mxu1 %v8363_v36  ;;  %6112 = vmatprep.subr.bf16.mxu0 %v8368_v3  ;;  %v6175_v3 = vld [vmem:[%s9406_s17 + $0x18] sm:$0xff] }
 0x345   : > { %6137 = vmatprep.subr.bf16.mxu1 %v8371_v39 }
 0x347   : > { %6113 = vmatpush2.bf16.msra.mxu0 %v8366_v41 }
 0x348   : > { %6138 = vmatpush1.bf16.msra.mxu1 %v8369_v17  ;;  %6114 = vmatprep.subr.bf16.mxu0 %v8374_v21 }
 0x349   : > { %6139 = vmatprep.subr.bf16.mxu1 %v8377_v44 }
 0x34b   : > { %6115 = vmatpush2.bf16.msra.mxu0 %v8372_v45 }
 0x34c   : > { %6140 = vmatpush1.bf16.msra.mxu1 %v8375_v46  ;;  %6116 = vmatprep.subr.bf16.mxu0 %v8380_v47 }
 0x34d   : > { %6141 = vmatprep.subr.bf16.mxu1 %v8383_v11 }
 0x34f   : > { %6117 = vmatpush2.bf16.msra.mxu0 %v8378_v32 }
 0x350   : > { %6142 = vmatpush1.bf16.msra.mxu1 %v8381_v54  ;;  %6118 = vmatprep.subr.bf16.mxu0 %v8386_v55 }
 0x351   : > { %6143 = vmatprep.subr.bf16.mxu1 %v8389_v20 }
 0x353   : > { %6119 = vmatpush2.bf16.msra.mxu0 %v8384_v12 }
 0x354   : > { %6144 = vmatpush1.bf16.msra.mxu1 %v8387_v59  ;;  %6120 = vmatprep.subr.bf16.mxu0 %v8392_v0 }
 0x355   : > { %6145 = vmatprep.subr.bf16.mxu1 %v8395_v1 }
 0x357   : > { %6121 = vmatpush2.bf16.msra.mxu0 %v8390_v4 }
 0x358   : > { %6146 = vmatpush1.bf16.msra.mxu1 %v8393_v57 }
 0x35a   : > { %v5878_v9 = vpop.f32.mrf.mxu0  ;;  %6123 = vmatmul.mubr.bf16.vlgmr.msra.gmra.mxu0 %v9122_v53 }
 0x35b   : > { %6164 = vmatmul.mubr.bf16.vlgmr.msra.gmra.mxu1 %v9167_v61  ;;  %v5879_v16 = vadd.f32 %v5878_v9, %v9601_v27 }
 0x35c   : > { %v5880_v2 = vpop.f32.mrf.mxu0 }
 0x35d   : > { %v5881_v29 = vadd.f32 %v5880_v2, %v5840_v51 }
 0x35e   : > { %v5882_v5 = vpop.f32.mrf.mxu0 }
 0x360   : > { %v5883_v6 = vpop.f32.mrf.mxu0 }
 0x37b   : > { %v5919_v14 = vpop.f32.mrf.mxu1 }
 0x37c   : > { %v5920_v63 = vadd.f32 %v5919_v14, %v5879_v16 }
 0x37d   : > { %v5921_v15 = vpop.f32.mrf.mxu1 }
 0x37e   : > { %v5922_v10 = vadd.f32 %v5921_v15, %v5881_v29 }
 0x37f   : > { %v5923_v40 = vpop.f32.mrf.mxu1 }
 0x381   : > { %v5924_v13 = vpop.f32.mrf.mxu1 }
 0x39a   : > { %v5960_v60 = vpop.f32.mrf.mxu0 }
 0x39b   : > { %v5961_v53 = vadd.f32 %v5960_v60, %v5920_v63 }
 0x39c   : > { %v5962_v8 = vpop.f32.mrf.mxu0 }
 0x39d   : > { %v5963_v61 = vadd.f32 %v5962_v8, %v5922_v10 }
 0x39e   : > { %v5964_v7 = vpop.f32.mrf.mxu0 }
 0x3a0   : > { %v5965_v22 = vpop.f32.mrf.mxu0 }
 0x3bb   : > { %v6001_v43 = vpop.f32.mrf.mxu1 }
 0x3bc   : > { %v6002_v19 = vadd.f32 %v6001_v43, %v5961_v53 }
 0x3bd   : > { %v6003_v18 = vpop.f32.mrf.mxu1 }
 0x3be   : > { %v6004_v52 = vadd.f32 %v6003_v18, %v5963_v61 }
 0x3bf   : > { %v6005_v56 = vpop.f32.mrf.mxu1 }
 0x3c1   : > { %v6006_v37 = vpop.f32.mrf.mxu1 }
 0x3da   : > { %v6042_v24 = vpop.f32.mrf.mxu0 }
 0x3db   : > { %v6043_v27 = vadd.f32 %v6042_v24, %v6002_v19 }
 0x3dc   : > { %v6044_v23 = vpop.f32.mrf.mxu0 }
 0x3dd   : > { %v6045_v28 = vadd.f32 %v6044_v23, %v6004_v52 }
 0x3de   : > { %v6046_v49 = vpop.f32.mrf.mxu0 }
 0x3e0   : > { %v6047_v25 = vpop.f32.mrf.mxu0 }
 0x3fb   : > { %v6083_v50 = vpop.f32.mrf.mxu1 }
 0x3fc   : > { %v6084_v30 = vadd.f32 %v6083_v50, %v6043_v27 }
 0x3fd   : > { %v6085_v26 = vpop.f32.mrf.mxu1 }
 0x3fe   : > { %v6086_v34 = vadd.f32 %v6085_v26, %v6045_v28 }
 0x3ff   : > { %v6087_v62 = vpop.f32.mrf.mxu1 }
 0x401   : > { %v6088_v42 = vpop.f32.mrf.mxu1 }
 0x41a   : > { %v6124_v31 = vpop.f32.mrf.mxu0 }
 0x41b   : > { %v6165_v33 = vpop.f32.mrf.mxu1  ;;  %v6125_v51 = vadd.f32 %v6124_v31, %v6084_v30 }
 0x41c   : > { %v6126_v35 = vpop.f32.mrf.mxu0 }
 0x41d   : > { %v6167_v48 = vpop.f32.mrf.mxu1  ;;  %v6166_v36 = vadd.f32 %v6165_v33, %v6125_v51  ;;  %v6127_v38 = vadd.f32 %v6126_v35, %v6086_v34 }
 0x41e   : > { %v6128_v39 = vpop.f32.mrf.mxu0 }
 0x41f   : > { %v6169_v41 = vpop.f32.mrf.mxu1  ;;  %v6168_v17 = vadd.f32 %v6167_v48, %v6127_v38  ;;  %6182 = vst [vmem:[%s9406_s17 + $0x10] sm:$0xff] %v6166_v36 }
 0x420   : > { %v6129_v21 = vpop.f32.mrf.mxu0 }
 0x421   : > { %v6170_v44 = vpop.f32.mrf.mxu1  ;;  %v6179_v45 = vadd.f32 %v6175_v3, %v6168_v17 }
 0x423   : > { %6184 = vst.msk [vmem:[%s9406_s17 + $0x18] sm:$0xff] %vm254_vm0, %v6179_v45 }
 0x424 PF: > { %s18_s14 = sadd.s32 1, %s8506_s14   ;;  %s9664_s9 = smov %s8490_s10 }
 0x425   : > { %p15_p9 = scmp.ge.s32.totalorder %s18_s14, 4   ;;  %s9665_s10 = smov %s8494_s11 }
 0x426   : > { %s9666_s11 = smov %s8574_s20  ;;  %s9667_s12 = smov %s8502_s13 }
 0x427   : > { %s9668_s13 = smov %s9670_s16  ;;  %17 = sbr.rel (!%p15_p9) target bundleno = 6 (0x6), region = 85 }
 0x42c   :  { %6214 = vsyncpa [#allocation3], 1 }
 0x42d   :  { %6216 = vsyncpa [#allocation3 + $0x1], 1 }
 0x42e   :  { %6217 = vsyncpa [#allocation5], 1 }
 0x42f   :  { %6219 = vsyncpa [#allocation5 + $0x1], 1 }

</bundles_post_ra>
